<compile_context>
chip_gen: v6e
topology: v6e:2x2x1
jax: 0.10.0
libtpu: 0.0.40
codegen_flags: <defaults>
</compile_context>

<pallas_src>
import functools
import math

import jax
import jax.numpy as jnp
from jax.experimental import pallas as pl
from jax.experimental.pallas import tpu as pltpu


def _basic_block_kernel(x_ref, sc_ref, w1_ref, sb1_ref, w2_ref, sb2_ref, o_ref,
                        xpad, midpad, *, stride, compute_dtype):
    """Fused conv3x3+BN+ReLU -> conv3x3+BN -> +shortcut -> ReLU for one image.

    x_ref  : [1, H,  W,  Cin]   input image block
    sc_ref : [1, Ho, Wo, P]     pre-shaped residual branch (identity / option-A)
    w1_ref : [9, Cin, P]        conv1 weights, tap-major (kh*3 + kw)
    sb1_ref: [2, P]             folded BN1 (row 0 = scale, row 1 = bias)
    w2_ref : [9, P, P]          conv2 weights
    sb2_ref: [2, P]             folded BN2
    o_ref  : [1, Ho, Wo, P]     output block
    xpad   : VMEM [H+2,  W+2,  Cin]  zero-padded input scratch
    midpad : VMEM [Ho+2, Wo+2, P]    zero-padded conv1-output scratch
    """
    H, W, Cin = x_ref.shape[1], x_ref.shape[2], x_ref.shape[3]
    Ho, Wo, P = o_ref.shape[1], o_ref.shape[2], o_ref.shape[3]

    def tap(ref, kh, kw, nh, nw, s):
        # 3x3 tap window; strided sublane/slab loads only when s > 1.
        if s == 1:
            return ref[kh:kh + nh, kw:kw + nw, :]
        return ref[pl.ds(kh, nh, stride=s), pl.ds(kw, nw, stride=s), :]

    # ---- stage 1: conv1 (3x3, stride) + BN1 + ReLU --------------------------
    # Zero-pad the image into VMEM scratch (padding=1); re-zeroed every
    # iteration so it is correct under any megacore splitting of the grid.
    xpad[...] = jnp.zeros_like(xpad)
    xpad[pl.ds(1, H), pl.ds(1, W), :] = x_ref[0].astype(xpad.dtype)

    acc1 = jnp.zeros((Ho * Wo, P), jnp.float32)
    for kh in range(3):
        for kw in range(3):
            patch = tap(xpad, kh, kw, Ho, Wo, stride).reshape(Ho * Wo, Cin)
            acc1 = acc1 + jnp.dot(
                patch.astype(compute_dtype),
                w1_ref[kh * 3 + kw].astype(compute_dtype),
                preferred_element_type=jnp.float32,
            )
    sb1 = sb1_ref[...]
    a1 = jnp.maximum(acc1 * sb1[0:1, :] + sb1[1:2, :], 0.0)

    # ---- stage 2: conv2 (3x3, stride 1) + BN2 -------------------------------
    midpad[...] = jnp.zeros_like(midpad)
    midpad[pl.ds(1, Ho), pl.ds(1, Wo), :] = a1.reshape(Ho, Wo, P)

    acc2 = jnp.zeros((Ho * Wo, P), jnp.float32)
    for kh in range(3):
        for kw in range(3):
            patch = midpad[kh:kh + Ho, kw:kw + Wo, :].reshape(Ho * Wo, P)
            acc2 = acc2 + jnp.dot(
                patch.astype(compute_dtype),
                w2_ref[kh * 3 + kw].astype(compute_dtype),
                preferred_element_type=jnp.float32,
            )
    sb2 = sb2_ref[...]
    out = acc2 * sb2[0:1, :] + sb2[1:2, :]

    # ---- residual add + final ReLU ------------------------------------------
    out = out + sc_ref[0].reshape(Ho * Wo, P).astype(jnp.float32)
    out = jnp.maximum(out, 0.0)
    o_ref[0] = out.reshape(Ho, Wo, P).astype(o_ref.dtype)


@functools.partial(jax.jit, static_argnames=("stride", "compute_dtype"))
def basic_block_forward(x, w1_hwio, sb1, w2_hwio, sb2, *, stride=1,
                        compute_dtype=jnp.float32):
    """x: [N, H, W, Cin] (NHWC).  Returns [N, Ho, Wo, planes]."""
    N, H, W, Cin = x.shape
    P = w1_hwio.shape[-1]
    Ho = (H + 2 - 3) // stride + 1
    Wo = (W + 2 - 3) // stride + 1

    # Shortcut branch (identity, or the option-'A' LambdaLayer: ::2 spatial
    # subsample + zero channel padding).  Pure indexing, evaluated at the XLA
    # level; the residual *add* itself is fused inside the kernel.
    if stride == 1 and Cin == P:
        shortcut = x
    else:
        pad = P // 4
        if Cin + 2 * pad != P:
            raise ValueError("option-'A' shortcut needs planes == in_planes + 2*(planes//4)")
        shortcut = jnp.pad(x[:, ::2, ::2, :], ((0, 0), (0, 0), (0, 0), (pad, pad)))
        if shortcut.shape[1:3] != (Ho, Wo):
            raise ValueError("option-'A' shortcut spatial size mismatch")

    # Tap-major weight views: free row-major reshape, no transpose / HBM pass.
    w1_taps = w1_hwio.reshape(9, Cin, P)
    w2_taps = w2_hwio.reshape(9, P, P)

    kernel = functools.partial(_basic_block_kernel, stride=stride,
                               compute_dtype=compute_dtype)

    return pl.pallas_call(
        kernel,
        out_shape=jax.ShapeDtypeStruct((N, Ho, Wo, P), x.dtype),
        grid_spec=pltpu.PrefetchScalarGridSpec(
            num_scalar_prefetch=0,
            grid=(N,),
            in_specs=[
                pl.BlockSpec((1, H, W, Cin), lambda n: (n, 0, 0, 0)),
                pl.BlockSpec((1, Ho, Wo, P), lambda n: (n, 0, 0, 0)),
                pl.BlockSpec((9, Cin, P), lambda n: (0, 0, 0)),
                pl.BlockSpec((2, P), lambda n: (0, 0)),
                pl.BlockSpec((9, P, P), lambda n: (0, 0, 0)),
                pl.BlockSpec((2, P), lambda n: (0, 0)),
            ],
            out_specs=pl.BlockSpec((1, Ho, Wo, P), lambda n: (n, 0, 0, 0)),
            scratch_shapes=[
                pltpu.VMEM((H + 2, W + 2, Cin), jnp.float32),
                pltpu.VMEM((Ho + 2, Wo + 2, P), jnp.float32),
            ],
        ),
        compiler_params=pltpu.CompilerParams(dimension_semantics=("parallel",)),
    )(x, shortcut, w1_taps, sb1, w2_taps, sb2)


# ----------------------------- parameters / reference ------------------------

def _fold_bn(key, channels, eps=1e-5):
    """Synthetic BN params (gamma, beta, running mean/var) folded to [2, C]."""
    kg, kb, km, kv = jax.random.split(key, 4)
    gamma = jax.random.uniform(kg, (channels,), jnp.float32, 0.5, 1.5)
    beta = 0.1 * jax.random.normal(kb, (channels,), jnp.float32)
    mean = 0.1 * jax.random.normal(km, (channels,), jnp.float32)
    var = jax.random.uniform(kv, (channels,), jnp.float32, 0.5, 1.5)
    scale = gamma / jnp.sqrt(var + eps)
    bias = beta - mean * scale
    return jnp.stack([scale, bias], axis=0)


def init_basic_block_params(key, in_planes, planes):
    k1, k2, k3, k4 = jax.random.split(key, 4)

    def conv_init(k, cin, cout):
        bound = 1.0 / math.sqrt(cin * 9)
        return jax.random.uniform(k, (3, 3, cin, cout), jnp.float32, -bound, bound)

    return {
        "w1_hwio": conv_init(k1, in_planes, planes),   # HWIO
        "sb1": _fold_bn(k2, planes),
        "w2_hwio": conv_init(k3, planes, planes),
        "sb2": _fold_bn(k4, planes),
    }


def basic_block_reference(x, params, *, stride):
    """Pure-JAX reference (lax.conv) with the same folded inference-mode BN."""
    def conv3x3(inp, w_hwio, s):
        return jax.lax.conv_general_dilated(
            inp, w_hwio, window_strides=(s, s), padding=((1, 1), (1, 1)),
            dimension_numbers=("NHWC", "HWIO", "NHWC"))

    def bn(inp, sb):
        return inp * sb[0][None, None, None, :] + sb[1][None, None, None, :]

    out = jax.nn.relu(bn(conv3x3(x, params["w1_hwio"], stride), params["sb1"]))
    out = bn(conv3x3(out, params["w2_hwio"], 1), params["sb2"])

    planes = params["w1_hwio"].shape[-1]
    cin = x.shape[-1]
    if stride == 1 and cin == planes:
        sc = x
    else:
        pad = planes // 4
        sc = jnp.pad(x[:, ::2, ::2, :], ((0, 0), (0, 0), (0, 0), (pad, pad)))
    return jax.nn.relu(out + sc)


if __name__ == "__main__":
    key = jax.random.PRNGKey(0)

    # Config A: identity-shortcut block (stride=1, 32->32), f32 MXU feed (tight check).
    # Config B: down-sampling block (stride=2, 16->32, option-'A' shortcut),
    #           bf16 MXU feed with f32 accumulation (looser check).
    configs = [
        dict(batch=2, H=16, W=16, in_planes=32, planes=32, stride=1,
             compute_dtype=jnp.float32, atol=1e-4, rtol=1e-4),
        dict(batch=2, H=16, W=16, in_planes=16, planes=32, stride=2,
             compute_dtype=jnp.bfloat16, atol=5e-2, rtol=5e-2),
    ]

    for cfg in configs:
        kp, kx, key = jax.random.split(key, 3)
        params = init_basic_block_params(kp, cfg["in_planes"], cfg["planes"])
        x = jax.random.normal(
            kx, (cfg["batch"], cfg["H"], cfg["W"], cfg["in_planes"]), jnp.float32)

        out = basic_block_forward(
            x, params["w1_hwio"], params["sb1"], params["w2_hwio"], params["sb2"],
            stride=cfg["stride"], compute_dtype=cfg["compute_dtype"])
        out = jax.block_until_ready(out)

        ref = basic_block_reference(x, params, stride=cfg["stride"])
        assert out.shape == ref.shape, (out.shape, ref.shape)
        assert bool(jnp.allclose(out, ref, atol=cfg["atol"], rtol=cfg["rtol"]))

    print("KERNEL_OK")
</pallas_src>

<mosaic_0001>
module attributes {stable_mosaic.version = 11 : i64} {
  func.func @_basic_block_kernel(%arg0: i32, %arg1: memref<1x16x16x32xf32, #tpu.memory_space<vmem>>, %arg2: memref<1x16x16x32xf32, #tpu.memory_space<vmem>>, %arg3: memref<9x32x32xf32, #tpu.memory_space<vmem>>, %arg4: memref<2x32xf32, #tpu.memory_space<vmem>>, %arg5: memref<9x32x32xf32, #tpu.memory_space<vmem>>, %arg6: memref<2x32xf32, #tpu.memory_space<vmem>>, %arg7: memref<1x16x16x32xf32, #tpu.memory_space<vmem>>, %arg8: memref<18x18x32xf32, #tpu.memory_space<vmem>>, %arg9: memref<18x18x32xf32, #tpu.memory_space<vmem>>) attributes {dimension_semantics = [#tpu.dimension_semantics<parallel>], iteration_bounds = array<i64: 2>, scalar_prefetch = 0 : i64, scratch_operands = 2 : i64, tpu.core_type = #tpu.core_type<tc>, window_params = [{transform_indices = @transform_0, window_bounds = array<i64: 1, 16, 16, 32>}, {transform_indices = @transform_1, window_bounds = array<i64: 1, 16, 16, 32>}, {pipeline_mode = #tpu.pipeline_mode<synchronous>, transform_indices = @transform_2, window_bounds = array<i64: 9, 32, 32>}, {pipeline_mode = #tpu.pipeline_mode<synchronous>, transform_indices = @transform_3, window_bounds = array<i64: 2, 32>}, {pipeline_mode = #tpu.pipeline_mode<synchronous>, transform_indices = @transform_4, window_bounds = array<i64: 9, 32, 32>}, {pipeline_mode = #tpu.pipeline_mode<synchronous>, transform_indices = @transform_5, window_bounds = array<i64: 2, 32>}, {transform_indices = @transform_6, window_bounds = array<i64: 1, 16, 16, 32>}]} {
    %cst = arith.constant 0.000000e+00 : f32
    %0 = vector.broadcast %cst : f32 to vector<18x18x32xf32>
    %c0 = arith.constant 0 : index
    %c0_0 = arith.constant 0 : index
    %c0_1 = arith.constant 0 : index
    %1 = vector.load %arg8[%c0, %c0_0, %c0_1] : memref<18x18x32xf32, #tpu.memory_space<vmem>>, vector<18x18x32xf32>
    tpu.vector_store %arg8[%c0, %c0_0, %c0_1], %0 {strides = array<i32>} : memref<18x18x32xf32, #tpu.memory_space<vmem>>, vector<18x18x32xf32>,
    %c0_2 = arith.constant 0 : index
    %c0_3 = arith.constant 0 : index
    %c0_4 = arith.constant 0 : index
    %c0_5 = arith.constant 0 : index
    %2 = vector.load %arg1[%c0_2, %c0_3, %c0_4, %c0_5] : memref<1x16x16x32xf32, #tpu.memory_space<vmem>>, vector<1x16x16x32xf32>
    %3 = vector.shape_cast %2 : vector<1x16x16x32xf32> to vector<16x16x32xf32>
    %c1 = arith.constant 1 : index
    %c1_6 = arith.constant 1 : index
    %c0_7 = arith.constant 0 : index
    %4 = vector.load %arg8[%c1, %c1_6, %c0_7] : memref<18x18x32xf32, #tpu.memory_space<vmem>>, vector<16x16x32xf32>
    tpu.vector_store %arg8[%c1, %c1_6, %c0_7], %3 {strides = array<i32>} : memref<18x18x32xf32, #tpu.memory_space<vmem>>, vector<16x16x32xf32>,
    %cst_8 = arith.constant 0.000000e+00 : f32
    %5 = vector.broadcast %cst_8 : f32 to vector<256x32xf32>
    %c0_9 = arith.constant 0 : index
    %c0_10 = arith.constant 0 : index
    %c0_11 = arith.constant 0 : index
    %6 = vector.load %arg8[%c0_9, %c0_10, %c0_11] : memref<18x18x32xf32, #tpu.memory_space<vmem>>, vector<16x16x32xf32>
    %7 = vector.shape_cast %6 : vector<16x16x32xf32> to vector<256x32xf32>
    %c0_12 = arith.constant 0 : index
    %c0_13 = arith.constant 0 : index
    %c0_14 = arith.constant 0 : index
    %8 = vector.load %arg3[%c0_12, %c0_13, %c0_14] : memref<9x32x32xf32, #tpu.memory_space<vmem>>, vector<1x32x32xf32>
    %9 = vector.shape_cast %8 : vector<1x32x32xf32> to vector<32x32xf32>
    %cst_15 = arith.constant dense<0.000000e+00> : vector<256x32xf32>
    %10 = tpu.matmul %7, %9, %cst_15 {dimension_numbers = #tpu.dot_dimension_numbers<[1], [0], [0], [1], [0, 0, 1, 1], [], []>} : vector<256x32xf32>, vector<32x32xf32>, vector<256x32xf32> -> vector<256x32xf32>
    %11 = arith.addf %5, %10 : vector<256x32xf32>
    %c0_16 = arith.constant 0 : index
    %c1_17 = arith.constant 1 : index
    %c0_18 = arith.constant 0 : index
    %12 = vector.load %arg8[%c0_16, %c1_17, %c0_18] : memref<18x18x32xf32, #tpu.memory_space<vmem>>, vector<16x16x32xf32>
    %13 = vector.shape_cast %12 : vector<16x16x32xf32> to vector<256x32xf32>
    %c1_19 = arith.constant 1 : index
    %c0_20 = arith.constant 0 : index
    %c0_21 = arith.constant 0 : index
    %14 = vector.load %arg3[%c1_19, %c0_20, %c0_21] : memref<9x32x32xf32, #tpu.memory_space<vmem>>, vector<1x32x32xf32>
    %15 = vector.shape_cast %14 : vector<1x32x32xf32> to vector<32x32xf32>
    %cst_22 = arith.constant dense<0.000000e+00> : vector<256x32xf32>
    %16 = tpu.matmul %13, %15, %cst_22 {dimension_numbers = #tpu.dot_dimension_numbers<[1], [0], [0], [1], [0, 0, 1, 1], [], []>} : vector<256x32xf32>, vector<32x32xf32>, vector<256x32xf32> -> vector<256x32xf32>
    %17 = arith.addf %11, %16 : vector<256x32xf32>
    %c0_23 = arith.constant 0 : index
    %c2 = arith.constant 2 : index
    %c0_24 = arith.constant 0 : index
    %18 = vector.load %arg8[%c0_23, %c2, %c0_24] : memref<18x18x32xf32, #tpu.memory_space<vmem>>, vector<16x16x32xf32>
    %19 = vector.shape_cast %18 : vector<16x16x32xf32> to vector<256x32xf32>
    %c2_25 = arith.constant 2 : index
    %c0_26 = arith.constant 0 : index
    %c0_27 = arith.constant 0 : index
    %20 = vector.load %arg3[%c2_25, %c0_26, %c0_27] : memref<9x32x32xf32, #tpu.memory_space<vmem>>, vector<1x32x32xf32>
    %21 = vector.shape_cast %20 : vector<1x32x32xf32> to vector<32x32xf32>
    %cst_28 = arith.constant dense<0.000000e+00> : vector<256x32xf32>
    %22 = tpu.matmul %19, %21, %cst_28 {dimension_numbers = #tpu.dot_dimension_numbers<[1], [0], [0], [1], [0, 0, 1, 1], [], []>} : vector<256x32xf32>, vector<32x32xf32>, vector<256x32xf32> -> vector<256x32xf32>
    %23 = arith.addf %17, %22 : vector<256x32xf32>
    %c1_29 = arith.constant 1 : index
    %c0_30 = arith.constant 0 : index
    %c0_31 = arith.constant 0 : index
    %24 = vector.load %arg8[%c1_29, %c0_30, %c0_31] : memref<18x18x32xf32, #tpu.memory_space<vmem>>, vector<16x16x32xf32>
    %25 = vector.shape_cast %24 : vector<16x16x32xf32> to vector<256x32xf32>
    %c3 = arith.constant 3 : index
    %c0_32 = arith.constant 0 : index
    %c0_33 = arith.constant 0 : index
    %26 = vector.load %arg3[%c3, %c0_32, %c0_33] : memref<9x32x32xf32, #tpu.memory_space<vmem>>, vector<1x32x32xf32>
    %27 = vector.shape_cast %26 : vector<1x32x32xf32> to vector<32x32xf32>
    %cst_34 = arith.constant dense<0.000000e+00> : vector<256x32xf32>
    %28 = tpu.matmul %25, %27, %cst_34 {dimension_numbers = #tpu.dot_dimension_numbers<[1], [0], [0], [1], [0, 0, 1, 1], [], []>} : vector<256x32xf32>, vector<32x32xf32>, vector<256x32xf32> -> vector<256x32xf32>
    %29 = arith.addf %23, %28 : vector<256x32xf32>
    %c1_35 = arith.constant 1 : index
    %c1_36 = arith.constant 1 : index
    %c0_37 = arith.constant 0 : index
    %30 = vector.load %arg8[%c1_35, %c1_36, %c0_37] : memref<18x18x32xf32, #tpu.memory_space<vmem>>, vector<16x16x32xf32>
    %31 = vector.shape_cast %30 : vector<16x16x32xf32> to vector<256x32xf32>
    %c4 = arith.constant 4 : index
    %c0_38 = arith.constant 0 : index
    %c0_39 = arith.constant 0 : index
    %32 = vector.load %arg3[%c4, %c0_38, %c0_39] : memref<9x32x32xf32, #tpu.memory_space<vmem>>, vector<1x32x32xf32>
    %33 = vector.shape_cast %32 : vector<1x32x32xf32> to vector<32x32xf32>
    %cst_40 = arith.constant dense<0.000000e+00> : vector<256x32xf32>
    %34 = tpu.matmul %31, %33, %cst_40 {dimension_numbers = #tpu.dot_dimension_numbers<[1], [0], [0], [1], [0, 0, 1, 1], [], []>} : vector<256x32xf32>, vector<32x32xf32>, vector<256x32xf32> -> vector<256x32xf32>
    %35 = arith.addf %29, %34 : vector<256x32xf32>
    %c1_41 = arith.constant 1 : index
    %c2_42 = arith.constant 2 : index
    %c0_43 = arith.constant 0 : index
    %36 = vector.load %arg8[%c1_41, %c2_42, %c0_43] : memref<18x18x32xf32, #tpu.memory_space<vmem>>, vector<16x16x32xf32>
    %37 = vector.shape_cast %36 : vector<16x16x32xf32> to vector<256x32xf32>
    %c5 = arith.constant 5 : index
    %c0_44 = arith.constant 0 : index
    %c0_45 = arith.constant 0 : index
    %38 = vector.load %arg3[%c5, %c0_44, %c0_45] : memref<9x32x32xf32, #tpu.memory_space<vmem>>, vector<1x32x32xf32>
    %39 = vector.shape_cast %38 : vector<1x32x32xf32> to vector<32x32xf32>
    %cst_46 = arith.constant dense<0.000000e+00> : vector<256x32xf32>
    %40 = tpu.matmul %37, %39, %cst_46 {dimension_numbers = #tpu.dot_dimension_numbers<[1], [0], [0], [1], [0, 0, 1, 1], [], []>} : vector<256x32xf32>, vector<32x32xf32>, vector<256x32xf32> -> vector<256x32xf32>
    %41 = arith.addf %35, %40 : vector<256x32xf32>
    %c2_47 = arith.constant 2 : index
    %c0_48 = arith.constant 0 : index
    %c0_49 = arith.constant 0 : index
    %42 = vector.load %arg8[%c2_47, %c0_48, %c0_49] : memref<18x18x32xf32, #tpu.memory_space<vmem>>, vector<16x16x32xf32>
    %43 = vector.shape_cast %42 : vector<16x16x32xf32> to vector<256x32xf32>
    %c6 = arith.constant 6 : index
    %c0_50 = arith.constant 0 : index
    %c0_51 = arith.constant 0 : index
    %44 = vector.load %arg3[%c6, %c0_50, %c0_51] : memref<9x32x32xf32, #tpu.memory_space<vmem>>, vector<1x32x32xf32>
    %45 = vector.shape_cast %44 : vector<1x32x32xf32> to vector<32x32xf32>
    %cst_52 = arith.constant dense<0.000000e+00> : vector<256x32xf32>
    %46 = tpu.matmul %43, %45, %cst_52 {dimension_numbers = #tpu.dot_dimension_numbers<[1], [0], [0], [1], [0, 0, 1, 1], [], []>} : vector<256x32xf32>, vector<32x32xf32>, vector<256x32xf32> -> vector<256x32xf32>
    %47 = arith.addf %41, %46 : vector<256x32xf32>
    %c2_53 = arith.constant 2 : index
    %c1_54 = arith.constant 1 : index
    %c0_55 = arith.constant 0 : index
    %48 = vector.load %arg8[%c2_53, %c1_54, %c0_55] : memref<18x18x32xf32, #tpu.memory_space<vmem>>, vector<16x16x32xf32>
    %49 = vector.shape_cast %48 : vector<16x16x32xf32> to vector<256x32xf32>
    %c7 = arith.constant 7 : index
    %c0_56 = arith.constant 0 : index
    %c0_57 = arith.constant 0 : index
    %50 = vector.load %arg3[%c7, %c0_56, %c0_57] : memref<9x32x32xf32, #tpu.memory_space<vmem>>, vector<1x32x32xf32>
    %51 = vector.shape_cast %50 : vector<1x32x32xf32> to vector<32x32xf32>
    %cst_58 = arith.constant dense<0.000000e+00> : vector<256x32xf32>
    %52 = tpu.matmul %49, %51, %cst_58 {dimension_numbers = #tpu.dot_dimension_numbers<[1], [0], [0], [1], [0, 0, 1, 1], [], []>} : vector<256x32xf32>, vector<32x32xf32>, vector<256x32xf32> -> vector<256x32xf32>
    %53 = arith.addf %47, %52 : vector<256x32xf32>
    %c2_59 = arith.constant 2 : index
    %c2_60 = arith.constant 2 : index
    %c0_61 = arith.constant 0 : index
    %54 = vector.load %arg8[%c2_59, %c2_60, %c0_61] : memref<18x18x32xf32, #tpu.memory_space<vmem>>, vector<16x16x32xf32>
    %55 = vector.shape_cast %54 : vector<16x16x32xf32> to vector<256x32xf32>
    %c8 = arith.constant 8 : index
    %c0_62 = arith.constant 0 : index
    %c0_63 = arith.constant 0 : index
    %56 = vector.load %arg3[%c8, %c0_62, %c0_63] : memref<9x32x32xf32, #tpu.memory_space<vmem>>, vector<1x32x32xf32>
    %57 = vector.shape_cast %56 : vector<1x32x32xf32> to vector<32x32xf32>
    %cst_64 = arith.constant dense<0.000000e+00> : vector<256x32xf32>
    %58 = tpu.matmul %55, %57, %cst_64 {dimension_numbers = #tpu.dot_dimension_numbers<[1], [0], [0], [1], [0, 0, 1, 1], [], []>} : vector<256x32xf32>, vector<32x32xf32>, vector<256x32xf32> -> vector<256x32xf32>
    %59 = arith.addf %53, %58 : vector<256x32xf32>
    %c0_65 = arith.constant 0 : index
    %c0_66 = arith.constant 0 : index
    %60 = vector.load %arg4[%c0_65, %c0_66] : memref<2x32xf32, #tpu.memory_space<vmem>>, vector<2x32xf32>
    %61 = vector.extract_strided_slice %60 {offsets = [0, 0], sizes = [1, 32], strides = [1, 1]} : vector<2x32xf32> to vector<1x32xf32>
    %62 = vector.broadcast %61 : vector<1x32xf32> to vector<256x32xf32>
    %63 = arith.mulf %59, %62 : vector<256x32xf32>
    %64 = vector.extract_strided_slice %60 {offsets = [1, 0], sizes = [1, 32], strides = [1, 1]} : vector<2x32xf32> to vector<1x32xf32>
    %65 = vector.broadcast %64 : vector<1x32xf32> to vector<256x32xf32>
    %66 = arith.addf %63, %65 : vector<256x32xf32>
    %cst_67 = arith.constant 0.000000e+00 : f32
    %67 = vector.broadcast %cst_67 : f32 to vector<256x32xf32>
    %68 = arith.maximumf %66, %67 : vector<256x32xf32>
    %cst_68 = arith.constant 0.000000e+00 : f32
    %69 = vector.broadcast %cst_68 : f32 to vector<18x18x32xf32>
    %c0_69 = arith.constant 0 : index
    %c0_70 = arith.constant 0 : index
    %c0_71 = arith.constant 0 : index
    %70 = vector.load %arg9[%c0_69, %c0_70, %c0_71] : memref<18x18x32xf32, #tpu.memory_space<vmem>>, vector<18x18x32xf32>
    tpu.vector_store %arg9[%c0_69, %c0_70, %c0_71], %69 {strides = array<i32>} : memref<18x18x32xf32, #tpu.memory_space<vmem>>, vector<18x18x32xf32>,
    %71 = vector.shape_cast %68 : vector<256x32xf32> to vector<16x16x32xf32>
    %c1_72 = arith.constant 1 : index
    %c1_73 = arith.constant 1 : index
    %c0_74 = arith.constant 0 : index
    %72 = vector.load %arg9[%c1_72, %c1_73, %c0_74] : memref<18x18x32xf32, #tpu.memory_space<vmem>>, vector<16x16x32xf32>
    tpu.vector_store %arg9[%c1_72, %c1_73, %c0_74], %71 {strides = array<i32>} : memref<18x18x32xf32, #tpu.memory_space<vmem>>, vector<16x16x32xf32>,
    %cst_75 = arith.constant 0.000000e+00 : f32
    %73 = vector.broadcast %cst_75 : f32 to vector<256x32xf32>
    %c0_76 = arith.constant 0 : index
    %c0_77 = arith.constant 0 : index
    %c0_78 = arith.constant 0 : index
    %74 = vector.load %arg9[%c0_76, %c0_77, %c0_78] : memref<18x18x32xf32, #tpu.memory_space<vmem>>, vector<16x16x32xf32>
    %75 = vector.shape_cast %74 : vector<16x16x32xf32> to vector<256x32xf32>
    %c0_79 = arith.constant 0 : index
    %c0_80 = arith.constant 0 : index
    %c0_81 = arith.constant 0 : index
    %76 = vector.load %arg5[%c0_79, %c0_80, %c0_81] : memref<9x32x32xf32, #tpu.memory_space<vmem>>, vector<1x32x32xf32>
    %77 = vector.shape_cast %76 : vector<1x32x32xf32> to vector<32x32xf32>
    %cst_82 = arith.constant dense<0.000000e+00> : vector<256x32xf32>
    %78 = tpu.matmul %75, %77, %cst_82 {dimension_numbers = #tpu.dot_dimension_numbers<[1], [0], [0], [1], [0, 0, 1, 1], [], []>} : vector<256x32xf32>, vector<32x32xf32>, vector<256x32xf32> -> vector<256x32xf32>
    %79 = arith.addf %73, %78 : vector<256x32xf32>
    %c0_83 = arith.constant 0 : index
    %c1_84 = arith.constant 1 : index
    %c0_85 = arith.constant 0 : index
    %80 = vector.load %arg9[%c0_83, %c1_84, %c0_85] : memref<18x18x32xf32, #tpu.memory_space<vmem>>, vector<16x16x32xf32>
    %81 = vector.shape_cast %80 : vector<16x16x32xf32> to vector<256x32xf32>
    %c1_86 = arith.constant 1 : index
    %c0_87 = arith.constant 0 : index
    %c0_88 = arith.constant 0 : index
    %82 = vector.load %arg5[%c1_86, %c0_87, %c0_88] : memref<9x32x32xf32, #tpu.memory_space<vmem>>, vector<1x32x32xf32>
    %83 = vector.shape_cast %82 : vector<1x32x32xf32> to vector<32x32xf32>
    %cst_89 = arith.constant dense<0.000000e+00> : vector<256x32xf32>
    %84 = tpu.matmul %81, %83, %cst_89 {dimension_numbers = #tpu.dot_dimension_numbers<[1], [0], [0], [1], [0, 0, 1, 1], [], []>} : vector<256x32xf32>, vector<32x32xf32>, vector<256x32xf32> -> vector<256x32xf32>
    %85 = arith.addf %79, %84 : vector<256x32xf32>
    %c0_90 = arith.constant 0 : index
    %c2_91 = arith.constant 2 : index
    %c0_92 = arith.constant 0 : index
    %86 = vector.load %arg9[%c0_90, %c2_91, %c0_92] : memref<18x18x32xf32, #tpu.memory_space<vmem>>, vector<16x16x32xf32>
    %87 = vector.shape_cast %86 : vector<16x16x32xf32> to vector<256x32xf32>
    %c2_93 = arith.constant 2 : index
    %c0_94 = arith.constant 0 : index
    %c0_95 = arith.constant 0 : index
    %88 = vector.load %arg5[%c2_93, %c0_94, %c0_95] : memref<9x32x32xf32, #tpu.memory_space<vmem>>, vector<1x32x32xf32>
    %89 = vector.shape_cast %88 : vector<1x32x32xf32> to vector<32x32xf32>
    %cst_96 = arith.constant dense<0.000000e+00> : vector<256x32xf32>
    %90 = tpu.matmul %87, %89, %cst_96 {dimension_numbers = #tpu.dot_dimension_numbers<[1], [0], [0], [1], [0, 0, 1, 1], [], []>} : vector<256x32xf32>, vector<32x32xf32>, vector<256x32xf32> -> vector<256x32xf32>
    %91 = arith.addf %85, %90 : vector<256x32xf32>
    %c1_97 = arith.constant 1 : index
    %c0_98 = arith.constant 0 : index
    %c0_99 = arith.constant 0 : index
    %92 = vector.load %arg9[%c1_97, %c0_98, %c0_99] : memref<18x18x32xf32, #tpu.memory_space<vmem>>, vector<16x16x32xf32>
    %93 = vector.shape_cast %92 : vector<16x16x32xf32> to vector<256x32xf32>
    %c3_100 = arith.constant 3 : index
    %c0_101 = arith.constant 0 : index
    %c0_102 = arith.constant 0 : index
    %94 = vector.load %arg5[%c3_100, %c0_101, %c0_102] : memref<9x32x32xf32, #tpu.memory_space<vmem>>, vector<1x32x32xf32>
    %95 = vector.shape_cast %94 : vector<1x32x32xf32> to vector<32x32xf32>
    %cst_103 = arith.constant dense<0.000000e+00> : vector<256x32xf32>
    %96 = tpu.matmul %93, %95, %cst_103 {dimension_numbers = #tpu.dot_dimension_numbers<[1], [0], [0], [1], [0, 0, 1, 1], [], []>} : vector<256x32xf32>, vector<32x32xf32>, vector<256x32xf32> -> vector<256x32xf32>
    %97 = arith.addf %91, %96 : vector<256x32xf32>
    %c1_104 = arith.constant 1 : index
    %c1_105 = arith.constant 1 : index
    %c0_106 = arith.constant 0 : index
    %98 = vector.load %arg9[%c1_104, %c1_105, %c0_106] : memref<18x18x32xf32, #tpu.memory_space<vmem>>, vector<16x16x32xf32>
    %99 = vector.shape_cast %98 : vector<16x16x32xf32> to vector<256x32xf32>
    %c4_107 = arith.constant 4 : index
    %c0_108 = arith.constant 0 : index
    %c0_109 = arith.constant 0 : index
    %100 = vector.load %arg5[%c4_107, %c0_108, %c0_109] : memref<9x32x32xf32, #tpu.memory_space<vmem>>, vector<1x32x32xf32>
    %101 = vector.shape_cast %100 : vector<1x32x32xf32> to vector<32x32xf32>
    %cst_110 = arith.constant dense<0.000000e+00> : vector<256x32xf32>
    %102 = tpu.matmul %99, %101, %cst_110 {dimension_numbers = #tpu.dot_dimension_numbers<[1], [0], [0], [1], [0, 0, 1, 1], [], []>} : vector<256x32xf32>, vector<32x32xf32>, vector<256x32xf32> -> vector<256x32xf32>
    %103 = arith.addf %97, %102 : vector<256x32xf32>
    %c1_111 = arith.constant 1 : index
    %c2_112 = arith.constant 2 : index
    %c0_113 = arith.constant 0 : index
    %104 = vector.load %arg9[%c1_111, %c2_112, %c0_113] : memref<18x18x32xf32, #tpu.memory_space<vmem>>, vector<16x16x32xf32>
    %105 = vector.shape_cast %104 : vector<16x16x32xf32> to vector<256x32xf32>
    %c5_114 = arith.constant 5 : index
    %c0_115 = arith.constant 0 : index
    %c0_116 = arith.constant 0 : index
    %106 = vector.load %arg5[%c5_114, %c0_115, %c0_116] : memref<9x32x32xf32, #tpu.memory_space<vmem>>, vector<1x32x32xf32>
    %107 = vector.shape_cast %106 : vector<1x32x32xf32> to vector<32x32xf32>
    %cst_117 = arith.constant dense<0.000000e+00> : vector<256x32xf32>
    %108 = tpu.matmul %105, %107, %cst_117 {dimension_numbers = #tpu.dot_dimension_numbers<[1], [0], [0], [1], [0, 0, 1, 1], [], []>} : vector<256x32xf32>, vector<32x32xf32>, vector<256x32xf32> -> vector<256x32xf32>
    %109 = arith.addf %103, %108 : vector<256x32xf32>
    %c2_118 = arith.constant 2 : index
    %c0_119 = arith.constant 0 : index
    %c0_120 = arith.constant 0 : index
    %110 = vector.load %arg9[%c2_118, %c0_119, %c0_120] : memref<18x18x32xf32, #tpu.memory_space<vmem>>, vector<16x16x32xf32>
    %111 = vector.shape_cast %110 : vector<16x16x32xf32> to vector<256x32xf32>
    %c6_121 = arith.constant 6 : index
    %c0_122 = arith.constant 0 : index
    %c0_123 = arith.constant 0 : index
    %112 = vector.load %arg5[%c6_121, %c0_122, %c0_123] : memref<9x32x32xf32, #tpu.memory_space<vmem>>, vector<1x32x32xf32>
    %113 = vector.shape_cast %112 : vector<1x32x32xf32> to vector<32x32xf32>
    %cst_124 = arith.constant dense<0.000000e+00> : vector<256x32xf32>
    %114 = tpu.matmul %111, %113, %cst_124 {dimension_numbers = #tpu.dot_dimension_numbers<[1], [0], [0], [1], [0, 0, 1, 1], [], []>} : vector<256x32xf32>, vector<32x32xf32>, vector<256x32xf32> -> vector<256x32xf32>
    %115 = arith.addf %109, %114 : vector<256x32xf32>
    %c2_125 = arith.constant 2 : index
    %c1_126 = arith.constant 1 : index
    %c0_127 = arith.constant 0 : index
    %116 = vector.load %arg9[%c2_125, %c1_126, %c0_127] : memref<18x18x32xf32, #tpu.memory_space<vmem>>, vector<16x16x32xf32>
    %117 = vector.shape_cast %116 : vector<16x16x32xf32> to vector<256x32xf32>
    %c7_128 = arith.constant 7 : index
    %c0_129 = arith.constant 0 : index
    %c0_130 = arith.constant 0 : index
    %118 = vector.load %arg5[%c7_128, %c0_129, %c0_130] : memref<9x32x32xf32, #tpu.memory_space<vmem>>, vector<1x32x32xf32>
    %119 = vector.shape_cast %118 : vector<1x32x32xf32> to vector<32x32xf32>
    %cst_131 = arith.constant dense<0.000000e+00> : vector<256x32xf32>
    %120 = tpu.matmul %117, %119, %cst_131 {dimension_numbers = #tpu.dot_dimension_numbers<[1], [0], [0], [1], [0, 0, 1, 1], [], []>} : vector<256x32xf32>, vector<32x32xf32>, vector<256x32xf32> -> vector<256x32xf32>
    %121 = arith.addf %115, %120 : vector<256x32xf32>
    %c2_132 = arith.constant 2 : index
    %c2_133 = arith.constant 2 : index
    %c0_134 = arith.constant 0 : index
    %122 = vector.load %arg9[%c2_132, %c2_133, %c0_134] : memref<18x18x32xf32, #tpu.memory_space<vmem>>, vector<16x16x32xf32>
    %123 = vector.shape_cast %122 : vector<16x16x32xf32> to vector<256x32xf32>
    %c8_135 = arith.constant 8 : index
    %c0_136 = arith.constant 0 : index
    %c0_137 = arith.constant 0 : index
    %124 = vector.load %arg5[%c8_135, %c0_136, %c0_137] : memref<9x32x32xf32, #tpu.memory_space<vmem>>, vector<1x32x32xf32>
    %125 = vector.shape_cast %124 : vector<1x32x32xf32> to vector<32x32xf32>
    %cst_138 = arith.constant dense<0.000000e+00> : vector<256x32xf32>
    %126 = tpu.matmul %123, %125, %cst_138 {dimension_numbers = #tpu.dot_dimension_numbers<[1], [0], [0], [1], [0, 0, 1, 1], [], []>} : vector<256x32xf32>, vector<32x32xf32>, vector<256x32xf32> -> vector<256x32xf32>
    %127 = arith.addf %121, %126 : vector<256x32xf32>
    %c0_139 = arith.constant 0 : index
    %c0_140 = arith.constant 0 : index
    %128 = vector.load %arg6[%c0_139, %c0_140] : memref<2x32xf32, #tpu.memory_space<vmem>>, vector<2x32xf32>
    %129 = vector.extract_strided_slice %128 {offsets = [0, 0], sizes = [1, 32], strides = [1, 1]} : vector<2x32xf32> to vector<1x32xf32>
    %130 = vector.broadcast %129 : vector<1x32xf32> to vector<256x32xf32>
    %131 = arith.mulf %127, %130 : vector<256x32xf32>
    %132 = vector.extract_strided_slice %128 {offsets = [1, 0], sizes = [1, 32], strides = [1, 1]} : vector<2x32xf32> to vector<1x32xf32>
    %133 = vector.broadcast %132 : vector<1x32xf32> to vector<256x32xf32>
    %134 = arith.addf %131, %133 : vector<256x32xf32>
    %c0_141 = arith.constant 0 : index
    %c0_142 = arith.constant 0 : index
    %c0_143 = arith.constant 0 : index
    %c0_144 = arith.constant 0 : index
    %135 = vector.load %arg2[%c0_141, %c0_142, %c0_143, %c0_144] : memref<1x16x16x32xf32, #tpu.memory_space<vmem>>, vector<1x16x16x32xf32>
    %136 = vector.shape_cast %135 : vector<1x16x16x32xf32> to vector<16x16x32xf32>
    %137 = vector.shape_cast %136 : vector<16x16x32xf32> to vector<256x32xf32>
    %138 = arith.addf %134, %137 : vector<256x32xf32>
    %cst_145 = arith.constant 0.000000e+00 : f32
    %139 = vector.broadcast %cst_145 : f32 to vector<256x32xf32>
    %140 = arith.maximumf %138, %139 : vector<256x32xf32>
    %141 = vector.shape_cast %140 : vector<256x32xf32> to vector<16x16x32xf32>
    %c0_146 = arith.constant 0 : index
    %c0_147 = arith.constant 0 : index
    %c0_148 = arith.constant 0 : index
    %c0_149 = arith.constant 0 : index
    %142 = vector.load %arg7[%c0_146, %c0_147, %c0_148, %c0_149] : memref<1x16x16x32xf32, #tpu.memory_space<vmem>>, vector<1x16x16x32xf32>
    %143 = vector.shape_cast %142 : vector<1x16x16x32xf32> to vector<16x16x32xf32>
    %144 = vector.shape_cast %141 : vector<16x16x32xf32> to vector<1x16x16x32xf32>
    tpu.vector_store %arg7[%c0_146, %c0_147, %c0_148, %c0_149], %144 {strides = array<i32>} : memref<1x16x16x32xf32, #tpu.memory_space<vmem>>, vector<1x16x16x32xf32>,
    return
  }
  func.func @transform_0(%arg0: i32) -> (i32, i32, i32, i32) {
    %c0_i32 = arith.constant 0 : i32
    %c0_i32_0 = arith.constant 0 : i32
    %c0_i32_1 = arith.constant 0 : i32
    %c0_i32_2 = arith.constant 0 : i32
    return %arg0, %c0_i32, %c0_i32_0, %c0_i32_1 : i32, i32, i32, i32
  }
  func.func @transform_1(%arg0: i32) -> (i32, i32, i32, i32) {
    %c0_i32 = arith.constant 0 : i32
    %c0_i32_0 = arith.constant 0 : i32
    %c0_i32_1 = arith.constant 0 : i32
    %c0_i32_2 = arith.constant 0 : i32
    return %arg0, %c0_i32, %c0_i32_0, %c0_i32_1 : i32, i32, i32, i32
  }
  func.func @transform_2(%arg0: i32) -> (i32, i32, i32) {
    %c0_i32 = arith.constant 0 : i32
    %c0_i32_0 = arith.constant 0 : i32
    %c0_i32_1 = arith.constant 0 : i32
    %c0_i32_2 = arith.constant 0 : i32
    return %c0_i32, %c0_i32_0, %c0_i32_1 : i32, i32, i32
  }
  func.func @transform_3(%arg0: i32) -> (i32, i32) {
    %c0_i32 = arith.constant 0 : i32
    %c0_i32_0 = arith.constant 0 : i32
    %c0_i32_1 = arith.constant 0 : i32
    return %c0_i32, %c0_i32_0 : i32, i32
  }
  func.func @transform_4(%arg0: i32) -> (i32, i32, i32) {
    %c0_i32 = arith.constant 0 : i32
    %c0_i32_0 = arith.constant 0 : i32
    %c0_i32_1 = arith.constant 0 : i32
    %c0_i32_2 = arith.constant 0 : i32
    return %c0_i32, %c0_i32_0, %c0_i32_1 : i32, i32, i32
  }
  func.func @transform_5(%arg0: i32) -> (i32, i32) {
    %c0_i32 = arith.constant 0 : i32
    %c0_i32_0 = arith.constant 0 : i32
    %c0_i32_1 = arith.constant 0 : i32
    return %c0_i32, %c0_i32_0 : i32, i32
  }
  func.func @transform_6(%arg0: i32) -> (i32, i32, i32, i32) {
    %c0_i32 = arith.constant 0 : i32
    %c0_i32_0 = arith.constant 0 : i32
    %c0_i32_1 = arith.constant 0 : i32
    %c0_i32_2 = arith.constant 0 : i32
    return %arg0, %c0_i32, %c0_i32_0, %c0_i32_1 : i32, i32, i32, i32
  }
}

</mosaic_0001>

<bundles_post_ra>
// kernel: basic_block_forward.1
= control target key start
LH: loop header
LB: loop body
LE: loop exit
PB: predicated region body
PF: predicated region fallthrough
CT: control target
= control target key end

     0   :  { %s13907_s0 = inlined_call_operand.hbm [shape: f32[2,16,16,32], index: 0, kind: input, shape index: {}, may-alias: {0,1}]   ;;  %s13908_s1 = inlined_call_operand.hbm [shape: f32[2,16,16,32], index: 1, kind: input, shape index: {}, may-alias: {0,1}]   ;;  %s13909_s2 = inlined_call_operand.hbm [shape: f32[9,32,32], index: 2, kind: input, shape index: {}]   ;;  %s13910_s3 = inlined_call_operand.vmem [shape: f32[2,32], index: 3, kind: input, shape index: {}]   ;;  %s13911_s4 = inlined_call_operand.hbm [shape: f32[9,32,32], index: 4, kind: input, shape index: {}]   ;;  %s13912_s5 = inlined_call_operand.vmem [shape: f32[2,32], index: 5, kind: input, shape index: {}]   ;;  %s13913_s6 = inlined_call_operand.hbm [shape: f32[2,16,16,32], index: 6, kind: output, shape index: {}]  }
   0x1   :  { %13960 = sst [smem:[#allocation116_spill]] %s13907_s0 }
   0x2   :  { %13961 = sst [smem:[#allocation117_spill]] %s13909_s2 }
   0x3   :  { %13962 = sst [smem:[#allocation118_spill]] %s13911_s4 }
   0x4   :  { %11 = vsyncpa [#allocation5], 0 }
   0x5   :  { %13 = vsyncpa [#allocation5 + $0x1], 0 }
   0x6   :  { %14 = vsyncpa [#allocation8], 0 }
   0x7   :  { %16 = vsyncpa [#allocation8 + $0x1], 0 }
   0x8   :  { %17 = vsyncpa [#allocation11], 0 }
   0x9   :  { %18 = vsyncpa [#allocation6], 0 }
   0xa   :  { %20 = vsyncpa [#allocation6 + $0x1], 0  ;;  %s10440_s21 = smov 0   ;;  %s10442_s22 = smov 0  }
   0xb   :  { %s10444_s23 = smov 0   ;;  %s10446_s24 = smov 0  }
   0xc LB: > { %s10461_s25 = sadd.s32 4294967295, %s10393_s24   ;;  %s7874_s26 = sadd.s32 4294967294, %s10393_s24   ;;  %s10393_s24 = sphi %s10446_s24, %s14373_s24   ;;  %s10389_s23 = sphi %s10444_s23, %s14372_s23   ;;  %s10385_s22 = sphi %s10442_s22, %s14371_s22   ;;  %s10381_s21 = sphi %s10440_s21, %s14370_s21  }
   0xd   : > { %p46_p0 = scmp.ne.s32.totalorder %s10385_s22, %s10381_s21  ;;  %p13918_p1 = scmp.eq.s32.totalorder %s10461_s25, 0 }
   0xe   : > { %p180_p2 = scmp.eq.s32.totalorder %s10461_s25, 1  ;;  %p186_p3 = scmp.eq.s32.totalorder %s7874_s26, 1 }
   0xf   : > { %p10470_p4 = por %p13918_p1, %p46_p0  ;;  %p7875_p5 = scmp.ge.s32.totalorder %s10393_s24, 1 }
  0x10   : > { %p10475_p6 = por %p186_p3, %p46_p0  ;;  %p193_p7 = scmp.lt.s32.totalorder %s10393_s24, 3 }
  0x11   : > { %s13963_s27 = scalar_select %p10470_p4, 1, 0 }
  0x12   : > { %s13964_s28 = scalar_select %p10475_p6, 1, 0 }
  0x13   : > { %p10480_p8 = pnand %p7875_p5, %p193_p7  ;;  %s10395_s30 = smov [#allocation9]  }
  0x14   : > { %s205_s7 = sshll.u32 %s10395_s30, 4  ;;  %s10396_s9 = smov [#allocation10]   ;;  %s206_s7 = int_to_ptr.vmem [resolvable:$true] %s205_s7 }
  0x15   : > { %p10145_p9 = pneg %p10480_p8  ;;  %s221_s10 = sshll.u32 %s10396_s9, 4  ;;  %s222_s10 = int_to_ptr.vmem [resolvable:$true] %s221_s10 }
  0x16   : > { %s10220_s11 = scalar_lea.vmem %s206_s7, 4608  ;;  %p10228_p5 = scmp.lt.s32.totalorder %s206_s7, %s206_s7 }
  0x17   : > { %p10489_p11 = pnand %p10145_p9, %p13918_p1  ;;  %p10221_p13 = scmp.ne.s32.totalorder %s206_s7, %s10220_s11 }
  0x18   : > { %p10229_p7 = scmp.lt.s32.totalorder %s10220_s11, %s10220_s11 }
  0x19   : > { %p10211_p12 = pneg %p10489_p11 }
  0x1a   : > { %p10230_p10 = por %p10229_p7, %p10228_p5 }
  0x1b   : > { %p10223_p0 = pnand %p10221_p13, %p10211_p12 }
  0x1d   : > { %p10224_p3 = pneg %p10223_p0 }
  0x1f   : > { %p10231_p9 = pnand %p10230_p10, %p10224_p3 }
  0x21   : > { %10234 = shalt.err (!%p10231_p9)
}
  0x22   : > { %s13914_s12 = smov 128   ;;  %s13916_s13 = smov 8  }
  0x23   : > { %s13967_s2 = sld [smem:[#allocation117_spill]]  ;;  %s10246_s16 = scalar_lea.vmem %s222_s10, 4608 }
  0x24   : > { %p10247_p13 = scmp.ne.s32.totalorder %s222_s10, %s10246_s16  ;;  %p10254_p10 = scmp.lt.s32.totalorder %s222_s10, %s222_s10 }
  0x25   : > { %p10255_p3 = scmp.lt.s32.totalorder %s10246_s16, %s10246_s16 }
  0x26   : > { %p10249_p0 = pnand %p10247_p13, %p10211_p12 }
  0x27   : > { %p10256_p7 = por %p10255_p3, %p10254_p10 }
  0x28   : > { %p10250_p5 = pneg %p10249_p0 }
  0x29   : > { %10148 = dma.hbm_to_vmem [thread:$0]  (!%p10489_p11), %s13967_s2, 4608, %s206_s7, [#allocation8], %s13914_s12, %s13914_s12, %s13916_s13  }
  0x2a   : > { %p10257_p9 = pnand %p10256_p7, %p10250_p5 }
  0x2c   : > { %10260 = shalt.err (!%p10257_p9)
}
  0x2d   : > { %s13968_s4 = sld [smem:[#allocation118_spill]]  ;;  %s10518_s19 = sadd.s32 1, %s10393_s24  }
  0x2e   : > { %s33_s20 = sadd.s32 1, %s10389_s23  ;;  %s30_s26 = ssub.s32 %s10393_s24, %s10518_s19 }
  0x2f   : > { %p40_p12 = scmp.ne.s32.totalorder %s10389_s23, %s10385_s22  ;;  %p31_p13 = scmp.eq.s32.totalorder %s30_s26, 0 }
  0x30   : > { %p41_p0 = scmp.eq.s32.totalorder %s10393_s24, 0  ;;  %p10165_p10 = scmp.lt.s32.totalorder %s10393_s24, 2 }
  0x31   : > { %p10528_p5 = por %p180_p2, %p40_p12  ;;  %s238_s8 = sand.u32 1, %s10389_s23  }
  0x32   : > { %s10534_s7 = scalar_select %p31_p13, %s10389_s23, %s33_s20  }
  0x33   : > { %10151 = dma.hbm_to_vmem [thread:$0]  (!%p10489_p11), %s13968_s4, 4608, %s222_s10, [#allocation11], %s13914_s12, %s13914_s12, %s13916_s13  }
  0x34   : > { %s13969_s30 = scalar_select %p10528_p5, 1, 0 }
  0x35   : > { %p42_p3 = por %p41_p0, %p40_p12  ;;  %s7879_s9 = sshll.u32 %s238_s8, 8 }
  0x36   : > { %s8472_s10 = sshll.u32 %s10393_s24, 12  ;;  %s13970_s0 = sld [smem:[#allocation116_spill]] }
  0x37   : > { %s242_s16 = scalar_lea.vmem [#allocation4], %s7879_s9  ;;  %p10545_p2 = pnand %p10165_p10, %p42_p3 }
  0x38   : > { %s249_s17 = sshll.u32 %s242_s16, 4  ;;  %s10552_s12 = scalar_lea.hbm %s13908_s1, %s8472_s10  ;;  %s10543_s17 = int_to_ptr.vmem [resolvable:$true] %s249_s17 }
  0x39   : > { %s263_s11 = scalar_lea.vmem [#allocation7], %s7879_s9  ;;  %s10556_s13 = scalar_lea.sflag [#allocation5], %s238_s8 }
  0x3a   : > { %s10554_s14 = sshll.u32 %s263_s11, 4  ;;  %p10263_p7 = pneg %p10545_p2  ;;  %s10587_s14 = int_to_ptr.vmem [resolvable:$true] %s10554_s14 }
  0x3c   : > { %s10541_s15 = scalar_lea.hbm %s13970_s0, %s8472_s10  ;;  %s10266_s20 = scalar_lea.hbm %s13970_s0, 8192 }
  0x3d   : > { %s10261_s2 = scalar_lea.hbm %s10541_s15, 4096  ;;  %p10267_p13 = scmp.lt.s32.totalorder %s10541_s15, %s13970_s0 }
  0x3e   : > { %p10262_p11 = scmp.ne.s32.totalorder %s10541_s15, %s10261_s2  ;;  %p10268_p0 = scmp.lt.s32.totalorder %s10266_s20, %s10261_s2 }
  0x40   : > { %p10264_p9 = pnand %p10263_p7, %p10262_p11  ;;  %p10269_p10 = por %p10268_p0, %p10267_p13 }
  0x42   : > { %p10265_p12 = pneg %p10264_p9 }
  0x44   : > { %p10270_p3 = pnand %p10269_p10, %p10265_p12 }
  0x46   : > { %10273 = shalt.err (!%p10270_p3)
}
  0x47   : > { %s10274_s8 = scalar_lea.vmem %s10543_s17, 4096  ;;  %s10399_s4 = smov [#allocation4]  }
  0x48   : > { %p10275_p1 = scmp.ne.s32.totalorder %s10543_s17, %s10274_s8  ;;  %s10279_s9 = sshll.u32 %s10399_s4, 4  ;;  %s10280_s9 = int_to_ptr.vmem [resolvable:$false] %s10279_s9 }
  0x49   : > { %s10281_s11 = scalar_lea.vmem %s10280_s9, 8192  ;;  %p10282_p6 = scmp.lt.s32.totalorder %s10543_s17, %s10280_s9 }
  0x4a   : > { %p10277_p11 = pnand %p10275_p1, %p10263_p7  ;;  %p10283_p5 = scmp.lt.s32.totalorder %s10281_s11, %s10274_s8 }
  0x4c   : > { %p10278_p9 = pneg %p10277_p11  ;;  %p10284_p4 = por %p10283_p5, %p10282_p6 }
  0x4e   : > { %p10285_p13 = pnand %p10284_p4, %p10278_p9 }
  0x50   : > { %10288 = shalt.err (!%p10285_p13)
}
  0x51   : > { %s13972_s2 = smov 8   ;;  %s13973_s16 = smov 128  }
  0x52   : > { %10155 = dma.hbm_to_vmem [thread:$0]  (!%p10545_p2), %s10541_s15, 4096, %s10543_s17, %s10556_s13, %s13973_s16, %s13973_s16, %s13972_s2  }
  0x53   : > { %s259_s20 = sand.u32 1, %s10393_s24   ;;  %s10289_s10 = scalar_lea.hbm %s10552_s12, 4096 }
  0x54   : > { %s260_s26 = scalar_lea.sflag [#allocation8], %s259_s20  ;;  %p10290_p1 = scmp.ne.s32.totalorder %s10552_s12, %s10289_s10 }
  0x55   : > { %s10294_s9 = scalar_lea.hbm %s13908_s1, 8192  ;;  %p10295_p5 = scmp.lt.s32.totalorder %s10552_s12, %s13908_s1 }
  0x56   : > { %p10292_p4 = pnand %p10290_p1, %p10263_p7  ;;  %p10296_p12 = scmp.lt.s32.totalorder %s10294_s9, %s10289_s10 }
  0x58   : > { %p10293_p6 = pneg %p10292_p4  ;;  %p10297_p0 = por %p10296_p12, %p10295_p5 }
  0x5a   : > { %p10298_p10 = pnand %p10297_p0, %p10293_p6 }
  0x5c   : > { %10301 = shalt.err (!%p10298_p10)
}
  0x5d   : > { %s10302_s13 = scalar_lea.vmem %s10587_s14, 4096  ;;  %s10400_s15 = smov [#allocation7]  }
  0x5e   : > { %p10303_p3 = scmp.ne.s32.totalorder %s10587_s14, %s10302_s13  ;;  %s10307_s17 = sshll.u32 %s10400_s15, 4  ;;  %s10308_s17 = int_to_ptr.vmem [resolvable:$false] %s10307_s17 }
  0x5f   : > { %s10309_s20 = scalar_lea.vmem %s10308_s17, 8192  ;;  %p10310_p13 = scmp.lt.s32.totalorder %s10587_s14, %s10308_s17 }
  0x60   : > { %p10305_p11 = pnand %p10303_p3, %p10263_p7  ;;  %p10311_p1 = scmp.lt.s32.totalorder %s10309_s20, %s10302_s13 }
  0x62   : > { %p10306_p9 = pneg %p10305_p11  ;;  %p10312_p4 = por %p10311_p1, %p10310_p13 }
  0x64   : > { %p10313_p5 = pnand %p10312_p4, %p10306_p9 }
  0x66   : > { %10316 = shalt.err (!%p10313_p5)
}
  0x67   : > { %10158 = dma.hbm_to_vmem [thread:$0]  (!%p10545_p2), %s10552_s12, 4096, %s10587_s14, %s260_s26, %s13973_s16, %s13973_s16, %s13972_s2  }
  0x68   : > { %282 = sbr.rel (%p10480_p8) target bundleno = 1186 (0x4a2), region = 44 }
  0x6d   : > { %s10618_s0 = sand.u32 1, %s10385_s22   ;;  %p13974_p7 = scmp.ne.s32.totalorder %s13963_s27, 0 }
  0x6e   : > { %s10621_s10 = sshll.u32 %s10618_s0, 8  ;;  %s285_s8 = scalar_lea.sflag [#allocation5], %s10618_s0 }
  0x6f   : > { %s10625_s18 = scalar_lea.vmem [#allocation4], %s10621_s10 }
  0x70   : > { %10360 = dma.done.wait (%p13974_p7), %s285_s8, 4096  }
  0x71   : > { %10362 = vsyncadd (%p13974_p7), %s285_s8, 4294963200  ;;  %s293_s29 = sand.u32 1, %s10461_s25   ;;  %s10633_s14 = scalar_lea.vmem [#allocation7], %s10621_s10 }
  0x72   : > { %s294_s12 = scalar_lea.sflag [#allocation8], %s293_s29 }
  0x73   : > { %10364 = dma.done.wait (%p13974_p7), %s294_s12, 4096  }
  0x74   : > { %10366 = vsyncadd (%p13974_p7), %s294_s12, 4294963200  ;;  %p13975_p8 = scmp.eq.s32.totalorder %s10461_s25, 0 }
  0x76   : > { %10368 = dma.done.wait (%p13975_p8), [#allocation8], 4608   ;;  %p13976_p2 = pmov %p13975_p8 }
  0x78   : > { %10370 = vsyncadd (%p13976_p2), [#allocation8], 4294962688  ;;  %p13977_p6 = pmov %p13976_p2 }
  0x79   : > { %p13978_p12 = pmov %p13976_p2 }
  0x7a   : > { %10372 = dma.done.wait (%p13977_p6), [#allocation11], 4608  }
  0x7b   : > { %10374 = vsyncadd (%p13978_p12), [#allocation11], 4294962688  ;;  %vm339_vm0 = vcmask 261120   ;;  %vm342_vm1 = vcmask 254976   ;;  %v10401_v0 = vmov 0.0   ;;  %v532_v1 = vld [vmem:[#allocation9 + $0x38] sm:$0xff] }
  0x7c   : > { %340 = vst.msk [vmem:[#allocation2] sm:$0xff] %vm339_vm0, %v10401_v0  ;;  %341 = vst.msk [vmem:[#allocation2 + $0x8] sm:$0xff] %vm339_vm0, %v10401_v0  ;;  %v495_v2 = vld [vmem:[#allocation9 + $0x18] sm:$0xff]  ;;  %v531_v3 = vld [vmem:[#allocation9 + $0x30] sm:$0xff]  ;;  %9123 = vmatprep.subr.mxu0 %v532_v1  ;;  %s13605_s4 = scalar_lea.vmem [#allocation12], %s10621_s10  ;;  %s8474_s9 = sshll.u32 %s10461_s25, 12 }
  0x7d   : > { %344 = vst.msk [vmem:[#allocation2 + $0x18] sm:$0xff] %vm339_vm0, %v10401_v0  ;;  %345 = vst.msk [vmem:[#allocation2 + $0x20] sm:$0xff] %vm339_vm0, %v10401_v0  ;;  %9179 = vmatprep.subr.mxu1 %v495_v2  ;;  %v494_v4 = vld [vmem:[#allocation9 + $0x10] sm:$0xff]  ;;  %9124 = vmatpush3.msra.mxu0 %v532_v1  ;;  %v530_v5 = vld [vmem:[#allocation9 + $0x28] sm:$0xff]  ;;  %s7759_s11 = sshll.u32 %s13605_s4, 4  ;;  %s13858_s17 = scalar_lea.hbm %s13913_s6, %s8474_s9  ;;  %s13860_s11 = int_to_ptr.vmem [resolvable:$true] %s7759_s11 }
  0x7e   : > { %347 = vst.msk [vmem:[#allocation2 + $0x30] sm:$0xff] %vm339_vm0, %v10401_v0  ;;  %348 = vst.msk [vmem:[#allocation2 + $0x38] sm:$0xff] %vm339_vm0, %v10401_v0  ;;  %9180 = vmatpush3.msra.mxu1 %v495_v2  ;;  %v493_v6 = vld [vmem:[#allocation9 + $0x8] sm:$0xff]  ;;  %9125 = vmatprep.subr.mxu0 %v531_v3  ;;  %v529_v7 = vld [vmem:[#allocation9 + $0x20] sm:$0xff]  ;;  %s7746_s25 = scalar_lea.sflag [#allocation6], %s10618_s0  ;;  %s10317_s20 = scalar_lea.vmem %s13860_s11, 4096 }
  0x7f   : > { %350 = vst.msk [vmem:[#allocation2 + $0x48] sm:$0xff] %vm339_vm0, %v10401_v0  ;;  %351 = vst.msk [vmem:[#allocation2 + $0x50] sm:$0xff] %vm339_vm0, %v10401_v0  ;;  %9181 = vmatprep.subr.mxu1 %v494_v4  ;;  %v492_v8 = vld [vmem:[#allocation9] sm:$0xff]  ;;  %9126 = vmatpush3.msra.mxu0 %v531_v3  ;;  %v396_v12 = vld [vmem:[%s10625_s18 + $0x8] sm:$0xff]  ;;  %p10318_p0 = scmp.ne.s32.totalorder %s13860_s11, %s10317_s20  ;;  %p14367_p10 = scmp.ne.s32.totalorder %s13969_s30, 0 }
  0x80   : > { %353 = vst.msk [vmem:[#allocation2 + $0x60] sm:$0xff] %vm339_vm0, %v10401_v0  ;;  %354 = vst.msk [vmem:[#allocation2 + $0x68] sm:$0xff] %vm339_vm0, %v10401_v0  ;;  %9182 = vmatpush3.msra.mxu1 %v494_v4  ;;  %v395_v11 = vld [vmem:[%s10625_s18] sm:$0xff]  ;;  %9127 = vmatprep.subr.mxu0 %v530_v5  ;;  %v397_v15 = vld [vmem:[%s10625_s18 + $0x10] sm:$0xff]  ;;  %s10402_s10 = smov [#allocation12]  }
  0x81   : > { %356 = vst.msk [vmem:[#allocation2 + $0x78] sm:$0xff] %vm339_vm0, %v10401_v0  ;;  %357 = vst.msk [vmem:[#allocation2 + $0x80] sm:$0xff] %vm339_vm0, %v10401_v0  ;;  %9183 = vmatprep.subr.mxu1 %v493_v6  ;;  %v398_v16 = vld [vmem:[%s10625_s18 + $0x18] sm:$0xff]  ;;  %v399_v17 = vld [vmem:[%s10625_s18 + $0x20] sm:$0xff]  ;;  %9128 = vmatpush3.msra.mxu0 %v530_v5  ;;  %p10319_p3 = pnand %p10318_p0, %p14367_p10  ;;  %s10321_s8 = sshll.u32 %s10402_s10, 4  ;;  %s10322_s8 = int_to_ptr.vmem [resolvable:$false] %s10321_s8 }
  0x82   : > { %359 = vst.msk [vmem:[#allocation2 + $0x90] sm:$0xff] %vm339_vm0, %v10401_v0  ;;  %360 = vst.msk [vmem:[#allocation2 + $0x98] sm:$0xff] %vm339_vm0, %v10401_v0  ;;  %9184 = vmatpush3.msra.mxu1 %v493_v6  ;;  %v400_v18 = vld [vmem:[%s10625_s18 + $0x28] sm:$0xff]  ;;  %v401_v19 = vld [vmem:[%s10625_s18 + $0x30] sm:$0xff]  ;;  %9129 = vmatprep.subr.mxu0 %v529_v7  ;;  %p10324_p9 = scmp.lt.s32.totalorder %s13860_s11, %s10322_s8 }
  0x83   : > { %362 = vst.msk [vmem:[#allocation2 + $0xa8] sm:$0xff] %vm339_vm0, %v10401_v0  ;;  %363 = vst.msk [vmem:[#allocation2 + $0xb0] sm:$0xff] %vm339_vm0, %v10401_v0  ;;  %v496_v9 = vld [vmem:[#allocation2 + $0x1] sm:$0xff]  ;;  %v402_v20 = vld [vmem:[%s10625_s18 + $0x38] sm:$0xff]  ;;  %9185 = vmatprep.subr.mxu1 %v492_v8  ;;  %9130 = vmatpush3.msra.mxu0 %v529_v7  ;;  %p10320_p11 = pneg %p10319_p3 }
  0x84   : > { %365 = vst.msk [vmem:[#allocation2 + $0xc0] sm:$0xff] %vm339_vm0, %v10401_v0  ;;  %366 = vst.msk [vmem:[#allocation2 + $0xc8] sm:$0xff] %vm339_vm0, %v10401_v0  ;;  %v460_v10 = vld [vmem:[#allocation2] sm:$0xff]  ;;  %v461_v14 = vld [vmem:[#allocation2 + $0x8] sm:$0xff]  ;;  %9131 = vmatprep.mubr.msk.f32.mxu0 %vm339_vm0, %v496_v9  ;;  %9186 = vmatpush3.msra.mxu1 %v492_v8 }
  0x85   : > { %368 = vst.msk [vmem:[#allocation2 + $0xd8] sm:$0xff] %vm339_vm0, %v10401_v0  ;;  %369 = vst.msk [vmem:[#allocation2 + $0xe0] sm:$0xff] %vm339_vm0, %v10401_v0  ;;  %v1211_v21 = vld [vmem:[#allocation9 + $0x58] sm:$0xff]  ;;  %v403_v22 = vld [vmem:[%s10625_s18 + $0x40] sm:$0xff]  ;;  %9187 = vmatprep.mubr.msk.f32.mxu1 %vm339_vm0, %v460_v10 }
  0x86   : > { %371 = vst.msk [vmem:[#allocation2 + $0xf0] sm:$0xff] %vm339_vm0, %v10401_v0  ;;  %372 = vst.msk [vmem:[#allocation2 + $0xf8] sm:$0xff] %vm339_vm0, %v10401_v0  ;;  %v404_v23 = vld [vmem:[%s10625_s18 + $0x48] sm:$0xff]  ;;  %v405_v24 = vld [vmem:[%s10625_s18 + $0x50] sm:$0xff]  ;;  %9188 = vmatmul.mubr.msk.f32.vlgmr.msra.gmra.mxu1 %vm339_vm0, %v461_v14  ;;  %9235 = vmatprep.subr.mxu0 %v1211_v21 }
  0x87   : > { %374 = vst.msk [vmem:[#allocation2 + $0x108] sm:$0xff] %vm339_vm0, %v10401_v0  ;;  %375 = vst.msk [vmem:[#allocation2 + $0x110] sm:$0xff] %vm339_vm0, %v10401_v0  ;;  %v406_v25 = vld [vmem:[%s10625_s18 + $0x58] sm:$0xff]  ;;  %v407_v26 = vld [vmem:[%s10625_s18 + $0x60] sm:$0xff] }
  0x88   : > { %377 = vst.msk [vmem:[#allocation2 + $0x120] sm:$0xff] %vm339_vm0, %v10401_v0  ;;  %378 = vst.msk [vmem:[#allocation2 + $0x128] sm:$0xff] %vm339_vm0, %v10401_v0  ;;  %v408_v27 = vld [vmem:[%s10625_s18 + $0x68] sm:$0xff]  ;;  %v409_v28 = vld [vmem:[%s10625_s18 + $0x70] sm:$0xff] }
  0x89   : > { %380 = vst.msk [vmem:[#allocation2 + $0x138] sm:$0xff] %vm339_vm0, %v10401_v0  ;;  %381 = vst.msk [vmem:[#allocation2 + $0x140] sm:$0xff] %vm339_vm0, %v10401_v0  ;;  %v410_v29 = vld [vmem:[%s10625_s18 + $0x78] sm:$0xff]  ;;  %v411_v30 = vld [vmem:[%s10625_s18 + $0x80] sm:$0xff] }
  0x8a   : > { %383 = vst.msk [vmem:[#allocation2 + $0x150] sm:$0xff] %vm339_vm0, %v10401_v0  ;;  %384 = vst.msk [vmem:[#allocation2 + $0x158] sm:$0xff] %vm339_vm0, %v10401_v0  ;;  %v412_v31 = vld [vmem:[%s10625_s18 + $0x88] sm:$0xff]  ;;  %v1210_v32 = vld [vmem:[#allocation9 + $0x50] sm:$0xff] }
  0x8b   : > { %386 = vst.msk [vmem:[#allocation2 + $0x168] sm:$0xff] %vm339_vm0, %v10401_v0  ;;  %387 = vst.msk [vmem:[#allocation2 + $0x170] sm:$0xff] %vm339_vm0, %v10401_v0  ;;  %v413_v33 = vld [vmem:[%s10625_s18 + $0x90] sm:$0xff]  ;;  %v414_v34 = vld [vmem:[%s10625_s18 + $0x98] sm:$0xff] }
  0x8c   : > { %389 = vst.msk [vmem:[#allocation2 + $0x180] sm:$0xff] %vm339_vm0, %v10401_v0  ;;  %390 = vst.msk [vmem:[#allocation2 + $0x188] sm:$0xff] %vm339_vm0, %v10401_v0  ;;  %v415_v35 = vld [vmem:[%s10625_s18 + $0xa0] sm:$0xff]  ;;  %v1209_v46 = vld [vmem:[#allocation9 + $0x48] sm:$0xff] }
  0x8d   : > { %392 = vst.msk [vmem:[#allocation2 + $0x198] sm:$0xff] %vm339_vm0, %v10401_v0  ;;  %393 = vst.msk [vmem:[#allocation2 + $0x1a0] sm:$0xff] %vm339_vm0, %v10401_v0  ;;  %v416_v59 = vld [vmem:[%s10625_s18 + $0xa8] sm:$0xff]  ;;  %v417_v60 = vld [vmem:[%s10625_s18 + $0xb0] sm:$0xff] }
  0x8e   : > { %4011 = vst.msk [vmem:[#allocation3] sm:$0xff] %vm339_vm0, %v10401_v0  ;;  %4012 = vst.msk [vmem:[#allocation3 + $0x8] sm:$0xff] %vm339_vm0, %v10401_v0  ;;  %v418_v61 = vld [vmem:[%s10625_s18 + $0xb8] sm:$0xff]  ;;  %v1208_v62 = vld [vmem:[#allocation9 + $0x40] sm:$0xff] }
  0x8f   : > { %4014 = vst.msk [vmem:[#allocation3 + $0x18] sm:$0xff] %vm339_vm0, %v10401_v0  ;;  %4015 = vst.msk [vmem:[#allocation3 + $0x20] sm:$0xff] %vm339_vm0, %v10401_v0  ;;  %v419_v63 = vld [vmem:[%s10625_s18 + $0xc0] sm:$0xff]  ;;  %v421_v1 = vld [vmem:[%s10625_s18 + $0xd0] sm:$0xff] }
  0x90   : > { %4017 = vst.msk [vmem:[#allocation3 + $0x30] sm:$0xff] %vm339_vm0, %v10401_v0  ;;  %4018 = vst.msk [vmem:[#allocation3 + $0x38] sm:$0xff] %vm339_vm0, %v10401_v0  ;;  %v422_v2 = vld [vmem:[%s10625_s18 + $0xd8] sm:$0xff]  ;;  %v423_v4 = vld [vmem:[%s10625_s18 + $0xe0] sm:$0xff] }
  0x91   : > { %4020 = vst.msk [vmem:[#allocation3 + $0x48] sm:$0xff] %vm339_vm0, %v10401_v0  ;;  %4021 = vst.msk [vmem:[#allocation3 + $0x50] sm:$0xff] %vm339_vm0, %v10401_v0  ;;  %v1601_v3 = vld [vmem:[#allocation9 + $0x78] sm:$0xff]  ;;  %v424_v5 = vld [vmem:[%s10625_s18 + $0xe8] sm:$0xff] }
  0x92   : > { %4023 = vst.msk [vmem:[#allocation3 + $0x60] sm:$0xff] %vm339_vm0, %v10401_v0  ;;  %4024 = vst.msk [vmem:[#allocation3 + $0x68] sm:$0xff] %vm339_vm0, %v10401_v0  ;;  %9291 = vmatprep.subr.mxu1 %v1601_v3  ;;  %v1600_v6 = vld [vmem:[#allocation9 + $0x70] sm:$0xff]  ;;  %v11019_v9 = vld [vmem:[#allocation9 + $0x98] sm:$0xff] }
  0x93   : > { %4026 = vst.msk [vmem:[#allocation3 + $0x78] sm:$0xff] %vm339_vm0, %v10401_v0  ;;  %4027 = vst.msk [vmem:[#allocation3 + $0x80] sm:$0xff] %vm339_vm0, %v10401_v0  ;;  %9292 = vmatpush3.msra.mxu1 %v1601_v3 }
  0x94   : > { %4029 = vst.msk [vmem:[#allocation3 + $0x90] sm:$0xff] %vm339_vm0, %v10401_v0  ;;  %4030 = vst.msk [vmem:[#allocation3 + $0x98] sm:$0xff] %vm339_vm0, %v10401_v0  ;;  %9293 = vmatprep.subr.mxu1 %v1600_v6 }
  0x95   : > { %4032 = vst.msk [vmem:[#allocation3 + $0xa8] sm:$0xff] %vm339_vm0, %v10401_v0  ;;  %4033 = vst.msk [vmem:[#allocation3 + $0xb0] sm:$0xff] %vm339_vm0, %v10401_v0  ;;  %9294 = vmatpush3.msra.mxu1 %v1600_v6 }
  0x96   : > { %4035 = vst.msk [vmem:[#allocation3 + $0xc0] sm:$0xff] %vm339_vm0, %v10401_v0  ;;  %4036 = vst.msk [vmem:[#allocation3 + $0xc8] sm:$0xff] %vm339_vm0, %v10401_v0 }
  0x97   : > { %4038 = vst.msk [vmem:[#allocation3 + $0xd8] sm:$0xff] %vm339_vm0, %v10401_v0  ;;  %4039 = vst.msk [vmem:[#allocation3 + $0xe0] sm:$0xff] %vm339_vm0, %v10401_v0 }
  0x98   : > { %4041 = vst.msk [vmem:[#allocation3 + $0xf0] sm:$0xff] %vm339_vm0, %v10401_v0  ;;  %4042 = vst.msk [vmem:[#allocation3 + $0xf8] sm:$0xff] %vm339_vm0, %v10401_v0 }
  0x99   : > { %4044 = vst.msk [vmem:[#allocation3 + $0x108] sm:$0xff] %vm339_vm0, %v10401_v0  ;;  %4045 = vst.msk [vmem:[#allocation3 + $0x110] sm:$0xff] %vm339_vm0, %v10401_v0 }
  0x9a   : > { %4047 = vst.msk [vmem:[#allocation3 + $0x120] sm:$0xff] %vm339_vm0, %v10401_v0  ;;  %4048 = vst.msk [vmem:[#allocation3 + $0x128] sm:$0xff] %vm339_vm0, %v10401_v0 }
  0x9b   : > { %4050 = vst.msk [vmem:[#allocation3 + $0x138] sm:$0xff] %vm339_vm0, %v10401_v0  ;;  %4051 = vst.msk [vmem:[#allocation3 + $0x140] sm:$0xff] %vm339_vm0, %v10401_v0 }
  0x9c   : > { %4053 = vst.msk [vmem:[#allocation3 + $0x150] sm:$0xff] %vm339_vm0, %v10401_v0  ;;  %4054 = vst.msk [vmem:[#allocation3 + $0x158] sm:$0xff] %vm339_vm0, %v10401_v0 }
  0x9d   : > { %4056 = vst.msk [vmem:[#allocation3 + $0x168] sm:$0xff] %vm339_vm0, %v10401_v0  ;;  %4057 = vst.msk [vmem:[#allocation3 + $0x170] sm:$0xff] %vm339_vm0, %v10401_v0 }
  0x9e   : > { %4059 = vst.msk [vmem:[#allocation3 + $0x180] sm:$0xff] %vm339_vm0, %v10401_v0  ;;  %4060 = vst.msk [vmem:[#allocation3 + $0x188] sm:$0xff] %vm339_vm0, %v10401_v0 }
  0x9f   : > { %4062 = vst.msk [vmem:[#allocation3 + $0x198] sm:$0xff] %vm339_vm0, %v10401_v0  ;;  %4063 = vst.msk [vmem:[#allocation3 + $0x1a0] sm:$0xff] %vm339_vm0, %v10401_v0 }
  0xa0   : > { %343 = vst.msk [vmem:[#allocation2 + $0x10] sm:$0x3] %vm342_vm1, %v10401_v0  ;;  %346 = vst.msk [vmem:[#allocation2 + $0x28] sm:$0x3] %vm342_vm1, %v10401_v0 }
  0xa1   : > { %349 = vst.msk [vmem:[#allocation2 + $0x40] sm:$0x3] %vm342_vm1, %v10401_v0  ;;  %352 = vst.msk [vmem:[#allocation2 + $0x58] sm:$0x3] %vm342_vm1, %v10401_v0 }
  0xa2   : > { %355 = vst.msk [vmem:[#allocation2 + $0x70] sm:$0x3] %vm342_vm1, %v10401_v0  ;;  %358 = vst.msk [vmem:[#allocation2 + $0x88] sm:$0x3] %vm342_vm1, %v10401_v0 }
  0xa3   : > { %361 = vst.msk [vmem:[#allocation2 + $0xa0] sm:$0x3] %vm342_vm1, %v10401_v0  ;;  %364 = vst.msk [vmem:[#allocation2 + $0xb8] sm:$0x3] %vm342_vm1, %v10401_v0 }
  0xa4   : > { %367 = vst.msk [vmem:[#allocation2 + $0xd0] sm:$0x3] %vm342_vm1, %v10401_v0  ;;  %370 = vst.msk [vmem:[#allocation2 + $0xe8] sm:$0x3] %vm342_vm1, %v10401_v0 }
  0xa5   : > { %373 = vst.msk [vmem:[#allocation2 + $0x100] sm:$0x3] %vm342_vm1, %v10401_v0  ;;  %376 = vst.msk [vmem:[#allocation2 + $0x118] sm:$0x3] %vm342_vm1, %v10401_v0 }
  0xa6   : > { %379 = vst.msk [vmem:[#allocation2 + $0x130] sm:$0x3] %vm342_vm1, %v10401_v0  ;;  %382 = vst.msk [vmem:[#allocation2 + $0x148] sm:$0x3] %vm342_vm1, %v10401_v0 }
  0xa7   : > { %385 = vst.msk [vmem:[#allocation2 + $0x160] sm:$0x3] %vm342_vm1, %v10401_v0  ;;  %388 = vst.msk [vmem:[#allocation2 + $0x178] sm:$0x3] %vm342_vm1, %v10401_v0  ;;  %v497_v13 = vld [vmem:[#allocation2 + $0x9] sm:$0xff] }
  0xa8   : > { %391 = vst.msk [vmem:[#allocation2 + $0x190] sm:$0x3] %vm342_vm1, %v10401_v0  ;;  %394 = vst.msk [vmem:[#allocation2 + $0x1a8] sm:$0x3] %vm342_vm1, %v10401_v0  ;;  %9132 = vmatmul.mubr.msk.f32.vlgmr.msra.gmra.mxu0 %vm339_vm0, %v497_v13 }
  0xa9   : > { %4013 = vst.msk [vmem:[#allocation3 + $0x10] sm:$0x3] %vm342_vm1, %v10401_v0  ;;  %4016 = vst.msk [vmem:[#allocation3 + $0x28] sm:$0x3] %vm342_vm1, %v10401_v0  ;;  %9236 = vmatpush3.msra.mxu0 %v1211_v21 }
  0xaa   : > { %4019 = vst.msk [vmem:[#allocation3 + $0x40] sm:$0x3] %vm342_vm1, %v10401_v0  ;;  %4022 = vst.msk [vmem:[#allocation3 + $0x58] sm:$0x3] %vm342_vm1, %v10401_v0  ;;  %9237 = vmatprep.subr.mxu0 %v1210_v32 }
  0xab   : > { %4025 = vst.msk [vmem:[#allocation3 + $0x70] sm:$0x3] %vm342_vm1, %v10401_v0  ;;  %4028 = vst.msk [vmem:[#allocation3 + $0x88] sm:$0x3] %vm342_vm1, %v10401_v0  ;;  %9238 = vmatpush3.msra.mxu0 %v1210_v32  ;;  %v426_v32 = vld [vmem:[%s10625_s18 + $0xf8] sm:$0xff] }
  0xac   : > { %4031 = vst.msk [vmem:[#allocation3 + $0xa0] sm:$0x3] %vm342_vm1, %v10401_v0  ;;  %4034 = vst.msk [vmem:[#allocation3 + $0xb8] sm:$0x3] %vm342_vm1, %v10401_v0  ;;  %9239 = vmatprep.subr.mxu0 %v1209_v46 }
  0xad   : > { %4037 = vst.msk [vmem:[#allocation3 + $0xd0] sm:$0x3] %vm342_vm1, %v10401_v0  ;;  %4040 = vst.msk [vmem:[#allocation3 + $0xe8] sm:$0x3] %vm342_vm1, %v10401_v0  ;;  %9240 = vmatpush3.msra.mxu0 %v1209_v46 }
  0xae   : > { %4043 = vst.msk [vmem:[#allocation3 + $0x100] sm:$0x3] %vm342_vm1, %v10401_v0  ;;  %4046 = vst.msk [vmem:[#allocation3 + $0x118] sm:$0x3] %vm342_vm1, %v10401_v0  ;;  %9241 = vmatprep.subr.mxu0 %v1208_v62 }
  0xaf   : > { %4049 = vst.msk [vmem:[#allocation3 + $0x130] sm:$0x3] %vm342_vm1, %v10401_v0  ;;  %4052 = vst.msk [vmem:[#allocation3 + $0x148] sm:$0x3] %vm342_vm1, %v10401_v0  ;;  %9242 = vmatpush3.msra.mxu0 %v1208_v62 }
  0xb0   : > { %4055 = vst.msk [vmem:[#allocation3 + $0x160] sm:$0x3] %vm342_vm1, %v10401_v0  ;;  %4058 = vst.msk [vmem:[#allocation3 + $0x178] sm:$0x3] %vm342_vm1, %v10401_v0  ;;  %9347 = vmatprep.subr.mxu0 %v11019_v9 }
  0xb1   : > { %4061 = vst.msk [vmem:[#allocation3 + $0x190] sm:$0x3] %vm342_vm1, %v10401_v0  ;;  %4064 = vst.msk [vmem:[#allocation3 + $0x1a8] sm:$0x3] %vm342_vm1, %v10401_v0  ;;  %v420_v0 = vld [vmem:[%s10625_s18 + $0xc8] sm:$0xff] }
  0xb2   : > { %428 = vst.msk [vmem:[#allocation2 + $0x19] sm:$0xff] %vm339_vm0, %v395_v11  ;;  %429 = vst.msk [vmem:[#allocation2 + $0x21] sm:$0xff] %vm339_vm0, %v396_v12  ;;  %v1599_v12 = vld [vmem:[#allocation9 + $0x68] sm:$0xff] }
  0xb3   : > { %430 = vst.msk [vmem:[#allocation2 + $0x31] sm:$0xff] %vm339_vm0, %v397_v15  ;;  %431 = vst.msk [vmem:[#allocation2 + $0x39] sm:$0xff] %vm339_vm0, %v398_v16  ;;  %9295 = vmatprep.subr.mxu1 %v1599_v12 }
  0xb4   : > { %432 = vst.msk [vmem:[#allocation2 + $0x49] sm:$0xff] %vm339_vm0, %v399_v17  ;;  %433 = vst.msk [vmem:[#allocation2 + $0x51] sm:$0xff] %vm339_vm0, %v400_v18  ;;  %v1598_v17 = vld [vmem:[#allocation9 + $0x60] sm:$0xff]  ;;  %9296 = vmatpush3.msra.mxu1 %v1599_v12 }
  0xb5   : > { %434 = vst.msk [vmem:[#allocation2 + $0x61] sm:$0xff] %vm339_vm0, %v401_v19  ;;  %435 = vst.msk [vmem:[#allocation2 + $0x69] sm:$0xff] %vm339_vm0, %v402_v20  ;;  %9297 = vmatprep.subr.mxu1 %v1598_v17 }
  0xb6   : > { %436 = vst.msk [vmem:[#allocation2 + $0x79] sm:$0xff] %vm339_vm0, %v403_v22  ;;  %437 = vst.msk [vmem:[#allocation2 + $0x81] sm:$0xff] %vm339_vm0, %v404_v23  ;;  %9298 = vmatpush3.msra.mxu1 %v1598_v17 }
  0xb7   : > { %438 = vst.msk [vmem:[#allocation2 + $0x91] sm:$0xff] %vm339_vm0, %v405_v24  ;;  %439 = vst.msk [vmem:[#allocation2 + $0x99] sm:$0xff] %vm339_vm0, %v406_v25 }
  0xb8   : > { %440 = vst.msk [vmem:[#allocation2 + $0xa9] sm:$0xff] %vm339_vm0, %v407_v26  ;;  %441 = vst.msk [vmem:[#allocation2 + $0xb1] sm:$0xff] %vm339_vm0, %v408_v27 }
  0xb9   : > { %442 = vst.msk [vmem:[#allocation2 + $0xc1] sm:$0xff] %vm339_vm0, %v409_v28  ;;  %443 = vst.msk [vmem:[#allocation2 + $0xc9] sm:$0xff] %vm339_vm0, %v410_v29  ;;  %v10906_v36 = vld [vmem:[#allocation2 + $0x19] sm:$0xff]  ;;  %v10910_v38 = vld [vmem:[#allocation2 + $0x21] sm:$0xff] }
  0xba   : > { %444 = vst.msk [vmem:[#allocation2 + $0xd9] sm:$0xff] %vm339_vm0, %v411_v30  ;;  %445 = vst.msk [vmem:[#allocation2 + $0xe1] sm:$0xff] %vm339_vm0, %v412_v31  ;;  %v10908_v37 = vld [vmem:[#allocation2 + $0x18] sm:$0xff]  ;;  %9134 = vmatprep.mubr.msk.f32.mxu0 %vm339_vm0, %v10906_v36  ;;  %v10919_v39 = vld [vmem:[#allocation2 + $0x20] sm:$0xff] }
  0xbb   : > { %446 = vst.msk [vmem:[#allocation2 + $0xf1] sm:$0xff] %vm339_vm0, %v413_v33  ;;  %447 = vst.msk [vmem:[#allocation2 + $0xf9] sm:$0xff] %vm339_vm0, %v414_v34  ;;  %9190 = vmatprep.mubr.msk.f32.mxu1 %vm339_vm0, %v10908_v37  ;;  %v10921_v40 = vld [vmem:[#allocation2 + $0x31] sm:$0xff]  ;;  %9135 = vmatmul.mubr.msk.f32.gmra.mxu0 %vm339_vm0, %v10910_v38  ;;  %v10933_v42 = vld [vmem:[#allocation2 + $0x39] sm:$0xff] }
  0xbc   : > { %448 = vst.msk [vmem:[#allocation2 + $0x109] sm:$0xff] %vm339_vm0, %v415_v35  ;;  %v10923_v41 = vld [vmem:[#allocation2 + $0x30] sm:$0xff]  ;;  %9191 = vmatmul.mubr.msk.f32.gmra.mxu1 %vm339_vm0, %v10919_v39  ;;  %9137 = vmatprep.mubr.msk.f32.mxu0 %vm339_vm0, %v10921_v40  ;;  %v10935_v43 = vld [vmem:[#allocation2 + $0x38] sm:$0xff]  ;;  %v10939_v45 = vld [vmem:[#allocation2 + $0x48] sm:$0xff] }
  0xbd   : > { %9193 = vmatprep.mubr.msk.f32.mxu1 %vm339_vm0, %v10923_v41  ;;  %13979 = vst [vmem:[#allocation18_spill] sm:$0xff] %v10935_v43  ;;  %v10937_v44 = vld [vmem:[#allocation2 + $0x49] sm:$0xff]  ;;  %13980 = vst [vmem:[#allocation19_spill] sm:$0xff] %v10939_v45  ;;  %v10949_v47 = vld [vmem:[#allocation2 + $0x51] sm:$0xff] }
  0xbe   : > { %v10951_v48 = vld [vmem:[#allocation2 + $0x50] sm:$0xff]  ;;  %v10953_v49 = vld [vmem:[#allocation2 + $0x61] sm:$0xff]  ;;  %v10969_v53 = vld [vmem:[#allocation2 + $0x79] sm:$0xff]  ;;  %449 = vst.msk [vmem:[#allocation2 + $0x111] sm:$0xff] %vm339_vm0, %v416_v59 }
  0xbf   : > { %9138 = vmatmul.mubr.msk.f32.gmra.mxu0 %vm339_vm0, %v10933_v42  ;;  %13981 = vst [vmem:[#allocation20_spill] sm:$0xff] %v10951_v48  ;;  %v10955_v50 = vld [vmem:[#allocation2 + $0x60] sm:$0xff]  ;;  %v10965_v51 = vld [vmem:[#allocation2 + $0x69] sm:$0xff]  ;;  %v10971_v54 = vld [vmem:[#allocation2 + $0x78] sm:$0xff] }
  0xc0   : > { %9194 = vmatmul.mubr.msk.f32.gmra.mxu1 %vm339_vm0, %v10935_v43  ;;  %9140 = vmatprep.mubr.msk.f32.mxu0 %vm339_vm0, %v10937_v44  ;;  %13982 = vst [vmem:[#allocation21_spill] sm:$0xff] %v10955_v50  ;;  %v10967_v52 = vld [vmem:[#allocation2 + $0x68] sm:$0xff]  ;;  %13984 = vst [vmem:[#allocation23_spill] sm:$0xff] %v10971_v54  ;;  %v10975_v56 = vld [vmem:[#allocation2 + $0x80] sm:$0xff] }
  0xc1   : > { %9196 = vmatprep.mubr.msk.f32.mxu1 %vm339_vm0, %v10939_v45  ;;  %13983 = vst [vmem:[#allocation22_spill] sm:$0xff] %v10967_v52  ;;  %v10973_v55 = vld [vmem:[#allocation2 + $0x81] sm:$0xff]  ;;  %13985 = vst [vmem:[#allocation24_spill] sm:$0xff] %v10975_v56  ;;  %v10981_v57 = vld [vmem:[#allocation2 + $0x91] sm:$0xff] }
  0xc2   : > { %v10983_v58 = vld [vmem:[#allocation2 + $0x90] sm:$0xff]  ;;  %450 = vst.msk [vmem:[#allocation2 + $0x121] sm:$0xff] %vm339_vm0, %v417_v60  ;;  %451 = vst.msk [vmem:[#allocation2 + $0x129] sm:$0xff] %vm339_vm0, %v418_v61  ;;  %v11015_v7 = vld [vmem:[#allocation2 + $0x99] sm:$0xff] }
  0xc3   : > { %9141 = vmatmul.mubr.msk.f32.gmra.mxu0 %vm339_vm0, %v10949_v47  ;;  %13986 = vst [vmem:[#allocation25_spill] sm:$0xff] %v10983_v58  ;;  %452 = vst.msk [vmem:[#allocation2 + $0x139] sm:$0xff] %vm339_vm0, %v419_v63  ;;  %v11017_v8 = vld [vmem:[#allocation2 + $0x98] sm:$0xff]  ;;  %v11021_v10 = vld [vmem:[#allocation2 + $0xa9] sm:$0xff] }
  0xc4   : > { %9197 = vmatmul.mubr.msk.f32.gmra.mxu1 %vm339_vm0, %v10951_v48  ;;  %9143 = vmatprep.mubr.msk.f32.mxu0 %vm339_vm0, %v10953_v49  ;;  %453 = vst.msk [vmem:[#allocation2 + $0x141] sm:$0xff] %vm339_vm0, %v420_v0  ;;  %454 = vst.msk [vmem:[#allocation2 + $0x151] sm:$0xff] %vm339_vm0, %v421_v1  ;;  %v11023_v11 = vld [vmem:[#allocation2 + $0xa8] sm:$0xff]  ;;  %v11034_v13 = vld [vmem:[#allocation2 + $0xb1] sm:$0xff] }
  0xc5   : > { %9199 = vmatprep.mubr.msk.f32.mxu1 %vm339_vm0, %v10955_v50  ;;  %455 = vst.msk [vmem:[#allocation2 + $0x159] sm:$0xff] %vm339_vm0, %v422_v2  ;;  %456 = vst.msk [vmem:[#allocation2 + $0x169] sm:$0xff] %vm339_vm0, %v423_v4  ;;  %v11036_v14 = vld [vmem:[#allocation2 + $0xb0] sm:$0xff]  ;;  %v11038_v15 = vld [vmem:[#allocation2 + $0xc1] sm:$0xff] }
  0xc6   : > { %457 = vst.msk [vmem:[#allocation2 + $0x171] sm:$0xff] %vm339_vm0, %v424_v5  ;;  %13987 = vst [vmem:[#allocation26_spill] sm:$0xff] %v11017_v8  ;;  %v11040_v16 = vld [vmem:[#allocation2 + $0xc0] sm:$0xff]  ;;  %v11050_v18 = vld [vmem:[#allocation2 + $0xc9] sm:$0xff] }
  0xc7   : > { %9144 = vmatmul.mubr.msk.f32.gmra.mxu0 %vm339_vm0, %v10965_v51  ;;  %13988 = vst [vmem:[#allocation27_spill] sm:$0xff] %v11023_v11  ;;  %13989 = vst [vmem:[#allocation28_spill] sm:$0xff] %v11036_v14  ;;  %v11052_v19 = vld [vmem:[#allocation2 + $0xc8] sm:$0xff]  ;;  %v11054_v20 = vld [vmem:[#allocation2 + $0xd9] sm:$0xff] }
  0xc8   : > { %9200 = vmatmul.mubr.msk.f32.gmra.mxu1 %vm339_vm0, %v10967_v52  ;;  %9146 = vmatprep.mubr.msk.f32.mxu0 %vm339_vm0, %v10969_v53  ;;  %13990 = vst [vmem:[#allocation29_spill] sm:$0xff] %v11040_v16  ;;  %13991 = vst [vmem:[#allocation30_spill] sm:$0xff] %v11052_v19  ;;  %v11056_v21 = vld [vmem:[#allocation2 + $0xd8] sm:$0xff]  ;;  %v11066_v22 = vld [vmem:[#allocation2 + $0xe1] sm:$0xff] }
  0xc9   : > { %9202 = vmatprep.mubr.msk.f32.mxu1 %vm339_vm0, %v10971_v54  ;;  %13992 = vst [vmem:[#allocation31_spill] sm:$0xff] %v11056_v21  ;;  %v11068_v23 = vld [vmem:[#allocation2 + $0xe0] sm:$0xff]  ;;  %v11070_v24 = vld [vmem:[#allocation2 + $0xf1] sm:$0xff]  ;;  %v11086_v28 = vld [vmem:[#allocation2 + $0x109] sm:$0xff] }
  0xca   : > { %13993 = vst [vmem:[#allocation32_spill] sm:$0xff] %v11068_v23  ;;  %v11072_v25 = vld [vmem:[#allocation2 + $0xf0] sm:$0xff]  ;;  %v11082_v26 = vld [vmem:[#allocation2 + $0xf9] sm:$0xff]  ;;  %v11088_v29 = vld [vmem:[#allocation2 + $0x108] sm:$0xff] }
  0xcb   : > { %9147 = vmatmul.mubr.msk.f32.gmra.mxu0 %vm339_vm0, %v10973_v55  ;;  %13994 = vst [vmem:[#allocation33_spill] sm:$0xff] %v11072_v25  ;;  %v11084_v27 = vld [vmem:[#allocation2 + $0xf8] sm:$0xff]  ;;  %v425_v31 = vld [vmem:[%s10625_s18 + $0xf0] sm:$0xff]  ;;  %459 = vst.msk [vmem:[#allocation2 + $0x189] sm:$0xff] %vm339_vm0, %v426_v32  ;;  %s10323_s18 = scalar_lea.vmem %s10322_s8, 8192 }
  0xcc   : > { %9203 = vmatmul.mubr.msk.f32.gmra.mxu1 %vm339_vm0, %v10975_v56  ;;  %9149 = vmatprep.mubr.msk.f32.mxu0 %vm339_vm0, %v10981_v57  ;;  %13995 = vst [vmem:[#allocation34_spill] sm:$0xff] %v11084_v27  ;;  %v2381_v30 = vld [vmem:[#allocation9 + $0xb8] sm:$0xff]  ;;  %458 = vst.msk [vmem:[#allocation2 + $0x181] sm:$0xff] %vm339_vm0, %v425_v31  ;;  %v11104_v34 = vld [vmem:[#allocation2 + $0x110] sm:$0xff]  ;;  %p10325_p13 = scmp.lt.s32.totalorder %s10323_s18, %s10317_s20 }
  0xcd   : > { %9205 = vmatprep.mubr.msk.f32.mxu1 %vm339_vm0, %v10983_v58  ;;  %9403 = vmatprep.subr.mxu1 %v2381_v30  ;;  %v11102_v33 = vld [vmem:[#allocation2 + $0x111] sm:$0xff]  ;;  %v11106_v35 = vld [vmem:[#allocation2 + $0x121] sm:$0xff]  ;;  %v11118_v59 = vld [vmem:[#allocation2 + $0x129] sm:$0xff] }
  0xce   : > { %v11108_v46 = vld [vmem:[#allocation2 + $0x120] sm:$0xff]  ;;  %v11120_v60 = vld [vmem:[#allocation2 + $0x128] sm:$0xff]  ;;  %v11124_v62 = vld [vmem:[#allocation2 + $0x138] sm:$0xff]  ;;  %p10326_p1 = por %p10325_p13, %p10324_p9 }
  0xcf   : > { %9150 = vmatmul.mubr.msk.f32.gmra.mxu0 %vm339_vm0, %v11015_v7  ;;  %v11122_v61 = vld [vmem:[#allocation2 + $0x139] sm:$0xff]  ;;  %v11134_v63 = vld [vmem:[#allocation2 + $0x141] sm:$0xff]  ;;  %v11138_v1 = vld [vmem:[#allocation2 + $0x151] sm:$0xff] }
  0xd0   : > { %9206 = vmatmul.mubr.msk.f32.gmra.mxu1 %vm339_vm0, %v11017_v8  ;;  %9152 = vmatprep.mubr.msk.f32.mxu0 %vm339_vm0, %v11021_v10  ;;  %v11136_v0 = vld [vmem:[#allocation2 + $0x140] sm:$0xff]  ;;  %v11140_v2 = vld [vmem:[#allocation2 + $0x150] sm:$0xff]  ;;  %v11152_v4 = vld [vmem:[#allocation2 + $0x158] sm:$0xff]  ;;  %p10327_p4 = pnand %p10326_p1, %p10320_p11 }
  0xd1   : > { %9208 = vmatprep.mubr.msk.f32.mxu1 %vm339_vm0, %v11023_v11  ;;  %v11150_v3 = vld [vmem:[#allocation2 + $0x159] sm:$0xff]  ;;  %v11154_v5 = vld [vmem:[#allocation2 + $0x169] sm:$0xff]  ;;  %v11166_v12 = vld [vmem:[#allocation2 + $0x171] sm:$0xff] }
  0xd2   : > { %13996 = vst [vmem:[#allocation35_spill] sm:$0xff] %v11150_v3  ;;  %13997 = vst [vmem:[#allocation36_spill] sm:$0xff] %v11154_v5  ;;  %v11156_v6 = vld [vmem:[#allocation2 + $0x168] sm:$0xff]  ;;  %v11168_v17 = vld [vmem:[#allocation2 + $0x170] sm:$0xff] }
  0xd3   : > { %9153 = vmatmul.mubr.msk.f32.gmra.mxu0 %vm339_vm0, %v11034_v13  ;;  %13998 = vst [vmem:[#allocation37_spill] sm:$0xff] %v11166_v12  ;;  %v1175_v31 = vld [vmem:[#allocation2 + $0x2] sm:$0xff]  ;;  %v1176_v32 = vld [vmem:[#allocation2 + $0xa] sm:$0xff] }
  0xd4   : > { %9209 = vmatmul.mubr.msk.f32.gmra.mxu1 %vm339_vm0, %v11036_v14  ;;  %9155 = vmatprep.mubr.msk.f32.mxu0 %vm339_vm0, %v11038_v15 }
  0xd5   : > { %9211 = vmatprep.mubr.msk.f32.mxu1 %vm339_vm0, %v11040_v16 }
  0xd7   : > { %9156 = vmatmul.mubr.msk.f32.gmra.mxu0 %vm339_vm0, %v11050_v18 }
  0xd8   : > { %9212 = vmatmul.mubr.msk.f32.gmra.mxu1 %vm339_vm0, %v11052_v19  ;;  %9158 = vmatprep.mubr.msk.f32.mxu0 %vm339_vm0, %v11054_v20 }
  0xd9   : > { %9214 = vmatprep.mubr.msk.f32.mxu1 %vm339_vm0, %v11056_v21 }
  0xdb   : > { %9159 = vmatmul.mubr.msk.f32.gmra.mxu0 %vm339_vm0, %v11066_v22 }
  0xdc   : > { %9215 = vmatmul.mubr.msk.f32.gmra.mxu1 %vm339_vm0, %v11068_v23  ;;  %9161 = vmatprep.mubr.msk.f32.mxu0 %vm339_vm0, %v11070_v24 }
  0xdd   : > { %9217 = vmatprep.mubr.msk.f32.mxu1 %vm339_vm0, %v11072_v25 }
  0xdf   : > { %9162 = vmatmul.mubr.msk.f32.gmra.mxu0 %vm339_vm0, %v11082_v26 }
  0xe0   : > { %9218 = vmatmul.mubr.msk.f32.gmra.mxu1 %vm339_vm0, %v11084_v27  ;;  %9164 = vmatprep.mubr.msk.f32.mxu0 %vm339_vm0, %v11086_v28 }
  0xe1   : > { %9220 = vmatprep.mubr.msk.f32.mxu1 %vm339_vm0, %v11088_v29 }
  0xe3   : > { %9165 = vmatmul.mubr.msk.f32.gmra.mxu0 %vm339_vm0, %v11102_v33 }
  0xe4   : > { %9221 = vmatmul.mubr.msk.f32.gmra.mxu1 %vm339_vm0, %v11104_v34  ;;  %9167 = vmatprep.mubr.msk.f32.mxu0 %vm339_vm0, %v11106_v35 }
  0xe5   : > { %9223 = vmatprep.mubr.msk.f32.mxu1 %vm339_vm0, %v11108_v46 }
  0xe7   : > { %9168 = vmatmul.mubr.msk.f32.gmra.mxu0 %vm339_vm0, %v11118_v59 }
  0xe8   : > { %9224 = vmatmul.mubr.msk.f32.gmra.mxu1 %vm339_vm0, %v11120_v60  ;;  %9170 = vmatprep.mubr.msk.f32.mxu0 %vm339_vm0, %v11122_v61 }
  0xe9   : > { %9226 = vmatprep.mubr.msk.f32.mxu1 %vm339_vm0, %v11124_v62 }
  0xeb   : > { %9171 = vmatmul.mubr.msk.f32.gmra.mxu0 %vm339_vm0, %v11134_v63 }
  0xec   : > { %9227 = vmatmul.mubr.msk.f32.gmra.mxu1 %vm339_vm0, %v11136_v0  ;;  %9173 = vmatprep.mubr.msk.f32.mxu0 %vm339_vm0, %v11138_v1 }
  0xed   : > { %9229 = vmatprep.mubr.msk.f32.mxu1 %vm339_vm0, %v11140_v2 }
  0xef   : > { %9174 = vmatmul.mubr.msk.f32.gmra.mxu0 %vm339_vm0, %v11150_v3  ;;  %v1990_v3 = vld [vmem:[#allocation9 + $0x90] sm:$0xff] }
  0xf0   : > { %9230 = vmatmul.mubr.msk.f32.gmra.mxu1 %vm339_vm0, %v11152_v4  ;;  %9176 = vmatprep.mubr.msk.f32.mxu0 %vm339_vm0, %v11154_v5  ;;  %v11177_v5 = vld [vmem:[#allocation2 + $0x1a] sm:$0xff] }
  0xf1   : > { %9232 = vmatprep.mubr.msk.f32.mxu1 %vm339_vm0, %v11156_v6 }
  0xf3   : > { %9177 = vmatmul.mubr.msk.f32.gmra.mxu0 %vm339_vm0, %v11166_v12  ;;  %v11185_v12 = vld [vmem:[#allocation2 + $0x22] sm:$0xff] }
  0xf4   : > { %9233 = vmatmul.mubr.msk.f32.gmra.mxu1 %vm339_vm0, %v11168_v17  ;;  %9243 = vmatprep.mubr.msk.f32.mxu0 %vm339_vm0, %v1175_v31  ;;  %v11189_v31 = vld [vmem:[#allocation2 + $0x32] sm:$0xff] }
  0xf5   : > { %9299 = vmatprep.mubr.msk.f32.mxu1 %vm339_vm0, %v10908_v37  ;;  %v1989_v37 = vld [vmem:[#allocation9 + $0x88] sm:$0xff] }
  0xf7   : > { %9244 = vmatmul.mubr.msk.f32.vlgmr.msra.gmra.mxu0 %vm339_vm0, %v1176_v32  ;;  %v2380_v32 = vld [vmem:[#allocation9 + $0xb0] sm:$0xff] }
  0xf8   : > { %9300 = vmatmul.mubr.msk.f32.vlgmr.msra.gmra.mxu1 %vm339_vm0, %v10919_v39  ;;  %9348 = vmatpush3.msra.mxu0 %v11019_v9  ;;  %v11197_v39 = vld [vmem:[#allocation2 + $0x3a] sm:$0xff]  ;;  %v11201_v9 = vld [vmem:[#allocation2 + $0x4a] sm:$0xff] }
  0xf9   : > { %9246 = vmatprep.mubr.msk.f32.mxu0 %vm339_vm0, %v11177_v5  ;;  %9302 = vmatprep.mubr.msk.f32.mxu1 %vm339_vm0, %v10923_v41 }
  0xfa   : > { %9349 = vmatprep.subr.mxu0 %v1990_v3  ;;  %9404 = vmatpush3.msra.mxu1 %v2381_v30  ;;  %v1988_v30 = vld [vmem:[#allocation9 + $0x80] sm:$0xff] }
  0xfb   : > { %9350 = vmatpush3.msra.mxu0 %v1990_v3  ;;  %9405 = vmatprep.subr.mxu1 %v2380_v32  ;;  %v2379_v3 = vld [vmem:[#allocation9 + $0xa8] sm:$0xff] }
  0xfc   : > { %9247 = vmatmul.mubr.msk.f32.gmra.mxu0 %vm339_vm0, %v11185_v12  ;;  %9303 = vmatmul.mubr.msk.f32.gmra.mxu1 %vm339_vm0, %v10935_v43  ;;  %v11209_v43 = vld [vmem:[#allocation2 + $0x52] sm:$0xff] }
  0xfd   : > { %9249 = vmatprep.mubr.msk.f32.mxu0 %vm339_vm0, %v11189_v31  ;;  %9305 = vmatprep.mubr.msk.f32.mxu1 %vm339_vm0, %v10939_v45  ;;  %v11213_v45 = vld [vmem:[#allocation2 + $0x62] sm:$0xff] }
  0xfe   : > { %9351 = vmatprep.subr.mxu0 %v1989_v37  ;;  %9406 = vmatpush3.msra.mxu1 %v2380_v32  ;;  %v11215_v32 = vld [vmem:[#allocation9 + $0xd8] sm:$0xff] }
  0xff   : > { %9352 = vmatpush3.msra.mxu0 %v1989_v37  ;;  %9407 = vmatprep.subr.mxu1 %v2379_v3  ;;  %v2378_v37 = vld [vmem:[#allocation9 + $0xa0] sm:$0xff] }
 0x100   : > { %9250 = vmatmul.mubr.msk.f32.gmra.mxu0 %vm339_vm0, %v11197_v39  ;;  %9306 = vmatmul.mubr.msk.f32.gmra.mxu1 %vm339_vm0, %v10951_v48  ;;  %v11223_v48 = vld [vmem:[#allocation2 + $0x6a] sm:$0xff] }
 0x101   : > { %9252 = vmatprep.mubr.msk.f32.mxu0 %vm339_vm0, %v11201_v9  ;;  %9308 = vmatprep.mubr.msk.f32.mxu1 %vm339_vm0, %v10955_v50  ;;  %v11227_v50 = vld [vmem:[#allocation2 + $0x7a] sm:$0xff] }
 0x102   : > { %9353 = vmatprep.subr.mxu0 %v1988_v30  ;;  %9408 = vmatpush3.msra.mxu1 %v2379_v3  ;;  %v11238_v3 = vld [vmem:[#allocation2 + $0x82] sm:$0xff] }
 0x103   : > { %9354 = vmatpush3.msra.mxu0 %v1988_v30  ;;  %9409 = vmatprep.subr.mxu1 %v2378_v37  ;;  %v11230_v30 = vld [vmem:[#allocation9 + $0xf8] sm:$0xff] }
 0x104   : > { %9253 = vmatmul.mubr.msk.f32.gmra.mxu0 %vm339_vm0, %v11209_v43  ;;  %9309 = vmatmul.mubr.msk.f32.gmra.mxu1 %vm339_vm0, %v10967_v52  ;;  %v11353_v52 = vld [vmem:[#allocation2 + $0x180] sm:$0xff] }
 0x105   : > { %9255 = vmatprep.mubr.msk.f32.mxu0 %vm339_vm0, %v11213_v45  ;;  %9311 = vmatprep.mubr.msk.f32.mxu1 %vm339_vm0, %v10971_v54  ;;  %v11242_v54 = vld [vmem:[#allocation2 + $0x92] sm:$0xff] }
 0x106   : > { %9459 = vmatprep.subr.mxu0 %v11215_v32  ;;  %9410 = vmatpush3.msra.mxu1 %v2378_v37  ;;  %v11251_v37 = vld [vmem:[#allocation2 + $0x9a] sm:$0xff] }
 0x107   : > { %9515 = vmatprep.subr.mxu1 %v11230_v30 }
 0x108   : > { %9256 = vmatmul.mubr.msk.f32.gmra.mxu0 %vm339_vm0, %v11223_v48  ;;  %9312 = vmatmul.mubr.msk.f32.gmra.mxu1 %vm339_vm0, %v10975_v56  ;;  %v11255_v56 = vld [vmem:[#allocation2 + $0xaa] sm:$0xff] }
 0x109   : > { %9258 = vmatprep.mubr.msk.f32.mxu0 %vm339_vm0, %v11227_v50  ;;  %9314 = vmatprep.mubr.msk.f32.mxu1 %vm339_vm0, %v10983_v58  ;;  %v11267_v58 = vld [vmem:[#allocation2 + $0xc2] sm:$0xff] }
 0x10c   : > { %9259 = vmatmul.mubr.msk.f32.gmra.mxu0 %vm339_vm0, %v11238_v3  ;;  %9315 = vmatmul.mubr.msk.f32.gmra.mxu1 %vm339_vm0, %v11017_v8  ;;  %v11263_v8 = vld [vmem:[#allocation2 + $0xb2] sm:$0xff] }
 0x10d   : > { %9261 = vmatprep.mubr.msk.f32.mxu0 %vm339_vm0, %v11242_v54  ;;  %9317 = vmatprep.mubr.msk.f32.mxu1 %vm339_vm0, %v11023_v11  ;;  %v11279_v11 = vld [vmem:[#allocation2 + $0xda] sm:$0xff] }
 0x110   : > { %9262 = vmatmul.mubr.msk.f32.gmra.mxu0 %vm339_vm0, %v11251_v37  ;;  %9318 = vmatmul.mubr.msk.f32.gmra.mxu1 %vm339_vm0, %v11036_v14  ;;  %v11275_v14 = vld [vmem:[#allocation2 + $0xca] sm:$0xff] }
 0x111   : > { %9264 = vmatprep.mubr.msk.f32.mxu0 %vm339_vm0, %v11255_v56  ;;  %9320 = vmatprep.mubr.msk.f32.mxu1 %vm339_vm0, %v11040_v16  ;;  %v11291_v16 = vld [vmem:[#allocation2 + $0xf2] sm:$0xff] }
 0x114   : > { %9265 = vmatmul.mubr.msk.f32.gmra.mxu0 %vm339_vm0, %v11263_v8  ;;  %9321 = vmatmul.mubr.msk.f32.gmra.mxu1 %vm339_vm0, %v11052_v19  ;;  %v11287_v19 = vld [vmem:[#allocation2 + $0xe2] sm:$0xff] }
 0x115   : > { %9267 = vmatprep.mubr.msk.f32.mxu0 %vm339_vm0, %v11267_v58  ;;  %9323 = vmatprep.mubr.msk.f32.mxu1 %vm339_vm0, %v11056_v21  ;;  %v11303_v21 = vld [vmem:[#allocation2 + $0x10a] sm:$0xff] }
 0x118   : > { %9268 = vmatmul.mubr.msk.f32.gmra.mxu0 %vm339_vm0, %v11275_v14  ;;  %9324 = vmatmul.mubr.msk.f32.gmra.mxu1 %vm339_vm0, %v11068_v23  ;;  %v11299_v23 = vld [vmem:[#allocation2 + $0xfa] sm:$0xff] }
 0x119   : > { %9270 = vmatprep.mubr.msk.f32.mxu0 %vm339_vm0, %v11279_v11  ;;  %9326 = vmatprep.mubr.msk.f32.mxu1 %vm339_vm0, %v11072_v25  ;;  %v11315_v25 = vld [vmem:[#allocation2 + $0x122] sm:$0xff] }
 0x11c   : > { %9271 = vmatmul.mubr.msk.f32.gmra.mxu0 %vm339_vm0, %v11287_v19  ;;  %9327 = vmatmul.mubr.msk.f32.gmra.mxu1 %vm339_vm0, %v11084_v27  ;;  %v11311_v27 = vld [vmem:[#allocation2 + $0x112] sm:$0xff] }
 0x11d   : > { %9273 = vmatprep.mubr.msk.f32.mxu0 %vm339_vm0, %v11291_v16  ;;  %9329 = vmatprep.mubr.msk.f32.mxu1 %vm339_vm0, %v11088_v29  ;;  %v11323_v29 = vld [vmem:[#allocation2 + $0x12a] sm:$0xff] }
 0x120   : > { %9274 = vmatmul.mubr.msk.f32.gmra.mxu0 %vm339_vm0, %v11299_v23  ;;  %9330 = vmatmul.mubr.msk.f32.gmra.mxu1 %vm339_vm0, %v11104_v34  ;;  %v11327_v34 = vld [vmem:[#allocation2 + $0x13a] sm:$0xff] }
 0x121   : > { %9276 = vmatprep.mubr.msk.f32.mxu0 %vm339_vm0, %v11303_v21  ;;  %9332 = vmatprep.mubr.msk.f32.mxu1 %vm339_vm0, %v11108_v46  ;;  %v11335_v46 = vld [vmem:[#allocation2 + $0x142] sm:$0xff] }
 0x124   : > { %9277 = vmatmul.mubr.msk.f32.gmra.mxu0 %vm339_vm0, %v11311_v27  ;;  %9333 = vmatmul.mubr.msk.f32.gmra.mxu1 %vm339_vm0, %v11120_v60  ;;  %v11339_v60 = vld [vmem:[#allocation2 + $0x152] sm:$0xff] }
 0x125   : > { %9279 = vmatprep.mubr.msk.f32.mxu0 %vm339_vm0, %v11315_v25  ;;  %9335 = vmatprep.mubr.msk.f32.mxu1 %vm339_vm0, %v11124_v62  ;;  %v11347_v62 = vld [vmem:[#allocation2 + $0x15a] sm:$0xff] }
 0x128   : > { %9280 = vmatmul.mubr.msk.f32.gmra.mxu0 %vm339_vm0, %v11323_v29  ;;  %9336 = vmatmul.mubr.msk.f32.gmra.mxu1 %vm339_vm0, %v11136_v0  ;;  %v11351_v0 = vld [vmem:[#allocation2 + $0x16a] sm:$0xff] }
 0x129   : > { %9282 = vmatprep.mubr.msk.f32.mxu0 %vm339_vm0, %v11327_v34  ;;  %9338 = vmatprep.mubr.msk.f32.mxu1 %vm339_vm0, %v11140_v2  ;;  %v11361_v2 = vld [vmem:[#allocation2 + $0x172] sm:$0xff] }
 0x12c   : > { %9283 = vmatmul.mubr.msk.f32.gmra.mxu0 %vm339_vm0, %v11335_v46  ;;  %9339 = vmatmul.mubr.msk.f32.gmra.mxu1 %vm339_vm0, %v11152_v4  ;;  %v11365_v4 = vld [vmem:[#allocation2 + $0x188] sm:$0xff] }
 0x12d   : > { %9285 = vmatprep.mubr.msk.f32.mxu0 %vm339_vm0, %v11339_v60  ;;  %9341 = vmatprep.mubr.msk.f32.mxu1 %vm339_vm0, %v11156_v6  ;;  %v2771_v6 = vld [vmem:[#allocation9 + $0xd0] sm:$0xff] }
 0x130   : > { %9286 = vmatmul.mubr.msk.f32.gmra.mxu0 %vm339_vm0, %v11347_v62  ;;  %9342 = vmatmul.mubr.msk.f32.gmra.mxu1 %vm339_vm0, %v11168_v17  ;;  %v3159_v17 = vld [vmem:[#allocation9 + $0xe0] sm:$0xff] }
 0x131   : > { %9288 = vmatprep.mubr.msk.f32.mxu0 %vm339_vm0, %v11351_v0  ;;  %9344 = vmatprep.mubr.msk.f32.mxu1 %vm339_vm0, %v11353_v52 }
 0x134   : > { %9289 = vmatmul.mubr.msk.f32.gmra.mxu0 %vm339_vm0, %v11361_v2  ;;  %9345 = vmatmul.mubr.msk.f32.gmra.mxu1 %vm339_vm0, %v11365_v4 }
 0x135   : > { %9355 = vmatprep.mubr.msk.f32.mxu0 %vm339_vm0, %v10906_v36  ;;  %9411 = vmatprep.mubr.msk.f32.mxu1 %vm339_vm0, %v11177_v5  ;;  %v2770_v36 = vld [vmem:[#allocation9 + $0xc8] sm:$0xff]  ;;  %v3161_v5 = vld [vmem:[#allocation9 + $0xf0] sm:$0xff] }
 0x138   : > { %9356 = vmatmul.mubr.msk.f32.vlgmr.msra.gmra.mxu0 %vm339_vm0, %v10910_v38  ;;  %9412 = vmatmul.mubr.msk.f32.vlgmr.msra.gmra.mxu1 %vm339_vm0, %v11185_v12  ;;  %v2769_v38 = vld [vmem:[#allocation9 + $0xc0] sm:$0xff]  ;;  %v3160_v12 = vld [vmem:[#allocation9 + $0xe8] sm:$0xff] }
 0x139   : > { %9460 = vmatpush3.msra.mxu0 %v11215_v32  ;;  %9358 = vmatprep.mubr.msk.f32.mxu0 %vm339_vm0, %v10921_v40  ;;  %v3136_v32 = vld [vmem:[#allocation2 + $0xa9] sm:$0xff] }
 0x13a   : > { %9414 = vmatprep.mubr.msk.f32.mxu1 %vm339_vm0, %v11189_v31  ;;  %9461 = vmatprep.subr.mxu0 %v2771_v6  ;;  %v11401_v31 = vld [vmem:[#allocation9 + $0x118] sm:$0xff] }
 0x13b   : > { %9462 = vmatpush3.msra.mxu0 %v2771_v6  ;;  %9516 = vmatpush3.msra.mxu1 %v11230_v30 }
 0x13c   : > { %9359 = vmatmul.mubr.msk.f32.gmra.mxu0 %vm339_vm0, %v10933_v42  ;;  %9415 = vmatmul.mubr.msk.f32.gmra.mxu1 %vm339_vm0, %v11197_v39  ;;  %v14009_v39 = vld [vmem:[#allocation25_spill] sm:$0xff] }
 0x13d   : > { %9361 = vmatprep.mubr.msk.f32.mxu0 %vm339_vm0, %v10937_v44  ;;  %9417 = vmatprep.mubr.msk.f32.mxu1 %vm339_vm0, %v11201_v9 }
 0x13e   : > { %9463 = vmatprep.subr.mxu0 %v2770_v36  ;;  %9517 = vmatprep.subr.mxu1 %v3161_v5 }
 0x13f   : > { %9464 = vmatpush3.msra.mxu0 %v2770_v36  ;;  %9518 = vmatpush3.msra.mxu1 %v3161_v5  ;;  %v14012_v36 = vld [vmem:[#allocation28_spill] sm:$0xff]  ;;  %v14013_v5 = vld [vmem:[#allocation29_spill] sm:$0xff] }
 0x140   : > { %9362 = vmatmul.mubr.msk.f32.gmra.mxu0 %vm339_vm0, %v10949_v47  ;;  %9418 = vmatmul.mubr.msk.f32.gmra.mxu1 %vm339_vm0, %v11209_v43  ;;  %v13999_v43 = vld [vmem:[#allocation35_spill] sm:$0xff] }
 0x141   : > { %9364 = vmatprep.mubr.msk.f32.mxu0 %vm339_vm0, %v10953_v49  ;;  %9420 = vmatprep.mubr.msk.f32.mxu1 %vm339_vm0, %v11213_v45  ;;  %v14000_v45 = vld [vmem:[#allocation36_spill] sm:$0xff] }
 0x142   : > { %9465 = vmatprep.subr.mxu0 %v2769_v38  ;;  %9519 = vmatprep.subr.mxu1 %v3160_v12 }
 0x143   : > { %9466 = vmatpush3.msra.mxu0 %v2769_v38  ;;  %9520 = vmatpush3.msra.mxu1 %v3160_v12  ;;  %v3139_v38 = vld [vmem:[#allocation2 + $0xc9] sm:$0xff] }
 0x144   : > { %9365 = vmatmul.mubr.msk.f32.gmra.mxu0 %vm339_vm0, %v10965_v51  ;;  %9421 = vmatmul.mubr.msk.f32.gmra.mxu1 %vm339_vm0, %v11223_v48  ;;  %v11492_v48 = vld [vmem:[#allocation2 + $0x181] sm:$0xff] }
 0x145   : > { %9367 = vmatprep.mubr.msk.f32.mxu0 %vm339_vm0, %v10969_v53  ;;  %9423 = vmatprep.mubr.msk.f32.mxu1 %vm339_vm0, %v11227_v50  ;;  %v11494_v50 = vld [vmem:[#allocation2 + $0x182] sm:$0xff] }
 0x146   : > { %9521 = vmatprep.subr.mxu1 %v3159_v17  ;;  %9571 = vmatprep.subr.mxu0 %v11401_v31 }
 0x147   : > { %9522 = vmatpush3.msra.mxu1 %v3159_v17 }
 0x148   : > { %9368 = vmatmul.mubr.msk.f32.gmra.mxu0 %vm339_vm0, %v10973_v55  ;;  %9424 = vmatmul.mubr.msk.f32.gmra.mxu1 %vm339_vm0, %v11238_v3 }
 0x149   : > { %9370 = vmatprep.mubr.msk.f32.mxu0 %vm339_vm0, %v10981_v57  ;;  %9426 = vmatprep.mubr.msk.f32.mxu1 %vm339_vm0, %v11242_v54  ;;  %v14001_v54 = vld [vmem:[#allocation37_spill] sm:$0xff] }
 0x14c   : > { %9371 = vmatmul.mubr.msk.f32.gmra.mxu0 %vm339_vm0, %v11015_v7  ;;  %9427 = vmatmul.mubr.msk.f32.gmra.mxu1 %vm339_vm0, %v11251_v37 }
 0x14d   : > { %9373 = vmatprep.mubr.msk.f32.mxu0 %vm339_vm0, %v11021_v10  ;;  %9429 = vmatprep.mubr.msk.f32.mxu1 %vm339_vm0, %v11255_v56  ;;  %v11502_v56 = vld [vmem:[#allocation2 + $0x189] sm:$0xff] }
 0x150   : > { %9374 = vmatmul.mubr.msk.f32.gmra.mxu0 %vm339_vm0, %v11034_v13  ;;  %9430 = vmatmul.mubr.msk.f32.gmra.mxu1 %vm339_vm0, %v11263_v8  ;;  %v3551_v8 = vld [vmem:[#allocation9 + $0x110] sm:$0xff]  ;;  %v14002_v13 = vld [vmem:[#allocation18_spill] sm:$0xff] }
 0x151   : > { %9376 = vmatprep.mubr.msk.f32.mxu0 %vm339_vm0, %v11038_v15  ;;  %9432 = vmatprep.mubr.msk.f32.mxu1 %vm339_vm0, %v11267_v58  ;;  %v11506_v58 = vld [vmem:[#allocation2 + $0x18a] sm:$0xff] }
 0x152   : > { %v14003_v15 = vld [vmem:[#allocation19_spill] sm:$0xff] }
 0x154   : > { %9377 = vmatmul.mubr.msk.f32.gmra.mxu0 %vm339_vm0, %v11050_v18  ;;  %9433 = vmatmul.mubr.msk.f32.gmra.mxu1 %vm339_vm0, %v11275_v14  ;;  %v3550_v18 = vld [vmem:[#allocation9 + $0x108] sm:$0xff] }
 0x155   : > { %9379 = vmatprep.mubr.msk.f32.mxu0 %vm339_vm0, %v11054_v20  ;;  %9435 = vmatprep.mubr.msk.f32.mxu1 %vm339_vm0, %v11279_v11  ;;  %v9189_v11 = vpop.f32.mrf.mxu1 }
 0x158   : > { %9380 = vmatmul.mubr.msk.f32.gmra.mxu0 %vm339_vm0, %v11066_v22  ;;  %9436 = vmatmul.mubr.msk.f32.gmra.mxu1 %vm339_vm0, %v11287_v19  ;;  %v14005_v22 = vld [vmem:[#allocation21_spill] sm:$0xff] }
 0x159   : > { %9382 = vmatprep.mubr.msk.f32.mxu0 %vm339_vm0, %v11070_v24  ;;  %9438 = vmatprep.mubr.msk.f32.mxu1 %vm339_vm0, %v11291_v16  ;;  %v1016_v16 = vpop.f32.mrf.mxu1 }
 0x15c   : > { %9383 = vmatmul.mubr.msk.f32.gmra.mxu0 %vm339_vm0, %v11082_v26  ;;  %9439 = vmatmul.mubr.msk.f32.gmra.mxu1 %vm339_vm0, %v11299_v23 }
 0x15d   : > { %9385 = vmatprep.mubr.msk.f32.mxu0 %vm339_vm0, %v11086_v28  ;;  %9441 = vmatprep.mubr.msk.f32.mxu1 %vm339_vm0, %v11303_v21  ;;  %v14006_v28 = vld [vmem:[#allocation22_spill] sm:$0xff] }
 0x160   : > { %9386 = vmatmul.mubr.msk.f32.gmra.mxu0 %vm339_vm0, %v11102_v33  ;;  %9442 = vmatmul.mubr.msk.f32.gmra.mxu1 %vm339_vm0, %v11311_v27  ;;  %v14007_v33 = vld [vmem:[#allocation23_spill] sm:$0xff] }
 0x161   : > { %9388 = vmatprep.mubr.msk.f32.mxu0 %vm339_vm0, %v11106_v35  ;;  %9444 = vmatprep.mubr.msk.f32.mxu1 %vm339_vm0, %v11315_v25  ;;  %v3549_v25 = vld [vmem:[#allocation9 + $0x100] sm:$0xff] }
 0x164   : > { %9389 = vmatmul.mubr.msk.f32.gmra.mxu0 %vm339_vm0, %v11118_v59  ;;  %9445 = vmatmul.mubr.msk.f32.gmra.mxu1 %vm339_vm0, %v11323_v29  ;;  %v14010_v29 = vld [vmem:[#allocation26_spill] sm:$0xff] }
 0x165   : > { %9391 = vmatprep.mubr.msk.f32.mxu0 %vm339_vm0, %v11122_v61  ;;  %9447 = vmatprep.mubr.msk.f32.mxu1 %vm339_vm0, %v11327_v34  ;;  %v14011_v34 = vld [vmem:[#allocation27_spill] sm:$0xff] }
 0x168   : > { %9392 = vmatmul.mubr.msk.f32.gmra.mxu0 %vm339_vm0, %v11134_v63  ;;  %9448 = vmatmul.mubr.msk.f32.gmra.mxu1 %vm339_vm0, %v11335_v46  ;;  %v9133_v10 = vpop.f32.mrf.mxu0 }
 0x169   : > { %9394 = vmatprep.mubr.msk.f32.mxu0 %vm339_vm0, %v11138_v1  ;;  %9450 = vmatprep.mubr.msk.f32.mxu1 %vm339_vm0, %v11339_v60  ;;  %v11520_v14 = vadd.f32 %v9189_v11, %v9133_v10  ;;  %v14008_v1 = vld [vmem:[#allocation24_spill] sm:$0xff]  ;;  %v14015_v11 = vld [vmem:[#allocation31_spill] sm:$0xff] }
 0x16c   : > { %9395 = vmatmul.mubr.msk.f32.gmra.mxu0 %vm339_vm0, %v13999_v43  ;;  %9451 = vmatmul.mubr.msk.f32.gmra.mxu1 %vm339_vm0, %v11347_v62  ;;  %v3138_v62 = vld [vmem:[#allocation2 + $0xc1] sm:$0xff] }
 0x16d   : > { %9397 = vmatprep.mubr.msk.f32.mxu0 %vm339_vm0, %v14000_v45  ;;  %9453 = vmatprep.mubr.msk.f32.mxu1 %vm339_vm0, %v11351_v0 }
 0x170   : > { %9398 = vmatmul.mubr.msk.f32.gmra.mxu0 %vm339_vm0, %v14001_v54  ;;  %9454 = vmatmul.mubr.msk.f32.gmra.mxu1 %vm339_vm0, %v11361_v2 }
 0x171   : > { %9400 = vmatprep.mubr.msk.f32.mxu0 %vm339_vm0, %v11492_v48  ;;  %9456 = vmatprep.mubr.msk.f32.mxu1 %vm339_vm0, %v11494_v50 }
 0x174   : > { %9401 = vmatmul.mubr.msk.f32.gmra.mxu0 %vm339_vm0, %v11502_v56  ;;  %9457 = vmatmul.mubr.msk.f32.gmra.mxu1 %vm339_vm0, %v11506_v58 }
 0x175   : > { %9467 = vmatprep.mubr.msk.f32.mxu0 %vm339_vm0, %v10923_v41  ;;  %9523 = vmatprep.mubr.msk.f32.mxu1 %vm339_vm0, %v10921_v40  ;;  %v695_v41 = vpop.f32.mrf.mxu0 }
 0x176   : > { %v11527_v40 = vadd.f32 %v1016_v16, %v695_v41  ;;  %v3142_v16 = vld [vmem:[#allocation2 + $0xf1] sm:$0xff] }
 0x178   : > { %9468 = vmatmul.mubr.msk.f32.vlgmr.msra.gmra.mxu0 %vm339_vm0, %v14002_v13  ;;  %9524 = vmatmul.mubr.msk.f32.vlgmr.msra.gmra.mxu1 %vm339_vm0, %v10933_v42  ;;  %v14004_v42 = vld [vmem:[#allocation20_spill] sm:$0xff]  ;;  %v3141_v13 = vld [vmem:[#allocation2 + $0xe1] sm:$0xff] }
 0x179   : > { %9572 = vmatpush3.msra.mxu0 %v11401_v31  ;;  %9470 = vmatprep.mubr.msk.f32.mxu0 %vm339_vm0, %v14003_v15  ;;  %v3140_v31 = vld [vmem:[#allocation2 + $0xd9] sm:$0xff] }
 0x17a   : > { %9526 = vmatprep.mubr.msk.f32.mxu1 %vm339_vm0, %v10937_v44  ;;  %9573 = vmatprep.subr.mxu0 %v3551_v8 }
 0x17b   : > { %9574 = vmatpush3.msra.mxu0 %v3551_v8  ;;  %v9136_v19 = vpop.f32.mrf.mxu0  ;;  %v14014_v8 = vld [vmem:[#allocation30_spill] sm:$0xff] }
 0x17c   : > { %v9192_v20 = vpop.f32.mrf.mxu1  ;;  %9471 = vmatmul.mubr.msk.f32.gmra.mxu0 %vm339_vm0, %v14004_v42  ;;  %9527 = vmatmul.mubr.msk.f32.gmra.mxu1 %vm339_vm0, %v10949_v47  ;;  %v14016_v42 = vld [vmem:[#allocation32_spill] sm:$0xff] }
 0x17d   : > { %v11533_v21 = vadd.f32 %v9192_v20, %v9136_v19  ;;  %9473 = vmatprep.mubr.msk.f32.mxu0 %vm339_vm0, %v14005_v22  ;;  %9529 = vmatprep.mubr.msk.f32.mxu1 %vm339_vm0, %v10953_v49  ;;  %v705_v44 = vpop.f32.mrf.mxu0 }
 0x17e   : > { %v1026_v23 = vpop.f32.mrf.mxu1  ;;  %9575 = vmatprep.subr.mxu0 %v3550_v18 }
 0x17f   : > { %v11539_v24 = vadd.f32 %v1026_v23, %v705_v44  ;;  %9576 = vmatpush3.msra.mxu0 %v3550_v18  ;;  %v9139_v26 = vpop.f32.mrf.mxu0  ;;  %v14017_v44 = vld [vmem:[#allocation33_spill] sm:$0xff] }
 0x180   : > { %v9195_v27 = vpop.f32.mrf.mxu1  ;;  %9474 = vmatmul.mubr.msk.f32.gmra.mxu0 %vm339_vm0, %v14006_v28  ;;  %9530 = vmatmul.mubr.msk.f32.gmra.mxu1 %vm339_vm0, %v10965_v51  ;;  %v3143_v23 = vld [vmem:[#allocation2 + $0xf9] sm:$0xff]  ;;  %v3144_v28 = vld [vmem:[#allocation2 + $0x109] sm:$0xff] }
 0x181   : > { %v11545_v47 = vadd.f32 %v9195_v27, %v9139_v26  ;;  %9476 = vmatprep.mubr.msk.f32.mxu0 %vm339_vm0, %v14007_v33  ;;  %9532 = vmatprep.mubr.msk.f32.mxu1 %vm339_vm0, %v10969_v53  ;;  %v715_v49 = vpop.f32.mrf.mxu0  ;;  %v2754_v27 = vld [vmem:[#allocation2 + $0x108] sm:$0xff] }
 0x182   : > { %v1036_v35 = vpop.f32.mrf.mxu1  ;;  %9577 = vmatprep.subr.mxu0 %v3549_v25 }
 0x183   : > { %v11551_v59 = vadd.f32 %v1036_v35, %v715_v49  ;;  %9578 = vmatpush3.msra.mxu0 %v3549_v25  ;;  %v9142_v61 = vpop.f32.mrf.mxu0 }
 0x184   : > { %v9198_v63 = vpop.f32.mrf.mxu1  ;;  %9477 = vmatmul.mubr.msk.f32.gmra.mxu0 %vm339_vm0, %v14008_v1  ;;  %9533 = vmatmul.mubr.msk.f32.gmra.mxu1 %vm339_vm0, %v10973_v55  ;;  %v2755_v1 = vld [vmem:[#allocation2 + $0x110] sm:$0xff] }
 0x185   : > { %v11557_v51 = vadd.f32 %v9198_v63, %v9142_v61  ;;  %9479 = vmatprep.mubr.msk.f32.mxu0 %vm339_vm0, %v14009_v39  ;;  %9535 = vmatprep.mubr.msk.f32.mxu1 %vm339_vm0, %v10981_v57  ;;  %v725_v53 = vpop.f32.mrf.mxu0  ;;  %v3137_v57 = vld [vmem:[#allocation2 + $0xb1] sm:$0xff]  ;;  %v14018_v61 = vld [vmem:[#allocation34_spill] sm:$0xff] }
 0x186   : > { %v1046_v9 = vpop.f32.mrf.mxu1  ;;  %v3145_v39 = vld [vmem:[#allocation2 + $0x111] sm:$0xff] }
 0x187   : > { %v11563_v30 = vadd.f32 %v1046_v9, %v725_v53  ;;  %v9145_v3 = vpop.f32.mrf.mxu0 }
 0x188   : > { %v9201_v37 = vpop.f32.mrf.mxu1  ;;  %9480 = vmatmul.mubr.msk.f32.gmra.mxu0 %vm339_vm0, %v14010_v29  ;;  %9536 = vmatmul.mubr.msk.f32.gmra.mxu1 %vm339_vm0, %v11015_v7 }
 0x189   : > { %v11569_v55 = vadd.f32 %v9201_v37, %v9145_v3  ;;  %9482 = vmatprep.mubr.msk.f32.mxu0 %vm339_vm0, %v14011_v34  ;;  %9538 = vmatprep.mubr.msk.f32.mxu1 %vm339_vm0, %v3136_v32  ;;  %v735_v46 = vpop.f32.mrf.mxu0  ;;  %v2756_v32 = vld [vmem:[#allocation2 + $0x120] sm:$0xff] }
 0x18a   : > { %v1056_v60 = vpop.f32.mrf.mxu1  ;;  %v3146_v3 = vld [vmem:[#allocation2 + $0x121] sm:$0xff] }
 0x18b   : > { %v11574_v0 = vadd.f32 %v1056_v60, %v735_v46  ;;  %v9148_v2 = vpop.f32.mrf.mxu0  ;;  %v3147_v46 = vld [vmem:[#allocation2 + $0x129] sm:$0xff] }
 0x18c   : > { %v9204_v6 = vpop.f32.mrf.mxu1  ;;  %9483 = vmatmul.mubr.msk.f32.gmra.mxu0 %vm339_vm0, %v14012_v36  ;;  %9539 = vmatmul.mubr.msk.f32.gmra.mxu1 %vm339_vm0, %v3137_v57  ;;  %v2757_v57 = vld [vmem:[#allocation2 + $0x128] sm:$0xff] }
 0x18d   : > { %v11579_v7 = vadd.f32 %v9204_v6, %v9148_v2  ;;  %9485 = vmatprep.mubr.msk.f32.mxu0 %vm339_vm0, %v14013_v5  ;;  %9541 = vmatprep.mubr.msk.f32.mxu1 %vm339_vm0, %v3138_v62  ;;  %v745_v12 = vpop.f32.mrf.mxu0  ;;  %v2758_v2 = vld [vmem:[#allocation2 + $0x138] sm:$0xff] }
 0x18e   : > { %v1066_v17 = vpop.f32.mrf.mxu1  ;;  %v3148_v6 = vld [vmem:[#allocation2 + $0x139] sm:$0xff] }
 0x18f   : > { %v11584_v43 = vadd.f32 %v1066_v17, %v745_v12  ;;  %v9151_v45 = vpop.f32.mrf.mxu0  ;;  %v2759_v12 = vld [vmem:[#allocation2 + $0x140] sm:$0xff] }
 0x190   : > { %v9207_v54 = vpop.f32.mrf.mxu1  ;;  %9486 = vmatmul.mubr.msk.f32.gmra.mxu0 %vm339_vm0, %v14014_v8  ;;  %9542 = vmatmul.mubr.msk.f32.gmra.mxu1 %vm339_vm0, %v3139_v38  ;;  %v3149_v17 = vld [vmem:[#allocation2 + $0x141] sm:$0xff]  ;;  %v3150_v8 = vld [vmem:[#allocation2 + $0x151] sm:$0xff] }
 0x191   : > { %v11589_v10 = vadd.f32 %v9207_v54, %v9151_v45  ;;  %9488 = vmatprep.mubr.msk.f32.mxu0 %vm339_vm0, %v14015_v11  ;;  %9544 = vmatprep.mubr.msk.f32.mxu1 %vm339_vm0, %v3140_v31  ;;  %v755_v15 = vpop.f32.mrf.mxu0  ;;  %v2760_v54 = vld [vmem:[#allocation2 + $0x150] sm:$0xff] }
 0x192   : > { %v1076_v41 = vpop.f32.mrf.mxu1 }
 0x193   : > { %v11594_v18 = vadd.f32 %v1076_v41, %v755_v15  ;;  %v9154_v19 = vpop.f32.mrf.mxu0  ;;  %v2761_v41 = vld [vmem:[#allocation2 + $0x158] sm:$0xff] }
 0x194   : > { %v9210_v20 = vpop.f32.mrf.mxu1  ;;  %9489 = vmatmul.mubr.msk.f32.gmra.mxu0 %vm339_vm0, %v14016_v42  ;;  %9545 = vmatmul.mubr.msk.f32.gmra.mxu1 %vm339_vm0, %v3141_v13  ;;  %v2762_v42 = vld [vmem:[#allocation2 + $0x168] sm:$0xff] }
 0x195   : > { %v11599_v22 = vadd.f32 %v9210_v20, %v9154_v19  ;;  %9491 = vmatprep.mubr.msk.f32.mxu0 %vm339_vm0, %v14017_v44  ;;  %9547 = vmatprep.mubr.msk.f32.mxu1 %vm339_vm0, %v3142_v16  ;;  %v765_v25 = vpop.f32.mrf.mxu0  ;;  %v3151_v16 = vld [vmem:[#allocation2 + $0x159] sm:$0xff]  ;;  %v3152_v44 = vld [vmem:[#allocation2 + $0x169] sm:$0xff] }
 0x196   : > { %v1086_v26 = vpop.f32.mrf.mxu1 }
 0x197   : > { %v11604_v33 = vadd.f32 %v1086_v26, %v765_v25  ;;  %v9157_v49 = vpop.f32.mrf.mxu0 }
 0x198   : > { %v9213_v35 = vpop.f32.mrf.mxu1  ;;  %9492 = vmatmul.mubr.msk.f32.gmra.mxu0 %vm339_vm0, %v14018_v61  ;;  %9548 = vmatmul.mubr.msk.f32.gmra.mxu1 %vm339_vm0, %v3143_v23 }
 0x199   : > { %v11609_v63 = vadd.f32 %v9213_v35, %v9157_v49  ;;  %9494 = vmatprep.mubr.msk.f32.mxu0 %vm339_vm0, %v2754_v27  ;;  %9550 = vmatprep.mubr.msk.f32.mxu1 %vm339_vm0, %v3144_v28  ;;  %v11613_v53 = vpop.f32.mrf.mxu0  ;;  %v2763_v27 = vld [vmem:[#allocation2 + $0x170] sm:$0xff] }
 0x19a   : > { %v11615_v9 = vpop.f32.mrf.mxu1  ;;  %v3153_v28 = vld [vmem:[#allocation2 + $0x171] sm:$0xff] }
 0x19b   : > { %v9160_v37 = vpop.f32.mrf.mxu0 }
 0x19c   : > { %v9216_v29 = vpop.f32.mrf.mxu1  ;;  %9495 = vmatmul.mubr.msk.f32.gmra.mxu0 %vm339_vm0, %v2755_v1  ;;  %9551 = vmatmul.mubr.msk.f32.gmra.mxu1 %vm339_vm0, %v3145_v39 }
 0x19d   : > { %v11619_v34 = vadd.f32 %v9216_v29, %v9160_v37  ;;  %9497 = vmatprep.mubr.msk.f32.mxu0 %vm339_vm0, %v2756_v32  ;;  %9553 = vmatprep.mubr.msk.f32.mxu1 %vm339_vm0, %v3146_v3  ;;  %v11623_v60 = vpop.f32.mrf.mxu0  ;;  %v2766_v37 = vld [vmem:[#allocation2 + $0x198] sm:$0xff] }
 0x19e   : > { %v11625_v62 = vpop.f32.mrf.mxu1  ;;  %v3156_v29 = vld [vmem:[#allocation2 + $0x199] sm:$0xff] }
 0x19f   : > { %v9163_v36 = vpop.f32.mrf.mxu0 }
 0x1a0   : > { %v9219_v5 = vpop.f32.mrf.mxu1  ;;  %9498 = vmatmul.mubr.msk.f32.gmra.mxu0 %vm339_vm0, %v2757_v57  ;;  %9554 = vmatmul.mubr.msk.f32.gmra.mxu1 %vm339_vm0, %v3147_v46 }
 0x1a1   : > { %v11629_v38 = vadd.f32 %v9219_v5, %v9163_v36  ;;  %9500 = vmatprep.mubr.msk.f32.mxu0 %vm339_vm0, %v2758_v2  ;;  %9556 = vmatprep.mubr.msk.f32.mxu1 %vm339_vm0, %v3148_v6  ;;  %v11633_v31 = vpop.f32.mrf.mxu0  ;;  %v3516_v5 = vld [vmem:[#allocation2 + $0x32] sm:$0xff] }
 0x1a2   : > { %v11635_v45 = vpop.f32.mrf.mxu1 }
 0x1a3   : > { %v9166_v11 = vpop.f32.mrf.mxu0 }
 0x1a4   : > { %v9222_v13 = vpop.f32.mrf.mxu1  ;;  %9501 = vmatmul.mubr.msk.f32.gmra.mxu0 %vm339_vm0, %v2759_v12  ;;  %9557 = vmatmul.mubr.msk.f32.gmra.mxu1 %vm339_vm0, %v3149_v17 }
 0x1a5   : > { %v11639_v15 = vadd.f32 %v9222_v13, %v9166_v11  ;;  %9503 = vmatprep.mubr.msk.f32.mxu0 %vm339_vm0, %v2760_v54  ;;  %9559 = vmatprep.mubr.msk.f32.mxu1 %vm339_vm0, %v3150_v8  ;;  %v11643_v19 = vpop.f32.mrf.mxu0  ;;  %v3518_v11 = vld [vmem:[#allocation2 + $0x4a] sm:$0xff] }
 0x1a6   : > { %v11645_v20 = vpop.f32.mrf.mxu1 }
 0x1a7   : > { %v9169_v23 = vpop.f32.mrf.mxu0 }
 0x1a8   : > { %v9225_v25 = vpop.f32.mrf.mxu1  ;;  %9504 = vmatmul.mubr.msk.f32.gmra.mxu0 %vm339_vm0, %v2761_v41  ;;  %9560 = vmatmul.mubr.msk.f32.gmra.mxu1 %vm339_vm0, %v3151_v16 }
 0x1a9   : > { %v11649_v26 = vadd.f32 %v9225_v25, %v9169_v23  ;;  %9506 = vmatprep.mubr.msk.f32.mxu0 %vm339_vm0, %v2762_v42  ;;  %9562 = vmatprep.mubr.msk.f32.mxu1 %vm339_vm0, %v3152_v44  ;;  %v11653_v49 = vpop.f32.mrf.mxu0  ;;  %v3519_v42 = vld [vmem:[#allocation2 + $0x52] sm:$0xff]  ;;  %v3520_v25 = vld [vmem:[#allocation2 + $0x62] sm:$0xff] }
 0x1aa   : > { %v11655_v35 = vpop.f32.mrf.mxu1 }
 0x1ab   : > { %v9172_v61 = vpop.f32.mrf.mxu0 }
 0x1ac   : > { %v9228_v1 = vpop.f32.mrf.mxu1  ;;  %9507 = vmatmul.mubr.msk.f32.gmra.mxu0 %vm339_vm0, %v2763_v27  ;;  %9563 = vmatmul.mubr.msk.f32.gmra.mxu1 %vm339_vm0, %v3153_v28 }
 0x1ad   : > { %v11659_v39 = vadd.f32 %v9228_v1, %v9172_v61  ;;  %9509 = vmatprep.mubr.msk.f32.mxu0 %vm339_vm0, %v11353_v52  ;;  %9565 = vmatprep.mubr.msk.f32.mxu1 %vm339_vm0, %v11492_v48  ;;  %v11665_v32 = vpop.f32.mrf.mxu0  ;;  %v2767_v52 = vld [vmem:[#allocation2 + $0x1a0] sm:$0xff] }
 0x1ae   : > { %v11667_v3 = vpop.f32.mrf.mxu1  ;;  %v3157_v48 = vld [vmem:[#allocation2 + $0x1a1] sm:$0xff] }
 0x1af   : > { %v9175_v57 = vpop.f32.mrf.mxu0 }
 0x1b0   : > { %v9231_v46 = vpop.f32.mrf.mxu1  ;;  %9510 = vmatmul.mubr.msk.f32.gmra.mxu0 %vm339_vm0, %v11365_v4  ;;  %9566 = vmatmul.mubr.msk.f32.gmra.mxu1 %vm339_vm0, %v11502_v56  ;;  %v3517_v56 = vld [vmem:[#allocation2 + $0x3a] sm:$0xff] }
 0x1b1   : > { %v11673_v2 = vadd.f32 %v9231_v46, %v9175_v57  ;;  %9512 = vmatprep.mubr.msk.f32.mxu0 %vm339_vm0, %v2766_v37  ;;  %9568 = vmatprep.mubr.msk.f32.mxu1 %vm339_vm0, %v3156_v29  ;;  %v11677_v6 = vpop.f32.mrf.mxu0  ;;  %v3522_v46 = vld [vmem:[#allocation2 + $0x7a] sm:$0xff] }
 0x1b2   : > { %v11679_v36 = vpop.f32.mrf.mxu1 }
 0x1b3   : > { %v9178_v12 = vpop.f32.mrf.mxu0 }
 0x1b4   : > { %v9234_v17 = vpop.f32.mrf.mxu1  ;;  %9513 = vmatmul.mubr.msk.f32.gmra.mxu0 %vm339_vm0, %v2767_v52  ;;  %9569 = vmatmul.mubr.msk.f32.gmra.mxu1 %vm339_vm0, %v3157_v48 }
 0x1b5   : > { %v11683_v4 = vadd.f32 %v9234_v17, %v9178_v12  ;;  %9579 = vmatprep.mubr.msk.f32.mxu0 %vm339_vm0, %v3516_v5  ;;  %v11686_v54 = vpop.f32.mrf.mxu0 }
 0x1b6   : > { %v11688_v8 = vpop.f32.mrf.mxu1 }
 0x1b7   : > { %v9245_v13 = vpop.f32.mrf.mxu0 }
 0x1b8   : > { %9580 = vmatmul.mubr.msk.f32.vlgmr.msra.gmra.mxu0 %vm339_vm0, %v3517_v56  ;;  %v9301_v41 = vpop.f32.mrf.mxu1  ;;  %v1534_v16 = vadd.f32 %v9245_v13, %v11520_v14  ;;  %v3521_v14 = vld [vmem:[#allocation2 + $0x6a] sm:$0xff] }
 0x1b9   : > { %9582 = vmatprep.mubr.msk.f32.mxu0 %vm339_vm0, %v3518_v11  ;;  %v1374_v44 = vpop.f32.mrf.mxu0  ;;  %v3524_v11 = vld [vmem:[#allocation2 + $0x92] sm:$0xff] }
 0x1ba   : > { %v11693_v23 = vpop.f32.mrf.mxu1  ;;  %v11696_v27 = vadd.f32 %v1374_v44, %v11527_v40  ;;  %v11698_v28 = vadd.f32 %v9301_v41, %v1534_v16 }
 0x1bc   : > { %v9248_v61 = vpop.f32.mrf.mxu0  ;;  %9583 = vmatmul.mubr.msk.f32.gmra.mxu0 %vm339_vm0, %v3519_v42  ;;  %v9304_v1 = vpop.f32.mrf.mxu1 }
 0x1bd   : > { %v1536_v37 = vadd.f32 %v9248_v61, %v11533_v21  ;;  %9585 = vmatprep.mubr.msk.f32.mxu0 %vm339_vm0, %v3520_v25  ;;  %v3523_v21 = vld [vmem:[#allocation2 + $0x82] sm:$0xff]  ;;  %v3526_v61 = vld [vmem:[#allocation2 + $0xaa] sm:$0xff] }
 0x1be   : > { %v1384_v29 = vpop.f32.mrf.mxu0  ;;  %v11703_v57 = vpop.f32.mrf.mxu1 }
 0x1bf   : > { %v11706_v52 = vadd.f32 %v1384_v29, %v11539_v24  ;;  %v11708_v40 = vadd.f32 %v9304_v1, %v1536_v37 }
 0x1c0   : > { %v9251_v48 = vpop.f32.mrf.mxu0  ;;  %9586 = vmatmul.mubr.msk.f32.gmra.mxu0 %vm339_vm0, %v3521_v14  ;;  %v9307_v5 = vpop.f32.mrf.mxu1 }
 0x1c1   : > { %v1538_v12 = vadd.f32 %v9251_v48, %v11545_v47  ;;  %9588 = vmatprep.mubr.msk.f32.mxu0 %vm339_vm0, %v3522_v46  ;;  %v3525_v47 = vld [vmem:[#allocation2 + $0x9a] sm:$0xff] }
 0x1c2   : > { %v1394_v17 = vpop.f32.mrf.mxu0  ;;  %v11713_v56 = vpop.f32.mrf.mxu1  ;;  %v4170_v46 = vld [vmem:[#allocation10 + $0x38] sm:$0xff] }
 0x1c3   : > { %v11716_v13 = vadd.f32 %v1394_v17, %v11551_v59  ;;  %v11718_v24 = vadd.f32 %v9307_v5, %v1538_v12  ;;  %v3528_v12 = vld [vmem:[#allocation2 + $0xc2] sm:$0xff]  ;;  %9627 = vmatprep.subr.mxu1 %v4170_v46 }
 0x1c4   : > { %v9254_v41 = vpop.f32.mrf.mxu0  ;;  %9589 = vmatmul.mubr.msk.f32.gmra.mxu0 %vm339_vm0, %v3523_v21  ;;  %v9310_v16 = vpop.f32.mrf.mxu1  ;;  %9628 = vmatpush3.msra.mxu1 %v4170_v46  ;;  %v3532_v46 = vld [vmem:[#allocation2 + $0xf2] sm:$0xff] }
 0x1c5   : > { %v1540_v42 = vadd.f32 %v9254_v41, %v11557_v51  ;;  %9591 = vmatprep.mubr.msk.f32.mxu0 %vm339_vm0, %v3524_v11  ;;  %v3527_v51 = vld [vmem:[#allocation2 + $0xb2] sm:$0xff]  ;;  %v3529_v41 = vld [vmem:[#allocation2 + $0xca] sm:$0xff] }
 0x1c6   : > { %v1404_v44 = vpop.f32.mrf.mxu0  ;;  %v11723_v25 = vpop.f32.mrf.mxu1 }
 0x1c7   : > { %v11726_v1 = vadd.f32 %v1404_v44, %v11563_v30  ;;  %v11728_v59 = vadd.f32 %v9310_v16, %v1540_v42 }
 0x1c8   : > { %v9257_v37 = vpop.f32.mrf.mxu0  ;;  %9592 = vmatmul.mubr.msk.f32.gmra.mxu0 %vm339_vm0, %v3525_v47  ;;  %v9313_v14 = vpop.f32.mrf.mxu1  ;;  %v3530_v47 = vld [vmem:[#allocation2 + $0xda] sm:$0xff] }
 0x1c9   : > { %v1542_v29 = vadd.f32 %v9257_v37, %v11569_v55  ;;  %9594 = vmatprep.mubr.msk.f32.mxu0 %vm339_vm0, %v3526_v61 }
 0x1ca   : > { %v1414_v48 = vpop.f32.mrf.mxu0  ;;  %v11733_v5 = vpop.f32.mrf.mxu1 }
 0x1cb   : > { %v11736_v30 = vadd.f32 %v1414_v48, %v11574_v0  ;;  %v11738_v21 = vadd.f32 %v9313_v14, %v1542_v29 }
 0x1cc   : > { %v9260_v17 = vpop.f32.mrf.mxu0  ;;  %9595 = vmatmul.mubr.msk.f32.gmra.mxu0 %vm339_vm0, %v3527_v51  ;;  %v9316_v11 = vpop.f32.mrf.mxu1 }
 0x1cd   : > { %v1544_v55 = vadd.f32 %v9260_v17, %v11579_v7  ;;  %9597 = vmatprep.mubr.msk.f32.mxu0 %vm339_vm0, %v3528_v12  ;;  %v3531_v7 = vld [vmem:[#allocation2 + $0xe2] sm:$0xff] }
 0x1ce   : > { %v1424_v16 = vpop.f32.mrf.mxu0  ;;  %v11743_v42 = vpop.f32.mrf.mxu1 }
 0x1cf   : > { %v11746_v44 = vadd.f32 %v1424_v16, %v11584_v43  ;;  %v11748_v0 = vadd.f32 %v9316_v11, %v1544_v55  ;;  %v3534_v16 = vld [vmem:[#allocation2 + $0x10a] sm:$0xff] }
 0x1d0   : > { %v9263_v61 = vpop.f32.mrf.mxu0  ;;  %9598 = vmatmul.mubr.msk.f32.gmra.mxu0 %vm339_vm0, %v3529_v41  ;;  %v9319_v37 = vpop.f32.mrf.mxu1 }
 0x1d1   : > { %v1546_v14 = vadd.f32 %v9263_v61, %v11589_v10  ;;  %9600 = vmatprep.mubr.msk.f32.mxu0 %vm339_vm0, %v3530_v47  ;;  %v3533_v10 = vld [vmem:[#allocation2 + $0xfa] sm:$0xff] }
 0x1d2   : > { %v1434_v29 = vpop.f32.mrf.mxu0  ;;  %v11753_v51 = vpop.f32.mrf.mxu1 }
 0x1d3   : > { %v11756_v48 = vadd.f32 %v1434_v29, %v11594_v18  ;;  %v11758_v43 = vadd.f32 %v9319_v37, %v1546_v14  ;;  %v1097_v14 = vadd.f32 %v11615_v9, %v11613_v53  ;;  %v4169_v29 = vld [vmem:[#allocation10 + $0x30] sm:$0xff] }
 0x1d4   : > { %v9266_v12 = vpop.f32.mrf.mxu0  ;;  %9601 = vmatmul.mubr.msk.f32.gmra.mxu0 %vm339_vm0, %v3531_v7  ;;  %v9322_v17 = vpop.f32.mrf.mxu1  ;;  %v3535_v7 = vld [vmem:[#allocation2 + $0x112] sm:$0xff]  ;;  %9629 = vmatprep.subr.mxu1 %v4169_v29  ;;  %v3537_v9 = vld [vmem:[#allocation2 + $0x12a] sm:$0xff] }
 0x1d5   : > { %v1548_v11 = vadd.f32 %v9266_v12, %v11599_v22  ;;  %9603 = vmatprep.mubr.msk.f32.mxu0 %vm339_vm0, %v3532_v46  ;;  %9630 = vmatpush3.msra.mxu1 %v4169_v29 }
 0x1d6   : > { %v1444_v55 = vpop.f32.mrf.mxu0  ;;  %v11763_v41 = vpop.f32.mrf.mxu1 }
 0x1d7   : > { %v11766_v47 = vadd.f32 %v1444_v55, %v11604_v33  ;;  %v11768_v18 = vadd.f32 %v9322_v17, %v1548_v11  ;;  %v3536_v33 = vld [vmem:[#allocation2 + $0x122] sm:$0xff] }
 0x1d8   : > { %v9269_v61 = vpop.f32.mrf.mxu0  ;;  %9604 = vmatmul.mubr.msk.f32.gmra.mxu0 %vm339_vm0, %v3533_v10  ;;  %v9325_v37 = vpop.f32.mrf.mxu1 }
 0x1d9   : > { %v1550_v22 = vadd.f32 %v9269_v61, %v11609_v63  ;;  %9606 = vmatprep.mubr.msk.f32.mxu0 %vm339_vm0, %v3534_v16  ;;  %v3538_v61 = vld [vmem:[#allocation2 + $0x13a] sm:$0xff] }
 0x1da   : > { %v1454_v46 = vpop.f32.mrf.mxu0  ;;  %v11775_v12 = vpop.f32.mrf.mxu1 }
 0x1db   : > { %14019 = vst [vmem:[#allocation35_spill] sm:$0xff] %v11775_v12  ;;  %v11777_v17 = vadd.f32 %v1454_v46, %v1097_v14  ;;  %v11779_v11 = vadd.f32 %v9325_v37, %v1550_v22  ;;  %v3540_v46 = vld [vmem:[#allocation2 + $0x152] sm:$0xff] }
 0x1dc   : > { %v9272_v10 = vpop.f32.mrf.mxu0  ;;  %9607 = vmatmul.mubr.msk.f32.gmra.mxu0 %vm339_vm0, %v3535_v7  ;;  %v9328_v53 = vpop.f32.mrf.mxu1  ;;  %v3539_v7 = vld [vmem:[#allocation2 + $0x142] sm:$0xff] }
 0x1dd   : > { %14020 = vst [vmem:[#allocation36_spill] sm:$0xff] %v11777_v17  ;;  %v1552_v63 = vadd.f32 %v9272_v10, %v11619_v34  ;;  %9609 = vmatprep.mubr.msk.f32.mxu0 %vm339_vm0, %v3536_v33 }
 0x1de   : > { %v11784_v55 = vpop.f32.mrf.mxu0  ;;  %v11786_v16 = vpop.f32.mrf.mxu1 }
 0x1df   : > { %14021 = vst [vmem:[#allocation37_spill] sm:$0xff] %v11786_v16  ;;  %v11788_v12 = vadd.f32 %v9328_v53, %v1552_v63 }
 0x1e0   : > { %v9275_v14 = vpop.f32.mrf.mxu0  ;;  %9610 = vmatmul.mubr.msk.f32.gmra.mxu0 %vm339_vm0, %v3537_v9  ;;  %v9331_v37 = vpop.f32.mrf.mxu1  ;;  %v3541_v9 = vld [vmem:[#allocation2 + $0x15a] sm:$0xff] }
 0x1e1   : > { %v1554_v22 = vadd.f32 %v9275_v14, %v11629_v38  ;;  %9612 = vmatprep.mubr.msk.f32.mxu0 %vm339_vm0, %v3538_v61  ;;  %v3542_v14 = vld [vmem:[#allocation2 + $0x16a] sm:$0xff] }
 0x1e2   : > { %v11793_v34 = vpop.f32.mrf.mxu0  ;;  %v11795_v29 = vpop.f32.mrf.mxu1 }
 0x1e3   : > { %14022 = vst [vmem:[#allocation18_spill] sm:$0xff] %v11795_v29  ;;  %v11797_v33 = vadd.f32 %v9331_v37, %v1554_v22 }
 0x1e4   : > { %v9278_v10 = vpop.f32.mrf.mxu0  ;;  %9613 = vmatmul.mubr.msk.f32.gmra.mxu0 %vm339_vm0, %v3539_v7  ;;  %v9334_v53 = vpop.f32.mrf.mxu1  ;;  %v3543_v7 = vld [vmem:[#allocation2 + $0x172] sm:$0xff] }
 0x1e5   : > { %v1556_v63 = vadd.f32 %v9278_v10, %v11639_v15  ;;  %9615 = vmatprep.mubr.msk.f32.mxu0 %vm339_vm0, %v3540_v46  ;;  %v4168_v15 = vld [vmem:[#allocation10 + $0x28] sm:$0xff] }
 0x1e6   : > { %v11802_v38 = vpop.f32.mrf.mxu0  ;;  %v11804_v61 = vpop.f32.mrf.mxu1  ;;  %9631 = vmatprep.subr.mxu1 %v4168_v15 }
 0x1e7   : > { %14023 = vst [vmem:[#allocation19_spill] sm:$0xff] %v11802_v38  ;;  %14024 = vst [vmem:[#allocation20_spill] sm:$0xff] %v11804_v61  ;;  %v11806_v16 = vadd.f32 %v9334_v53, %v1556_v63  ;;  %9632 = vmatpush3.msra.mxu1 %v4168_v15 }
 0x1e8   : > { %v9281_v29 = vpop.f32.mrf.mxu0  ;;  %9616 = vmatmul.mubr.msk.f32.gmra.mxu0 %vm339_vm0, %v3541_v9  ;;  %v9337_v37 = vpop.f32.mrf.mxu1 }
 0x1e9   : > { %v1558_v22 = vadd.f32 %v9281_v29, %v11649_v26  ;;  %9618 = vmatprep.mubr.msk.f32.mxu0 %vm339_vm0, %v3542_v14  ;;  %v3546_v14 = vld [vmem:[#allocation2 + $0x19a] sm:$0xff] }
 0x1ea   : > { %v11811_v10 = vpop.f32.mrf.mxu0  ;;  %v11813_v46 = vpop.f32.mrf.mxu1 }
 0x1eb   : > { %14025 = vst [vmem:[#allocation21_spill] sm:$0xff] %v11811_v10  ;;  %14026 = vst [vmem:[#allocation22_spill] sm:$0xff] %v11813_v46  ;;  %v11815_v38 = vadd.f32 %v9337_v37, %v1558_v22  ;;  %v4131_v10 = vld [vmem:[#allocation10 + $0x8] sm:$0xff] }
 0x1ec   : > { %v9284_v53 = vpop.f32.mrf.mxu0  ;;  %9619 = vmatmul.mubr.msk.f32.gmra.mxu0 %vm339_vm0, %v3543_v7  ;;  %v9340_v63 = vpop.f32.mrf.mxu1 }
 0x1ed   : > { %v1560_v9 = vadd.f32 %v9284_v53, %v11659_v39  ;;  %9621 = vmatprep.mubr.msk.f32.mxu0 %vm339_vm0, %v11494_v50  ;;  %v3547_v39 = vld [vmem:[#allocation2 + $0x1a2] sm:$0xff] }
 0x1ee   : > { %v11821_v26 = vpop.f32.mrf.mxu0  ;;  %v11823_v29 = vpop.f32.mrf.mxu1 }
 0x1ef   : > { %14027 = vst [vmem:[#allocation23_spill] sm:$0xff] %v11821_v26  ;;  %14028 = vst [vmem:[#allocation24_spill] sm:$0xff] %v11823_v29  ;;  %v11825_v61 = vadd.f32 %v9340_v63, %v1560_v9  ;;  %v4167_v26 = vld [vmem:[#allocation10 + $0x20] sm:$0xff] }
 0x1f0   : > { %v9287_v46 = vpop.f32.mrf.mxu0  ;;  %9622 = vmatmul.mubr.msk.f32.gmra.mxu0 %vm339_vm0, %v11506_v58  ;;  %v9343_v37 = vpop.f32.mrf.mxu1  ;;  %9633 = vmatprep.subr.mxu1 %v4167_v26 }
 0x1f1   : > { %v1562_v22 = vadd.f32 %v9287_v46, %v11673_v2  ;;  %9624 = vmatprep.mubr.msk.f32.mxu0 %vm339_vm0, %v3546_v14  ;;  %9634 = vmatpush3.msra.mxu1 %v4167_v26 }
 0x1f2   : > { %v11831_v7 = vpop.f32.mrf.mxu0  ;;  %v11833_v50 = vpop.f32.mrf.mxu1 }
 0x1f3   : > { %14029 = vst [vmem:[#allocation25_spill] sm:$0xff] %v11831_v7  ;;  %14030 = vst [vmem:[#allocation26_spill] sm:$0xff] %v11833_v50  ;;  %v11835_v15 = vadd.f32 %v9343_v37, %v1562_v22 }
 0x1f4   : > { %v9290_v53 = vpop.f32.mrf.mxu0  ;;  %9625 = vmatmul.mubr.msk.f32.gmra.mxu0 %vm339_vm0, %v3547_v39  ;;  %v9346_v63 = vpop.f32.mrf.mxu1 }
 0x1f5   : > { %v1564_v9 = vadd.f32 %v9290_v53, %v11683_v4  ;;  %v4133_v53 = vld [vmem:[#allocation10 + $0x18] sm:$0xff] }
 0x1f6   : > { %v11839_v29 = vpop.f32.mrf.mxu0  ;;  %v11841_v58 = vpop.f32.mrf.mxu1  ;;  %9683 = vmatprep.subr.mxu0 %v4133_v53 }
 0x1f7   : > { %14031 = vst [vmem:[#allocation27_spill] sm:$0xff] %v11839_v29  ;;  %14032 = vst [vmem:[#allocation28_spill] sm:$0xff] %v11841_v58  ;;  %v11843_v2 = vadd.f32 %v9346_v63, %v1564_v9  ;;  %9684 = vmatpush3.msra.mxu0 %v4133_v53  ;;  %v4132_v9 = vld [vmem:[#allocation10 + $0x10] sm:$0xff]  ;;  %v4130_v53 = vld [vmem:[#allocation10] sm:$0xff] }
 0x1f8   : > { %v9357_v46 = vpop.f32.mrf.mxu0  ;;  %v11845_v14 = vpop.f32.mrf.mxu1  ;;  %9685 = vmatprep.subr.mxu0 %v4132_v9 }
 0x1f9   : > { %v11848_v7 = vadd.f32 %v9357_v46, %v11698_v28  ;;  %9686 = vmatpush3.msra.mxu0 %v4132_v9  ;;  %v4135_v9 = vld [vmem:[#allocation3 + $0x9] sm:$0xff] }
 0x1fa   : > { %v11850_v37 = vpop.f32.mrf.mxu0  ;;  %v11852_v22 = vpop.f32.mrf.mxu1  ;;  %9687 = vmatprep.subr.mxu0 %v4131_v10 }
 0x1fb   : > { %9688 = vmatpush3.msra.mxu0 %v4131_v10 }
 0x1fc   : > { %v9360_v39 = vpop.f32.mrf.mxu0  ;;  %v11854_v50 = vpop.f32.mrf.mxu1  ;;  %9689 = vmatprep.subr.mxu0 %v4130_v53 }
 0x1fd   : > { %14033 = vst [vmem:[#allocation29_spill] sm:$0xff] %v11854_v50  ;;  %v11857_v4 = vadd.f32 %v9360_v39, %v11708_v40  ;;  %v4098_v50 = vld [vmem:[#allocation3] sm:$0xff]  ;;  %9690 = vmatpush3.msra.mxu0 %v4130_v53 }
 0x1fe   : > { %v11859_v58 = vpop.f32.mrf.mxu0  ;;  %v11861_v63 = vpop.f32.mrf.mxu1  ;;  %9691 = vmatprep.mubr.msk.f32.mxu0 %vm339_vm0, %v4098_v50 }
 0x1ff   : > { %14034 = vst [vmem:[#allocation30_spill] sm:$0xff] %v11861_v63 }
 0x200   : > { %v9363_v28 = vpop.f32.mrf.mxu0  ;;  %v11863_v46 = vpop.f32.mrf.mxu1 }
 0x201   : > { %14035 = vst [vmem:[#allocation31_spill] sm:$0xff] %v11863_v46  ;;  %v11866_v29 = vadd.f32 %v9363_v28, %v11718_v24  ;;  %v4134_v46 = vld [vmem:[#allocation3 + $0x1] sm:$0xff] }
 0x202   : > { %v11868_v40 = vpop.f32.mrf.mxu0  ;;  %v11870_v39 = vpop.f32.mrf.mxu1  ;;  %9635 = vmatprep.mubr.msk.f32.mxu1 %vm339_vm0, %v4134_v46  ;;  %v4099_v28 = vld [vmem:[#allocation3 + $0x8] sm:$0xff] }
 0x203   : > { %14036 = vst [vmem:[#allocation32_spill] sm:$0xff] %v11866_v29  ;;  %14037 = vst [vmem:[#allocation33_spill] sm:$0xff] %v11870_v39  ;;  %9636 = vmatmul.mubr.msk.f32.vlgmr.msra.gmra.mxu1 %vm339_vm0, %v4135_v9  ;;  %9692 = vmatmul.mubr.msk.f32.vlgmr.msra.gmra.mxu0 %vm339_vm0, %v4099_v28 }
 0x204   : > { %v9366_v63 = vpop.f32.mrf.mxu0  ;;  %v11872_v17 = vpop.f32.mrf.mxu1 }
 0x205   : > { %14038 = vst [vmem:[#allocation34_spill] sm:$0xff] %v11872_v17  ;;  %v11875_v24 = vadd.f32 %v9366_v63, %v11728_v59 }
 0x206   : > { %v11878_v39 = vpop.f32.mrf.mxu0  ;;  %v11880_v29 = vpop.f32.mrf.mxu1 }
 0x207   : > { %14039 = vst [vmem:[#allocation38_spill] sm:$0xff] %v11875_v24  ;;  %14040 = vst [vmem:[#allocation39_spill] sm:$0xff] %v11880_v29 }
 0x208   : > { %v9369_v10 = vpop.f32.mrf.mxu0  ;;  %v11885_v26 = vpop.f32.mrf.mxu1 }
 0x209   : > { %14041 = vst [vmem:[#allocation40_spill] sm:$0xff] %v11885_v26  ;;  %v11888_v59 = vadd.f32 %v9369_v10, %v11738_v21  ;;  %v4849_v10 = vld [vmem:[#allocation10 + $0x58] sm:$0xff] }
 0x20a   : > { %v11890_v63 = vpop.f32.mrf.mxu0  ;;  %v11892_v46 = vpop.f32.mrf.mxu1  ;;  %9739 = vmatprep.subr.mxu1 %v4849_v10 }
 0x20b   : > { %14042 = vst [vmem:[#allocation41_spill] sm:$0xff] %v11888_v59  ;;  %14043 = vst [vmem:[#allocation42_spill] sm:$0xff] %v11892_v46  ;;  %9740 = vmatpush3.msra.mxu1 %v4849_v10 }
 0x20c   : > { %v9372_v53 = vpop.f32.mrf.mxu0  ;;  %v11894_v17 = vpop.f32.mrf.mxu1 }
 0x20d   : > { %14044 = vst [vmem:[#allocation43_spill] sm:$0xff] %v11894_v17  ;;  %v11897_v29 = vadd.f32 %v9372_v53, %v11748_v0 }
 0x20e   : > { %v11899_v50 = vpop.f32.mrf.mxu0  ;;  %v11901_v9 = vpop.f32.mrf.mxu1 }
 0x20f   : > { %14045 = vst [vmem:[#allocation44_spill] sm:$0xff] %v11897_v29  ;;  %14046 = vst [vmem:[#allocation45_spill] sm:$0xff] %v11899_v50 }
 0x210   : > { %14047 = vst [vmem:[#allocation46_spill] sm:$0xff] %v11901_v9  ;;  %v9375_v28 = vpop.f32.mrf.mxu0  ;;  %v11903_v24 = vpop.f32.mrf.mxu1 }
 0x211   : > { %14048 = vst [vmem:[#allocation47_spill] sm:$0xff] %v11903_v24  ;;  %v11906_v21 = vadd.f32 %v9375_v28, %v11758_v43 }
 0x212   : > { %v11908_v26 = vpop.f32.mrf.mxu0  ;;  %v11910_v46 = vpop.f32.mrf.mxu1 }
 0x213   : > { %14049 = vst [vmem:[#allocation48_spill] sm:$0xff] %v11906_v21  ;;  %14050 = vst [vmem:[#allocation49_spill] sm:$0xff] %v11908_v26 }
 0x214   : > { %14051 = vst [vmem:[#allocation50_spill] sm:$0xff] %v11910_v46  ;;  %v9378_v17 = vpop.f32.mrf.mxu0  ;;  %v11912_v0 = vpop.f32.mrf.mxu1 }
 0x215   : > { %14052 = vst [vmem:[#allocation51_spill] sm:$0xff] %v11912_v0  ;;  %v11915_v53 = vadd.f32 %v9378_v17, %v11768_v18 }
 0x216   : > { %v11917_v9 = vpop.f32.mrf.mxu0  ;;  %v11919_v29 = vpop.f32.mrf.mxu1 }
 0x217   : > { %14053 = vst [vmem:[#allocation52_spill] sm:$0xff] %v11915_v53  ;;  %14054 = vst [vmem:[#allocation53_spill] sm:$0xff] %v11917_v9 }
 0x218   : > { %14055 = vst [vmem:[#allocation54_spill] sm:$0xff] %v11919_v29  ;;  %v9381_v24 = vpop.f32.mrf.mxu0  ;;  %v11921_v43 = vpop.f32.mrf.mxu1 }
 0x219   : > { %14056 = vst [vmem:[#allocation55_spill] sm:$0xff] %v11921_v43  ;;  %v11924_v28 = vadd.f32 %v9381_v24, %v11779_v11  ;;  %v4848_v24 = vld [vmem:[#allocation10 + $0x50] sm:$0xff] }
 0x21a   : > { %v11926_v21 = vpop.f32.mrf.mxu0  ;;  %v11928_v46 = vpop.f32.mrf.mxu1  ;;  %9741 = vmatprep.subr.mxu1 %v4848_v24 }
 0x21b   : > { %14057 = vst [vmem:[#allocation56_spill] sm:$0xff] %v11924_v28  ;;  %14058 = vst [vmem:[#allocation57_spill] sm:$0xff] %v11926_v21  ;;  %9742 = vmatpush3.msra.mxu1 %v4848_v24 }
 0x21c   : > { %14059 = vst [vmem:[#allocation58_spill] sm:$0xff] %v11928_v46  ;;  %v9384_v10 = vpop.f32.mrf.mxu0  ;;  %v11930_v26 = vpop.f32.mrf.mxu1 }
 0x21d   : > { %14060 = vst [vmem:[#allocation59_spill] sm:$0xff] %v11930_v26  ;;  %v11933_v18 = vadd.f32 %v9384_v10, %v11788_v12 }
 0x21e   : > { %v11935_v17 = vpop.f32.mrf.mxu0  ;;  %v11937_v0 = vpop.f32.mrf.mxu1 }
 0x21f   : > { %14061 = vst [vmem:[#allocation60_spill] sm:$0xff] %v11933_v18  ;;  %14062 = vst [vmem:[#allocation61_spill] sm:$0xff] %v11935_v17 }
 0x220   : > { %14063 = vst [vmem:[#allocation62_spill] sm:$0xff] %v11937_v0  ;;  %v9387_v29 = vpop.f32.mrf.mxu0  ;;  %v11939_v53 = vpop.f32.mrf.mxu1 }
 0x221   : > { %14064 = vst [vmem:[#allocation63_spill] sm:$0xff] %v11939_v53  ;;  %v11942_v11 = vadd.f32 %v9387_v29, %v11797_v33 }
 0x222   : > { %v11944_v43 = vpop.f32.mrf.mxu0  ;;  %v11946_v46 = vpop.f32.mrf.mxu1 }
 0x223   : > { %14065 = vst [vmem:[#allocation64_spill] sm:$0xff] %v11942_v11  ;;  %14066 = vst [vmem:[#allocation65_spill] sm:$0xff] %v11944_v43 }
 0x224   : > { %14067 = vst [vmem:[#allocation66_spill] sm:$0xff] %v11946_v46  ;;  %v9390_v26 = vpop.f32.mrf.mxu0  ;;  %v11948_v12 = vpop.f32.mrf.mxu1 }
 0x225   : > { %14068 = vst [vmem:[#allocation67_spill] sm:$0xff] %v11948_v12  ;;  %v11951_v10 = vadd.f32 %v9390_v26, %v11806_v16 }
 0x226   : > { %v11953_v0 = vpop.f32.mrf.mxu0  ;;  %v11955_v18 = vpop.f32.mrf.mxu1 }
 0x227   : > { %14069 = vst [vmem:[#allocation68_spill] sm:$0xff] %v11951_v10  ;;  %14070 = vst [vmem:[#allocation69_spill] sm:$0xff] %v11953_v0  ;;  %v5236_v0 = vld [vmem:[#allocation10 + $0x60] sm:$0xff] }
 0x228   : > { %14071 = vst [vmem:[#allocation70_spill] sm:$0xff] %v11955_v18  ;;  %v9393_v53 = vpop.f32.mrf.mxu0  ;;  %v11957_v33 = vpop.f32.mrf.mxu1 }
 0x229   : > { %14072 = vst [vmem:[#allocation71_spill] sm:$0xff] %v11957_v33  ;;  %v11960_v29 = vadd.f32 %v9393_v53, %v11815_v38  ;;  %v4847_v53 = vld [vmem:[#allocation10 + $0x48] sm:$0xff] }
 0x22a   : > { %v11962_v11 = vpop.f32.mrf.mxu0  ;;  %v11964_v46 = vpop.f32.mrf.mxu1  ;;  %9743 = vmatprep.subr.mxu1 %v4847_v53 }
 0x22b   : > { %14073 = vst [vmem:[#allocation72_spill] sm:$0xff] %v11960_v29  ;;  %14074 = vst [vmem:[#allocation73_spill] sm:$0xff] %v11962_v11  ;;  %9744 = vmatpush3.msra.mxu1 %v4847_v53 }
 0x22c   : > { %14075 = vst [vmem:[#allocation74_spill] sm:$0xff] %v11964_v46  ;;  %v9396_v24 = vpop.f32.mrf.mxu0  ;;  %v11966_v43 = vpop.f32.mrf.mxu1 }
 0x22d   : > { %14076 = vst [vmem:[#allocation75_spill] sm:$0xff] %v11966_v43  ;;  %v11969_v16 = vadd.f32 %v9396_v24, %v11825_v61 }
 0x22e   : > { %v11971_v26 = vpop.f32.mrf.mxu0  ;;  %v11973_v12 = vpop.f32.mrf.mxu1 }
 0x22f   : > { %14077 = vst [vmem:[#allocation76_spill] sm:$0xff] %v11969_v16  ;;  %14078 = vst [vmem:[#allocation77_spill] sm:$0xff] %v11971_v26  ;;  %v5237_v26 = vld [vmem:[#allocation10 + $0x68] sm:$0xff] }
 0x230   : > { %14079 = vst [vmem:[#allocation78_spill] sm:$0xff] %v11973_v12  ;;  %v9399_v18 = vpop.f32.mrf.mxu0  ;;  %v11975_v10 = vpop.f32.mrf.mxu1 }
 0x231   : > { %14080 = vst [vmem:[#allocation79_spill] sm:$0xff] %v11975_v10  ;;  %v11978_v38 = vadd.f32 %v9399_v18, %v11835_v15 }
 0x232   : > { %v11980_v33 = vpop.f32.mrf.mxu0  ;;  %v11982_v46 = vpop.f32.mrf.mxu1 }
 0x233   : > { %14081 = vst [vmem:[#allocation80_spill] sm:$0xff] %v11978_v38  ;;  %14082 = vst [vmem:[#allocation81_spill] sm:$0xff] %v11980_v33 }
 0x234   : > { %14083 = vst [vmem:[#allocation82_spill] sm:$0xff] %v11982_v46  ;;  %v9402_v43 = vpop.f32.mrf.mxu0  ;;  %v11984_v61 = vpop.f32.mrf.mxu1 }
 0x235   : > { %14084 = vst [vmem:[#allocation83_spill] sm:$0xff] %v11984_v61  ;;  %v11987_v24 = vadd.f32 %v9402_v43, %v11843_v2  ;;  %v4846_v2 = vld [vmem:[#allocation10 + $0x40] sm:$0xff]  ;;  %v5239_v43 = vld [vmem:[#allocation10 + $0x78] sm:$0xff] }
 0x236   : > { %v11989_v12 = vpop.f32.mrf.mxu0  ;;  %v11991_v16 = vpop.f32.mrf.mxu1  ;;  %9745 = vmatprep.subr.mxu1 %v4846_v2  ;;  %9795 = vmatprep.subr.mxu0 %v5239_v43 }
 0x237   : > { %14085 = vst [vmem:[#allocation84_spill] sm:$0xff] %v11987_v24  ;;  %14086 = vst [vmem:[#allocation85_spill] sm:$0xff] %v11989_v12  ;;  %9746 = vmatpush3.msra.mxu1 %v4846_v2  ;;  %9796 = vmatpush3.msra.mxu0 %v5239_v43  ;;  %v5629_v2 = vld [vmem:[#allocation10 + $0x98] sm:$0xff] }
 0x238   : > { %14087 = vst [vmem:[#allocation86_spill] sm:$0xff] %v11991_v16  ;;  %v11993_v10 = vpop.f32.mrf.mxu0  ;;  %v11995_v15 = vpop.f32.mrf.mxu1  ;;  %v5238_v16 = vld [vmem:[#allocation10 + $0x70] sm:$0xff]  ;;  %9851 = vmatprep.subr.mxu1 %v5629_v2 }
 0x239   : > { %9797 = vmatprep.subr.mxu0 %v5238_v16 }
 0x23a   : > { %v11997_v18 = vpop.f32.mrf.mxu0  ;;  %v11999_v38 = vpop.f32.mrf.mxu1  ;;  %9798 = vmatpush3.msra.mxu0 %v5238_v16 }
 0x23b   : > { %9799 = vmatprep.subr.mxu0 %v5237_v26 }
 0x23c   : > { %v12001_v46 = vpop.f32.mrf.mxu0  ;;  %v12003_v53 = vpop.f32.mrf.mxu1  ;;  %9800 = vmatpush3.msra.mxu0 %v5237_v26 }
 0x23d   : > { %9801 = vmatprep.subr.mxu0 %v5236_v0 }
 0x23e   : > { %v12005_v61 = vpop.f32.mrf.mxu0  ;;  %v12009_v12 = vpop.f32.mrf.mxu1  ;;  %9802 = vmatpush3.msra.mxu0 %v5236_v0 }
 0x240   : > { %v12007_v24 = vpop.f32.mrf.mxu0  ;;  %v12015_v11 = vpop.f32.mrf.mxu1 }
 0x242   : > { %v12011_v33 = vpop.f32.mrf.mxu0  ;;  %v12021_v43 = vpop.f32.mrf.mxu1 }
 0x243   : > { %14090 = vst [vmem:[#allocation89_spill] sm:$0xff] %v12021_v43 }
 0x244   : > { %v12013_v29 = vpop.f32.mrf.mxu0  ;;  %v12027_v9 = vpop.f32.mrf.mxu1 }
 0x245   : > { %14093 = vst [vmem:[#allocation92_spill] sm:$0xff] %v12027_v9 }
 0x246   : > { %v12017_v17 = vpop.f32.mrf.mxu0  ;;  %v12033_v59 = vpop.f32.mrf.mxu1 }
 0x247   : > { %14088 = vst [vmem:[#allocation87_spill] sm:$0xff] %v12017_v17  ;;  %14096 = vst [vmem:[#allocation95_spill] sm:$0xff] %v12033_v59 }
 0x248   : > { %v12019_v28 = vpop.f32.mrf.mxu0 }
 0x249   : > { %14089 = vst [vmem:[#allocation88_spill] sm:$0xff] %v12019_v28  ;;  %v12039_v28 = vpop.f32.mrf.mxu1 }
 0x24a   : > { %v12023_v21 = vpop.f32.mrf.mxu0  ;;  %14099 = vst [vmem:[#allocation98_spill] sm:$0xff] %v12039_v28 }
 0x24b   : > { %14091 = vst [vmem:[#allocation90_spill] sm:$0xff] %v12023_v21  ;;  %v12045_v21 = vpop.f32.mrf.mxu1 }
 0x24c   : > { %v12025_v16 = vpop.f32.mrf.mxu0  ;;  %14102 = vst [vmem:[#allocation101_spill] sm:$0xff] %v12045_v21 }
 0x24d   : > { %14092 = vst [vmem:[#allocation91_spill] sm:$0xff] %v12025_v16 }
 0x24e   : > { %v12029_v50 = vpop.f32.mrf.mxu0 }
 0x24f   : > { %14094 = vst [vmem:[#allocation93_spill] sm:$0xff] %v12029_v50  ;;  %v12051_v50 = vpop.f32.mrf.mxu1 }
 0x250   : > { %v12031_v26 = vpop.f32.mrf.mxu0  ;;  %14105 = vst [vmem:[#allocation104_spill] sm:$0xff] %v12051_v50  ;;  %v3907_v50 = vlaneseq }
 0x251   : > { %14095 = vst [vmem:[#allocation94_spill] sm:$0xff] %v12031_v26 }
 0x252   : > { %v12035_v17 = vpop.f32.mrf.mxu0 }
 0x253   : > { %14097 = vst [vmem:[#allocation96_spill] sm:$0xff] %v12035_v17  ;;  %v12057_v17 = vpop.f32.mrf.mxu1 }
 0x254   : > { %v12037_v0 = vpop.f32.mrf.mxu0  ;;  %14108 = vst [vmem:[#allocation107_spill] sm:$0xff] %v12057_v17 }
 0x255   : > { %14098 = vst [vmem:[#allocation97_spill] sm:$0xff] %v12037_v0 }
 0x256   : > { %v12041_v43 = vpop.f32.mrf.mxu0 }
 0x257   : > { %14100 = vst [vmem:[#allocation99_spill] sm:$0xff] %v12041_v43  ;;  %v12063_v43 = vpop.f32.mrf.mxu1 }
 0x258   : > { %v12043_v2 = vpop.f32.mrf.mxu0  ;;  %14111 = vst [vmem:[#allocation110_spill] sm:$0xff] %v12063_v43  ;;  %v12082_v43 = vshrl.u32 %v3907_v50, 7 }
 0x259   : > { %14101 = vst [vmem:[#allocation100_spill] sm:$0xff] %v12043_v2 }
 0x25a   : > { %v12047_v16 = vpop.f32.mrf.mxu0  ;;  %14116 = vst [vmem:[#allocation115_spill] sm:$0xff] %v12082_v43 }
 0x25b   : > { %14103 = vst [vmem:[#allocation102_spill] sm:$0xff] %v12047_v16  ;;  %v12069_v16 = vpop.f32.mrf.mxu1 }
 0x25c   : > { %v12049_v9 = vpop.f32.mrf.mxu0 }
 0x25d   : > { %14104 = vst [vmem:[#allocation103_spill] sm:$0xff] %v12049_v9  ;;  %v12077_v17 = vpop.f32.mrf.mxu1 }
 0x25e   : > { %v12053_v26 = vpop.f32.mrf.mxu0 }
 0x25f   : > { %14106 = vst [vmem:[#allocation105_spill] sm:$0xff] %v12053_v26 }
 0x260   : > { %v12055_v59 = vpop.f32.mrf.mxu0 }
 0x261   : > { %14107 = vst [vmem:[#allocation106_spill] sm:$0xff] %v12055_v59  ;;  %v1923_v59 = vadd.f32 %v11693_v23, %v11696_v27  ;;  %v1137_v23 = vadd.f32 %v11655_v35, %v11653_v49  ;;  %v1931_v49 = vadd.f32 %v11733_v5, %v11736_v30 }
 0x262   : > { %v12059_v0 = vpop.f32.mrf.mxu0 }
 0x263   : > { %14109 = vst [vmem:[#allocation108_spill] sm:$0xff] %v12059_v0 }
 0x264   : > { %v12061_v28 = vpop.f32.mrf.mxu0 }
 0x265   : > { %14110 = vst [vmem:[#allocation109_spill] sm:$0xff] %v12061_v28  ;;  %v2313_v28 = vadd.f32 %v11850_v37, %v1923_v59  ;;  %v1157_v37 = vadd.f32 %v11679_v36, %v11677_v6  ;;  %v13942_v36 = vsub.s32 0, %v12082_v43 }
 0x266   : > { %v12065_v2 = vpop.f32.mrf.mxu0 }
 0x268   : > { %v12067_v21 = vpop.f32.mrf.mxu0 }
 0x269   : > { %14112 = vst [vmem:[#allocation111_spill] sm:$0xff] %v12067_v21  ;;  %v1107_v21 = vadd.f32 %v11625_v62, %v11623_v60  ;;  %v1925_v60 = vadd.f32 %v11703_v57, %v11706_v52  ;;  %v2704_v62 = vadd.f32 %v11845_v14, %v11848_v7 }
 0x26a   : > { %v12071_v9 = vpop.f32.mrf.mxu0 }
 0x26b   : > { %14113 = vst [vmem:[#allocation112_spill] sm:$0xff] %v12071_v9  ;;  %v1117_v9 = vadd.f32 %v11635_v45, %v11633_v31  ;;  %v12102_v31 = vpop.f32.mrf.mxu1  ;;  %v12106_v45 = vadd.f32 %v11688_v8, %v11686_v54  ;;  %v3095_v6 = vadd.f32 %v11993_v10, %v2704_v62  ;;  %v12122_v54 = vadd.f32 %v11743_v42, %v11746_v44  ;;  %v14124_v10 = vld [vmem:[#allocation18_spill] sm:$0xff] }
 0x26c   : > { %v12073_v26 = vpop.f32.mrf.mxu0  ;;  %v12126_v8 = vadd.f32 %v11753_v51, %v11756_v48  ;;  %v1551_v57 = vadd.f32 %v11784_v55, %v1107_v21  ;;  %v13941_v44 = vsub.s32 1, %v12082_v43  ;;  %v14118_v51 = vld [vmem:[#allocation36_spill] sm:$0xff]  ;;  %v14119_v48 = vld [vmem:[#allocation35_spill] sm:$0xff]  ;;  %v14123_v21 = vld [vmem:[#allocation37_spill] sm:$0xff] }
 0x26d   : > { %14114 = vst [vmem:[#allocation113_spill] sm:$0xff] %v12073_v26  ;;  %v1127_v26 = vadd.f32 %v11645_v20, %v11643_v19  ;;  %v1927_v19 = vadd.f32 %v11713_v56, %v11716_v13  ;;  %v1929_v20 = vadd.f32 %v11723_v25, %v11726_v1  ;;  %v1553_v52 = vadd.f32 %v11793_v34, %v1117_v9  ;;  %v3906_v13 = vld [vmem:[%s13910_s3] sm:$0x3]  ;;  %v14117_v1 = vld [vmem:[#allocation29_spill] sm:$0xff]  ;;  %v12142_v42 = vpop.f32.mrf.mxu1  ;;  %v14120_v34 = vld [vmem:[#allocation19_spill] sm:$0xff] }
 0x26e   : > { %v12079_v0 = vpop.f32.mrf.mxu0  ;;  %v12137_v25 = vadd.f32 %v11763_v41, %v11766_v47  ;;  %v2706_v5 = vadd.f32 %v14117_v1, %v11857_v4  ;;  %v12147_v55 = vadd.f32 %v14119_v48, %v14118_v51  ;;  %v3485_v59 = vadd.f32 %v11995_v15, %v3095_v6  ;;  %v14129_v1 = vld [vmem:[#allocation33_spill] sm:$0xff] }
 0x26f   : > { %14115 = vst [vmem:[#allocation114_spill] sm:$0xff] %v12079_v0  ;;  %v1147_v0 = vadd.f32 %v11667_v3, %v11665_v32  ;;  %v2703_v32 = vadd.f32 %v11852_v22, %v2313_v28  ;;  %v2315_v3 = vadd.f32 %v11859_v58, %v1925_v60  ;;  %v1555_v7 = vadd.f32 %v14120_v34, %v1127_v26  ;;  %v14121_v58 = vld [vmem:[#allocation21_spill] sm:$0xff]  ;;  %v14122_v22 = vld [vmem:[#allocation30_spill] sm:$0xff]  ;;  %v14125_v26 = vld [vmem:[#allocation23_spill] sm:$0xff] }
 0x270   : > { %v12092_v27 = vpop.f32.mrf.mxu0  ;;  %v1557_v14 = vadd.f32 %v14121_v58, %v1137_v23  ;;  %v2317_v41 = vadd.f32 %v11868_v40, %v1927_v19  ;;  %v3097_v50 = vadd.f32 %v12001_v46, %v2706_v5  ;;  %v12159_v9 = vrot.slane %v3906_v13, %v13942_v36  ;;  %v14126_v23 = vld [vmem:[#allocation32_spill] sm:$0xff]  ;;  %v14127_v60 = vld [vmem:[#allocation31_spill] sm:$0xff] }
 0x271   : > { %v3094_v30 = vadd.f32 %v11997_v18, %v2703_v32  ;;  %v2705_v4 = vadd.f32 %v14122_v22, %v2315_v3  ;;  %v12162_v28 = vadd.f32 %v14123_v21, %v1551_v57  ;;  %v12165_v18 = vadd.f32 %v14124_v10, %v1553_v52  ;;  %v12172_v32 = vpop.f32.mrf.mxu1  ;;  %v14128_v57 = vld [vmem:[#allocation20_spill] sm:$0xff] }
 0x272   : > { %v12114_v35 = vpop.f32.mrf.mxu0  ;;  %v1559_v40 = vadd.f32 %v14125_v26, %v1147_v0  ;;  %v2708_v62 = vadd.f32 %v14127_v60, %v14126_v23  ;;  %v12176_v6 = vrot.slane %v3906_v13, %v13941_v44  ;;  %v12179_v52 = vadd.f32 %v14128_v57, %v1555_v7  ;;  %v14131_v13 = vld [vmem:[#allocation24_spill] sm:$0xff]  ;;  %v14132_v7 = vld [vmem:[#allocation25_spill] sm:$0xff]  ;;  %v14135_v26 = vld [vmem:[#allocation39_spill] sm:$0xff] }
 0x273   : > { %v3484_v15 = vadd.f32 %v11999_v38, %v3094_v30  ;;  %v3096_v46 = vadd.f32 %v12005_v61, %v2705_v4  ;;  %v2707_v0 = vadd.f32 %v14129_v1, %v2317_v41  ;;  %v2319_v5 = vadd.f32 %v11878_v39, %v1929_v20  ;;  %v14130_v38 = vld [vmem:[#allocation22_spill] sm:$0xff]  ;;  %v14137_v57 = vld [vmem:[#allocation41_spill] sm:$0xff]  ;;  %v14138_v1 = vld [vmem:[#allocation40_spill] sm:$0xff] }
 0x274   : > { %v12130_v56 = vpop.f32.mrf.mxu0  ;;  %v3099_v51 = vadd.f32 %v12007_v24, %v2708_v62  ;;  %v12185_v30 = vadd.f32 %v14130_v38, %v1557_v14  ;;  %v3487_v61 = vadd.f32 %v12003_v53, %v3097_v50  ;;  %v12190_v22 = vadd.f32 %v14131_v13, %v1559_v40  ;;  %v14134_v41 = vld [vmem:[#allocation34_spill] sm:$0xff]  ;;  %v12197_v14 = vpop.f32.mrf.mxu1 }
 0x275   : > { %v1561_v4 = vadd.f32 %v14132_v7, %v1157_v37  ;;  %v3098_v39 = vadd.f32 %v12011_v33, %v2707_v0  ;;  %v3486_v20 = vadd.f32 %v12009_v12, %v3096_v46  ;;  %v2709_v40 = vadd.f32 %v14135_v26, %v2319_v5  ;;  %v14136_v46 = vld [vmem:[#allocation26_spill] sm:$0xff]  ;;  %v14139_v5 = vld [vmem:[#allocation89_spill] sm:$0xff] }
 0x276   : > { %v12152_v47 = vpop.f32.mrf.mxu0  ;;  %v2321_v23 = vadd.f32 %v11890_v63, %v1931_v49  ;;  %v3489_v37 = vadd.f32 %v12015_v11, %v3099_v51  ;;  %v2712_v0 = vadd.f32 %v14138_v1, %v14137_v57  ;;  %v14140_v63 = vld [vmem:[#allocation87_spill] sm:$0xff]  ;;  %v12214_v51 = vld [vmem:[#allocation10 + $0xb8] sm:$0xff]  ;;  %v14141_v13 = vld [vmem:[#allocation42_spill] sm:$0xff] }
 0x277   : > { %v3100_v49 = vadd.f32 %v14140_v63, %v2709_v40  ;;  %9907 = vmatprep.subr.mxu0 %v12214_v51  ;;  %v14145_v40 = vld [vmem:[#allocation27_spill] sm:$0xff]  ;;  %v14151_v63 = vld [vmem:[#allocation49_spill] sm:$0xff] }
 0x278   : > { %v9581_v19 = vpop.f32.mrf.mxu0  ;;  %v2711_v7 = vadd.f32 %v14141_v13, %v2321_v23  ;;  %v14146_v23 = vld [vmem:[#allocation44_spill] sm:$0xff] }
 0x279   : > { %v3875_v3 = vadd.f32 %v9581_v19, %v3485_v59  ;;  %v14133_v59 = vld [vmem:[#allocation38_spill] sm:$0xff] }
 0x27a   : > { %v3715_v48 = vpop.f32.mrf.mxu0  ;;  %v2710_v21 = vadd.f32 %v14134_v41, %v14133_v59  ;;  %v14143_v41 = vld [vmem:[#allocation92_spill] sm:$0xff] }
 0x27b   : > { %v3912_v34 = vmul.f32 %v12159_v9, %v3875_v3  ;;  %v3874_v58 = vadd.f32 %v3715_v48, %v3484_v15  ;;  %v12208_v3 = vadd.f32 %v14136_v46, %v1561_v4  ;;  %v3488_v48 = vadd.f32 %v14139_v5, %v3098_v39  ;;  %v14142_v4 = vld [vmem:[#allocation45_spill] sm:$0xff]  ;;  %v14144_v39 = vld [vmem:[#allocation88_spill] sm:$0xff] }
 0x27c   : > { %v9584_v24 = vpop.f32.mrf.mxu0  ;;  %v3101_v60 = vadd.f32 %v12013_v29, %v2710_v21  ;;  %v12216_v29 = vpop.f32.mrf.mxu1  ;;  %v2323_v59 = vadd.f32 %v14142_v4, %v12122_v54  ;;  %v14148_v54 = vld [vmem:[#allocation95_spill] sm:$0xff] }
 0x27d   : > { %v3948_v53 = vadd.f32 %v12176_v6, %v3912_v34  ;;  %v3911_v50 = vmul.f32 %v12159_v9, %v3874_v58  ;;  %v3877_v10 = vadd.f32 %v9584_v24, %v3487_v61  ;;  %v3103_v24 = vadd.f32 %v14144_v39, %v2712_v0  ;;  %v14154_v39 = vld [vmem:[#allocation28_spill] sm:$0xff] }
 0x27e   : > { %v3725_v62 = vpop.f32.mrf.mxu0  ;;  %v3491_v21 = vadd.f32 %v14143_v41, %v3101_v60  ;;  %v14149_v60 = vld [vmem:[#allocation90_spill] sm:$0xff]  ;;  %v12236_v46 = vpop.f32.mrf.mxu1 }
 0x27f   : > { %v3980_v33 = vmax.f32 %v3948_v53, 0.0  ;;  %v3947_v19 = vadd.f32 %v12176_v6, %v3911_v50  ;;  %v3914_v12 = vmul.f32 %v12159_v9, %v3877_v10  ;;  %v3876_v15 = vadd.f32 %v3725_v62, %v3486_v20  ;;  %v14147_v62 = vld [vmem:[#allocation43_spill] sm:$0xff] }
 0x280   : > { %v9587_v11 = vpop.f32.mrf.mxu0 }
 0x281   : > { %4067 = vst.msk [vmem:[#allocation3 + $0x21] sm:$0xff] %vm339_vm0, %v3980_v33  ;;  %v3979_v38 = vmax.f32 %v3947_v19, 0.0  ;;  %v3950_v61 = vadd.f32 %v12176_v6, %v3914_v12  ;;  %v3913_v34 = vmul.f32 %v12159_v9, %v3876_v15  ;;  %v3879_v58 = vadd.f32 %v9587_v11, %v3489_v37 }
 0x282   : > { %v3735_v20 = vpop.f32.mrf.mxu0  ;;  %v1563_v37 = vadd.f32 %v14145_v40, %v12106_v45  ;;  %v2714_v33 = vadd.f32 %v14147_v62, %v14146_v23  ;;  %v3490_v19 = vadd.f32 %v14148_v54, %v3100_v49  ;;  %v3102_v12 = vadd.f32 %v14149_v60, %v2711_v7  ;;  %v12256_v40 = vpop.f32.mrf.mxu1  ;;  %v14160_v60 = vld [vmem:[#allocation53_spill] sm:$0xff] }
 0x283   : > { %4066 = vst.msk [vmem:[#allocation3 + $0x19] sm:$0xff] %vm339_vm0, %v3979_v38  ;;  %v3982_v53 = vmax.f32 %v3950_v61, 0.0  ;;  %v3949_v50 = vadd.f32 %v12176_v6, %v3913_v34  ;;  %v3916_v10 = vmul.f32 %v12159_v9, %v3879_v58  ;;  %v3878_v26 = vadd.f32 %v3735_v20, %v3488_v48  ;;  %v14150_v48 = vld [vmem:[#allocation46_spill] sm:$0xff]  ;;  %v14153_v61 = vld [vmem:[#allocation91_spill] sm:$0xff] }
 0x284   : > { %v9590_v15 = vpop.f32.mrf.mxu0  ;;  %v2713_v45 = vadd.f32 %v14150_v48, %v2323_v59  ;;  %v2325_v11 = vadd.f32 %v14151_v63, %v12126_v8  ;;  %v14152_v38 = vld [vmem:[#allocation98_spill] sm:$0xff]  ;;  %v3105_v34 = vadd.f32 %v14153_v61, %v2714_v33  ;;  %v14155_v59 = vld [vmem:[#allocation48_spill] sm:$0xff]  ;;  %v14156_v20 = vld [vmem:[#allocation47_spill] sm:$0xff] }
 0x285   : > { %4069 = vst.msk [vmem:[#allocation3 + $0x39] sm:$0xff] %vm339_vm0, %v3982_v53  ;;  %v3981_v57 = vmax.f32 %v3949_v50, 0.0  ;;  %v3952_v1 = vadd.f32 %v12176_v6, %v3916_v10  ;;  %v3915_v0 = vmul.f32 %v12159_v9, %v3878_v26  ;;  %v3881_v5 = vadd.f32 %v9590_v15, %v3491_v21  ;;  %v14157_v8 = vld [vmem:[#allocation101_spill] sm:$0xff] }
 0x286   : > { %v3493_v49 = vadd.f32 %v14152_v38, %v3103_v24  ;;  %v3745_v58 = vpop.f32.mrf.mxu0  ;;  %v12250_v21 = vadd.f32 %v14154_v39, %v1563_v37  ;;  %v2716_v53 = vadd.f32 %v14156_v20, %v14155_v59  ;;  %v3492_v50 = vadd.f32 %v14157_v8, %v3102_v12  ;;  %v14158_v24 = vld [vmem:[#allocation93_spill] sm:$0xff]  ;;  %v14159_v37 = vld [vmem:[#allocation50_spill] sm:$0xff]  ;;  %v12289_v20 = vpop.f32.mrf.mxu1 }
 0x287   : > { %4068 = vst.msk [vmem:[#allocation3 + $0x31] sm:$0xff] %vm339_vm0, %v3981_v57  ;;  %v3984_v13 = vmax.f32 %v3952_v1, 0.0  ;;  %v3951_v7 = vadd.f32 %v12176_v6, %v3915_v0  ;;  %v3918_v4 = vmul.f32 %v12159_v9, %v3881_v5  ;;  %v3880_v41 = vadd.f32 %v3745_v58, %v3490_v19  ;;  %v14161_v57 = vld [vmem:[#allocation104_spill] sm:$0xff]  ;;  %v14162_v1 = vld [vmem:[#allocation94_spill] sm:$0xff]  ;;  %v14164_v58 = vld [vmem:[#allocation51_spill] sm:$0xff] }
 0x288   : > { %v3104_v10 = vadd.f32 %v14158_v24, %v2713_v45  ;;  %v9593_v26 = vpop.f32.mrf.mxu0  ;;  %v2715_v19 = vadd.f32 %v14159_v37, %v2325_v11  ;;  %v2327_v15 = vadd.f32 %v14160_v60, %v12137_v25  ;;  %v3495_v12 = vadd.f32 %v14161_v57, %v3105_v34  ;;  %v12279_v25 = vld [vmem:[#allocation3 + $0x21] sm:$0xff] }
 0x289   : > { %4071 = vst.msk [vmem:[#allocation3 + $0x51] sm:$0xff] %vm339_vm0, %v3984_v13  ;;  %v3983_v23 = vmax.f32 %v3951_v7, 0.0  ;;  %v3954_v62 = vadd.f32 %v12176_v6, %v3918_v4  ;;  %v3917_v33 = vmul.f32 %v12159_v9, %v3880_v41  ;;  %v3883_v54 = vadd.f32 %v9593_v26, %v3493_v49  ;;  %v14163_v34 = vld [vmem:[#allocation52_spill] sm:$0xff]  ;;  %v14165_v7 = vld [vmem:[#allocation107_spill] sm:$0xff]  ;;  %v14170_v37 = vld [vmem:[#allocation97_spill] sm:$0xff] }
 0x28a   : > { %v3107_v0 = vadd.f32 %v14162_v1, %v2716_v53  ;;  %v3755_v5 = vpop.f32.mrf.mxu0  ;;  %v12266_v48 = vld [vmem:[#allocation3 + $0x19] sm:$0xff]  ;;  %v2718_v13 = vadd.f32 %v14164_v58, %v14163_v34  ;;  %v3494_v4 = vadd.f32 %v14165_v7, %v3104_v10  ;;  %v14167_v10 = vld [vmem:[#allocation54_spill] sm:$0xff] }
 0x28b   : > { %v12268_v45 = vld [vmem:[#allocation3 + $0x18] sm:$0xff]  ;;  %v12270_v63 = vld [vmem:[#allocation3 + $0x20] sm:$0xff]  ;;  %4070 = vst.msk [vmem:[#allocation3 + $0x49] sm:$0xff] %vm339_vm0, %v3983_v23  ;;  %v3986_v38 = vmax.f32 %v3954_v62, 0.0  ;;  %v3953_v49 = vadd.f32 %v12176_v6, %v3917_v33  ;;  %v3920_v11 = vmul.f32 %v12159_v9, %v3883_v54  ;;  %v3882_v61 = vadd.f32 %v3755_v5, %v3492_v50  ;;  %9638 = vmatprep.mubr.msk.f32.mxu1 %vm339_vm0, %v12266_v48  ;;  %v14168_v23 = vld [vmem:[#allocation57_spill] sm:$0xff] }
 0x28c   : > { %9694 = vmatprep.mubr.msk.f32.mxu0 %vm339_vm0, %v12268_v45  ;;  %v14166_v41 = vld [vmem:[#allocation96_spill] sm:$0xff]  ;;  %v9596_v59 = vpop.f32.mrf.mxu0  ;;  %9639 = vmatmul.mubr.msk.f32.gmra.mxu1 %vm339_vm0, %v12279_v25  ;;  %v2717_v26 = vadd.f32 %v14167_v10, %v2327_v15  ;;  %v2329_v62 = vadd.f32 %v14168_v23, %v12147_v55  ;;  %v14169_v33 = vld [vmem:[#allocation110_spill] sm:$0xff]  ;;  %v14173_v58 = vld [vmem:[#allocation99_spill] sm:$0xff] }
 0x28d   : > { %v3106_v39 = vadd.f32 %v14166_v41, %v2715_v19  ;;  %9695 = vmatmul.mubr.msk.f32.gmra.mxu0 %vm339_vm0, %v12270_v63  ;;  %4073 = vst.msk [vmem:[#allocation3 + $0x69] sm:$0xff] %vm339_vm0, %v3986_v38  ;;  %v3985_v53 = vmax.f32 %v3953_v49, 0.0  ;;  %v3956_v8 = vadd.f32 %v12176_v6, %v3920_v11  ;;  %v3919_v50 = vmul.f32 %v12159_v9, %v3882_v61  ;;  %v12312_v55 = vld [vmem:[#allocation3 + $0x39] sm:$0xff] }
 0x28e   : > { %v3885_v24 = vadd.f32 %v9596_v59, %v3495_v12  ;;  %v3497_v54 = vadd.f32 %v14169_v33, %v3107_v0  ;;  %v3109_v19 = vadd.f32 %v14170_v37, %v2718_v13  ;;  %v3765_v60 = vpop.f32.mrf.mxu0  ;;  %v12299_v57 = vld [vmem:[#allocation3 + $0x31] sm:$0xff]  ;;  %v14171_v0 = vld [vmem:[#allocation56_spill] sm:$0xff]  ;;  %v3108_v13 = vadd.f32 %v14173_v58, %v2717_v26 }
 0x28f   : > { %v12301_v1 = vld [vmem:[#allocation3 + $0x30] sm:$0xff]  ;;  %v12303_v5 = vld [vmem:[#allocation3 + $0x38] sm:$0xff]  ;;  %4072 = vst.msk [vmem:[#allocation3 + $0x61] sm:$0xff] %vm339_vm0, %v3985_v53  ;;  %v3988_v38 = vmax.f32 %v3956_v8, 0.0  ;;  %v3955_v12 = vadd.f32 %v12176_v6, %v3919_v50  ;;  %v3884_v49 = vadd.f32 %v3765_v60, %v3494_v4  ;;  %9641 = vmatprep.mubr.msk.f32.mxu1 %vm339_vm0, %v12299_v57  ;;  %v3496_v34 = vadd.f32 %v12069_v16, %v3106_v39  ;;  %v12322_v4 = vpop.f32.mrf.mxu1  ;;  %v14175_v50 = vld [vmem:[#allocation61_spill] sm:$0xff] }
 0x290   : > { %v3922_v15 = vmul.f32 %v12159_v9, %v3885_v24  ;;  %9697 = vmatprep.mubr.msk.f32.mxu0 %vm339_vm0, %v12301_v1  ;;  %v14172_v11 = vld [vmem:[#allocation55_spill] sm:$0xff]  ;;  %v9599_v7 = vpop.f32.mrf.mxu0  ;;  %9642 = vmatmul.mubr.msk.f32.gmra.mxu1 %vm339_vm0, %v12312_v55  ;;  %v14174_v16 = vld [vmem:[#allocation58_spill] sm:$0xff]  ;;  %v2331_v24 = vadd.f32 %v14175_v50, %v12162_v28  ;;  %v3499_v10 = vadd.f32 %v12077_v17, %v3109_v19  ;;  %v14176_v26 = vld [vmem:[#allocation100_spill] sm:$0xff] }
 0x291   : > { %v2720_v61 = vadd.f32 %v14172_v11, %v14171_v0  ;;  %9698 = vmatmul.mubr.msk.f32.gmra.mxu0 %vm339_vm0, %v12303_v5  ;;  %4075 = vst.msk [vmem:[#allocation3 + $0x81] sm:$0xff] %vm339_vm0, %v3988_v38  ;;  %v3987_v41 = vmax.f32 %v3955_v12, 0.0  ;;  %v3921_v53 = vmul.f32 %v12159_v9, %v3884_v49  ;;  %v3887_v8 = vadd.f32 %v9599_v7, %v3497_v54  ;;  %v12345_v17 = vld [vmem:[#allocation3 + $0x51] sm:$0xff]  ;;  %v14177_v28 = vld [vmem:[#allocation60_spill] sm:$0xff] }
 0x292   : > { %v3958_v59 = vadd.f32 %v12176_v6, %v3922_v15  ;;  %v2719_v39 = vadd.f32 %v14174_v16, %v2329_v62  ;;  %v3775_v33 = vpop.f32.mrf.mxu0  ;;  %v12332_v37 = vld [vmem:[#allocation3 + $0x49] sm:$0xff]  ;;  %v14178_v19 = vld [vmem:[#allocation59_spill] sm:$0xff]  ;;  %v3498_v0 = vadd.f32 %v12102_v31, %v3108_v13 }
 0x293   : > { %v3111_v23 = vadd.f32 %v14176_v26, %v2720_v61  ;;  %v12334_v60 = vld [vmem:[#allocation3 + $0x48] sm:$0xff]  ;;  %v12336_v38 = vld [vmem:[#allocation3 + $0x50] sm:$0xff]  ;;  %4074 = vst.msk [vmem:[#allocation3 + $0x79] sm:$0xff] %vm339_vm0, %v3987_v41  ;;  %v3957_v54 = vadd.f32 %v12176_v6, %v3921_v53  ;;  %v3924_v62 = vmul.f32 %v12159_v9, %v3887_v8  ;;  %v3886_v15 = vadd.f32 %v3775_v33, %v3496_v34  ;;  %v12355_v34 = vpop.f32.mrf.mxu1  ;;  %v14182_v50 = vld [vmem:[#allocation103_spill] sm:$0xff] }
 0x294   : > { %v3990_v12 = vmax.f32 %v3958_v59, 0.0  ;;  %9644 = vmatprep.mubr.msk.f32.mxu1 %vm339_vm0, %v12332_v37  ;;  %9700 = vmatprep.mubr.msk.f32.mxu0 %vm339_vm0, %v12334_v60  ;;  %v2722_v49 = vadd.f32 %v14178_v19, %v14177_v28  ;;  %v14179_v11 = vld [vmem:[#allocation102_spill] sm:$0xff]  ;;  %v9602_v58 = vpop.f32.mrf.mxu0  ;;  %v14181_v8 = vld [vmem:[#allocation65_spill] sm:$0xff] }
 0x295   : > { %v3110_v61 = vadd.f32 %v14179_v11, %v2719_v39  ;;  %9645 = vmatmul.mubr.msk.f32.gmra.mxu1 %vm339_vm0, %v12345_v17  ;;  %9701 = vmatmul.mubr.msk.f32.gmra.mxu0 %vm339_vm0, %v12336_v38  ;;  %v3989_v7 = vmax.f32 %v3957_v54, 0.0  ;;  %v3960_v41 = vadd.f32 %v12176_v6, %v3924_v62  ;;  %v3923_v59 = vmul.f32 %v12159_v9, %v3886_v15  ;;  %v14180_v31 = vld [vmem:[#allocation62_spill] sm:$0xff]  ;;  %v14185_v11 = vld [vmem:[#allocation105_spill] sm:$0xff] }
 0x296   : > { %4077 = vst.msk [vmem:[#allocation3 + $0x99] sm:$0xff] %vm339_vm0, %v3990_v12  ;;  %v3889_v53 = vadd.f32 %v9602_v58, %v3499_v10  ;;  %v2721_v13 = vadd.f32 %v14180_v31, %v2331_v24  ;;  %v2333_v16 = vadd.f32 %v14181_v8, %v12165_v18  ;;  %v3501_v39 = vadd.f32 %v12142_v42, %v3111_v23  ;;  %v3785_v33 = vpop.f32.mrf.mxu0  ;;  %v12365_v28 = vld [vmem:[#allocation3 + $0x61] sm:$0xff]  ;;  %v12378_v42 = vld [vmem:[#allocation3 + $0x69] sm:$0xff]  ;;  %v14184_v23 = vld [vmem:[#allocation63_spill] sm:$0xff] }
 0x297   : > { %v3113_v26 = vadd.f32 %v14182_v50, %v2722_v49  ;;  %v12367_v19 = vld [vmem:[#allocation3 + $0x60] sm:$0xff]  ;;  %v12369_v12 = vld [vmem:[#allocation3 + $0x68] sm:$0xff]  ;;  %4076 = vst.msk [vmem:[#allocation3 + $0x91] sm:$0xff] %vm339_vm0, %v3989_v7  ;;  %v3992_v54 = vmax.f32 %v3960_v41, 0.0  ;;  %v3959_v10 = vadd.f32 %v12176_v6, %v3923_v59  ;;  %v3888_v62 = vadd.f32 %v3785_v33, %v3498_v0  ;;  %9647 = vmatprep.mubr.msk.f32.mxu1 %vm339_vm0, %v12365_v28  ;;  %v12388_v0 = vpop.f32.mrf.mxu1  ;;  %v14188_v33 = vld [vmem:[#allocation106_spill] sm:$0xff] }
 0x298   : > { %v3926_v24 = vmul.f32 %v12159_v9, %v3889_v53  ;;  %9703 = vmatprep.mubr.msk.f32.mxu0 %vm339_vm0, %v12367_v19  ;;  %v14183_v18 = vld [vmem:[#allocation64_spill] sm:$0xff]  ;;  %v3500_v49 = vadd.f32 %v12172_v32, %v3110_v61  ;;  %v3112_v58 = vadd.f32 %v14185_v11, %v2721_v13  ;;  %v9605_v7 = vpop.f32.mrf.mxu0  ;;  %v14186_v32 = vld [vmem:[#allocation66_spill] sm:$0xff]  ;;  %v14187_v13 = vld [vmem:[#allocation69_spill] sm:$0xff] }
 0x299   : > { %v2724_v15 = vadd.f32 %v14184_v23, %v14183_v18  ;;  %9648 = vmatmul.mubr.msk.f32.gmra.mxu1 %vm339_vm0, %v12378_v42  ;;  %9704 = vmatmul.mubr.msk.f32.gmra.mxu0 %vm339_vm0, %v12369_v12  ;;  %4079 = vst.msk [vmem:[#allocation3 + $0xb1] sm:$0xff] %vm339_vm0, %v3992_v54  ;;  %v3991_v41 = vmax.f32 %v3959_v10, 0.0  ;;  %v3925_v53 = vmul.f32 %v12159_v9, %v3888_v62 }
 0x29a   : > { %v3962_v59 = vadd.f32 %v12176_v6, %v3926_v24  ;;  %v3891_v31 = vadd.f32 %v9605_v7, %v3501_v39  ;;  %v2723_v61 = vadd.f32 %v14186_v32, %v2333_v16  ;;  %v2335_v8 = vadd.f32 %v14187_v13, %v12179_v52  ;;  %v3795_v23 = vpop.f32.mrf.mxu0  ;;  %v12398_v11 = vld [vmem:[#allocation3 + $0x79] sm:$0xff]  ;;  %v12411_v52 = vld [vmem:[#allocation3 + $0x81] sm:$0xff] }
 0x29b   : > { %v3503_v50 = vadd.f32 %v12197_v14, %v3113_v26  ;;  %v3115_v18 = vadd.f32 %v14188_v33, %v2724_v15  ;;  %v12400_v44 = vld [vmem:[#allocation3 + $0x78] sm:$0xff]  ;;  %v12402_v54 = vld [vmem:[#allocation3 + $0x80] sm:$0xff]  ;;  %4078 = vst.msk [vmem:[#allocation3 + $0xa9] sm:$0xff] %vm339_vm0, %v3991_v41  ;;  %v3961_v39 = vadd.f32 %v12176_v6, %v3925_v53  ;;  %v3890_v24 = vadd.f32 %v3795_v23, %v3500_v49  ;;  %v12421_v49 = vpop.f32.mrf.mxu1 }
 0x29c   : > { %v3994_v10 = vmax.f32 %v3962_v59, 0.0  ;;  %v3928_v16 = vmul.f32 %v12159_v9, %v3891_v31  ;;  %9650 = vmatprep.mubr.msk.f32.mxu1 %vm339_vm0, %v12398_v11  ;;  %9706 = vmatprep.mubr.msk.f32.mxu0 %vm339_vm0, %v12400_v44  ;;  %v14189_v14 = vld [vmem:[#allocation68_spill] sm:$0xff]  ;;  %v14190_v26 = vld [vmem:[#allocation67_spill] sm:$0xff]  ;;  %v3502_v15 = vadd.f32 %v12216_v29, %v3112_v58  ;;  %v9608_v59 = vpop.f32.mrf.mxu0  ;;  %v14192_v29 = vld [vmem:[#allocation70_spill] sm:$0xff] }
 0x29d   : > { %v2726_v62 = vadd.f32 %v14190_v26, %v14189_v14  ;;  %v14191_v7 = vld [vmem:[#allocation108_spill] sm:$0xff]  ;;  %9651 = vmatmul.mubr.msk.f32.gmra.mxu1 %vm339_vm0, %v12411_v52  ;;  %9707 = vmatmul.mubr.msk.f32.gmra.mxu0 %vm339_vm0, %v12402_v54  ;;  %v3993_v53 = vmax.f32 %v3961_v39, 0.0  ;;  %v3927_v32 = vmul.f32 %v12159_v9, %v3890_v24  ;;  %v3893_v13 = vadd.f32 %v9608_v59, %v3503_v50  ;;  %v14194_v14 = vld [vmem:[#allocation109_spill] sm:$0xff] }
 0x29e   : > { %v3114_v41 = vadd.f32 %v14191_v7, %v2723_v61  ;;  %4081 = vst.msk [vmem:[#allocation3 + $0xc9] sm:$0xff] %vm339_vm0, %v3994_v10  ;;  %v3964_v31 = vadd.f32 %v12176_v6, %v3928_v16  ;;  %v2725_v58 = vadd.f32 %v14192_v29, %v2335_v8  ;;  %v14193_v61 = vld [vmem:[#allocation73_spill] sm:$0xff]  ;;  %v3505_v23 = vadd.f32 %v12236_v46, %v3115_v18  ;;  %v3805_v7 = vpop.f32.mrf.mxu0  ;;  %v12431_v36 = vld [vmem:[#allocation3 + $0x91] sm:$0xff]  ;;  %v14196_v46 = vld [vmem:[#allocation72_spill] sm:$0xff] }
 0x29f   : > { %v2337_v33 = vadd.f32 %v14193_v61, %v12185_v30  ;;  %v3117_v26 = vadd.f32 %v14194_v14, %v2726_v62  ;;  %v12433_v43 = vld [vmem:[#allocation3 + $0x90] sm:$0xff]  ;;  %v12435_v10 = vld [vmem:[#allocation3 + $0x98] sm:$0xff]  ;;  %4080 = vst.msk [vmem:[#allocation3 + $0xc1] sm:$0xff] %vm339_vm0, %v3993_v53  ;;  %v3963_v50 = vadd.f32 %v12176_v6, %v3927_v32  ;;  %v3930_v8 = vmul.f32 %v12159_v9, %v3893_v13 }
 0x2a0   : > { %v3996_v39 = vmax.f32 %v3964_v31, 0.0  ;;  %v3892_v16 = vadd.f32 %v3805_v7, %v3502_v15  ;;  %9653 = vmatprep.mubr.msk.f32.mxu1 %vm339_vm0, %v12431_v36  ;;  %9709 = vmatprep.mubr.msk.f32.mxu0 %vm339_vm0, %v12433_v43  ;;  %v12444_v30 = vld [vmem:[#allocation3 + $0x99] sm:$0xff]  ;;  %v3504_v62 = vadd.f32 %v12256_v40, %v3114_v41  ;;  %v3116_v59 = vadd.f32 %v12065_v2, %v2725_v58  ;;  %v9611_v53 = vpop.f32.mrf.mxu0  ;;  %v12454_v15 = vpop.f32.mrf.mxu1  ;;  %v14198_v40 = vld [vmem:[#allocation74_spill] sm:$0xff]  ;;  %v14199_v2 = vld [vmem:[#allocation77_spill] sm:$0xff] }
 0x2a1   : > { %14195 = vst [vmem:[#allocation29_spill] sm:$0xff] %v12444_v30  ;;  %v14197_v18 = vld [vmem:[#allocation71_spill] sm:$0xff]  ;;  %9654 = vmatmul.mubr.msk.f32.gmra.mxu1 %vm339_vm0, %v12444_v30  ;;  %9710 = vmatmul.mubr.msk.f32.gmra.mxu0 %vm339_vm0, %v12435_v10  ;;  %v3995_v31 = vmax.f32 %v3963_v50, 0.0  ;;  %v3966_v32 = vadd.f32 %v12176_v6, %v3930_v8  ;;  %v3895_v29 = vadd.f32 %v9611_v53, %v3505_v23  ;;  %v14205_v53 = vld [vmem:[#allocation112_spill] sm:$0xff] }
 0x2a2   : > { %v2728_v24 = vadd.f32 %v14197_v18, %v14196_v46  ;;  %4083 = vst.msk [vmem:[#allocation3 + $0xe1] sm:$0xff] %vm339_vm0, %v3996_v39  ;;  %v3929_v13 = vmul.f32 %v12159_v9, %v3892_v16  ;;  %v2727_v41 = vadd.f32 %v14198_v40, %v2337_v33  ;;  %v2339_v58 = vadd.f32 %v14199_v2, %v12190_v22  ;;  %v14200_v14 = vld [vmem:[#allocation111_spill] sm:$0xff]  ;;  %v3815_v46 = vpop.f32.mrf.mxu0  ;;  %v12464_v18 = vld [vmem:[#allocation3 + $0xa9] sm:$0xff] }
 0x2a3   : > { %v3507_v61 = vadd.f32 %v12289_v20, %v3117_v26  ;;  %14201 = vst [vmem:[#allocation36_spill] sm:$0xff] %v12464_v18  ;;  %v12466_v30 = vld [vmem:[#allocation3 + $0xa8] sm:$0xff]  ;;  %v12468_v39 = vld [vmem:[#allocation3 + $0xb0] sm:$0xff]  ;;  %4082 = vst.msk [vmem:[#allocation3 + $0xd9] sm:$0xff] %vm339_vm0, %v3995_v31  ;;  %v3998_v50 = vmax.f32 %v3966_v32, 0.0  ;;  %v3932_v33 = vmul.f32 %v12159_v9, %v3895_v29  ;;  %v3894_v8 = vadd.f32 %v3815_v46, %v3504_v62  ;;  %v12487_v62 = vpop.f32.mrf.mxu1 }
 0x2a4   : > { %v3119_v7 = vadd.f32 %v14200_v14, %v2728_v24  ;;  %v3965_v23 = vadd.f32 %v12176_v6, %v3929_v13  ;;  %9656 = vmatprep.mubr.msk.f32.mxu1 %vm339_vm0, %v12464_v18  ;;  %9712 = vmatprep.mubr.msk.f32.mxu0 %vm339_vm0, %v12466_v30  ;;  %v12477_v22 = vld [vmem:[#allocation3 + $0xb1] sm:$0xff]  ;;  %v14203_v20 = vld [vmem:[#allocation76_spill] sm:$0xff]  ;;  %v3506_v24 = vadd.f32 %v12322_v4, %v3116_v59  ;;  %v9614_v32 = vpop.f32.mrf.mxu0 }
 0x2a5   : > { %14202 = vst [vmem:[#allocation35_spill] sm:$0xff] %v12477_v22  ;;  %v14204_v26 = vld [vmem:[#allocation75_spill] sm:$0xff]  ;;  %v3118_v31 = vadd.f32 %v14205_v53, %v2727_v41  ;;  %9657 = vmatmul.mubr.msk.f32.gmra.mxu1 %vm339_vm0, %v12477_v22  ;;  %9713 = vmatmul.mubr.msk.f32.gmra.mxu0 %vm339_vm0, %v12468_v39  ;;  %4085 = vst.msk [vmem:[#allocation3 + $0xf9] sm:$0xff] %vm339_vm0, %v3998_v50  ;;  %v3968_v29 = vadd.f32 %v12176_v6, %v3932_v33  ;;  %v14206_v4 = vld [vmem:[#allocation78_spill] sm:$0xff] }
 0x2a6   : > { %v2730_v16 = vadd.f32 %v14204_v26, %v14203_v20  ;;  %v3997_v13 = vmax.f32 %v3965_v23, 0.0  ;;  %v3931_v40 = vmul.f32 %v12159_v9, %v3894_v8  ;;  %v3897_v2 = vadd.f32 %v9614_v32, %v3507_v61  ;;  %v14207_v41 = vld [vmem:[#allocation81_spill] sm:$0xff]  ;;  %v3825_v53 = vpop.f32.mrf.mxu0  ;;  %v12499_v18 = vld [vmem:[#allocation3 + $0xc0] sm:$0xff]  ;;  %v14212_v32 = vld [vmem:[#allocation114_spill] sm:$0xff] }
 0x2a7   : > { %v2729_v59 = vadd.f32 %v14206_v4, %v2339_v58  ;;  %v2341_v14 = vadd.f32 %v14207_v41, %v12208_v3  ;;  %v3509_v46 = vadd.f32 %v12355_v34, %v3119_v7  ;;  %v14208_v20 = vld [vmem:[#allocation113_spill] sm:$0xff]  ;;  %v4000_v23 = vmax.f32 %v3968_v29, 0.0  ;;  %9715 = vmatprep.mubr.msk.f32.mxu0 %vm339_vm0, %v12499_v18  ;;  %v14210_v34 = vld [vmem:[#allocation80_spill] sm:$0xff]  ;;  %v14211_v7 = vld [vmem:[#allocation79_spill] sm:$0xff] }
 0x2a8   : > { %v3121_v26 = vadd.f32 %v14208_v20, %v2730_v16  ;;  %v12497_v22 = vld [vmem:[#allocation3 + $0xc1] sm:$0xff]  ;;  %4084 = vst.msk [vmem:[#allocation3 + $0xf1] sm:$0xff] %vm339_vm0, %v3997_v13  ;;  %v3967_v61 = vadd.f32 %v12176_v6, %v3931_v40  ;;  %v3934_v58 = vmul.f32 %v12159_v9, %v3897_v2  ;;  %v3896_v33 = vadd.f32 %v3825_v53, %v3506_v24  ;;  %v12510_v3 = vld [vmem:[#allocation3 + $0xc9] sm:$0xff]  ;;  %v9617_v29 = vpop.f32.mrf.mxu0  ;;  %v3465_v24 = vpop.f32.mrf.mxu1 }
 0x2a9   : > { %v12501_v50 = vld [vmem:[#allocation3 + $0xc8] sm:$0xff]  ;;  %9659 = vmatprep.mubr.msk.f32.mxu1 %vm339_vm0, %v12497_v22  ;;  %14209 = vst [vmem:[#allocation19_spill] sm:$0xff] %v12510_v3  ;;  %v2732_v8 = vadd.f32 %v14211_v7, %v14210_v34  ;;  %v3508_v16 = vadd.f32 %v12388_v0, %v3118_v31  ;;  %v3120_v13 = vadd.f32 %v14212_v32, %v2729_v59  ;;  %4087 = vst.msk [vmem:[#allocation3 + $0x111] sm:$0xff] %vm339_vm0, %v4000_v23  ;;  %v14213_v20 = vld [vmem:[#allocation82_spill] sm:$0xff] }
 0x2aa   : > { %9660 = vmatmul.mubr.msk.f32.gmra.mxu1 %vm339_vm0, %v12510_v3  ;;  %9716 = vmatmul.mubr.msk.f32.gmra.mxu0 %vm339_vm0, %v12501_v50  ;;  %v3999_v40 = vmax.f32 %v3967_v61, 0.0  ;;  %v3970_v2 = vadd.f32 %v12176_v6, %v3934_v58  ;;  %v3933_v4 = vmul.f32 %v12159_v9, %v3896_v33  ;;  %v3899_v41 = vadd.f32 %v9617_v29, %v3509_v46  ;;  %v14214_v31 = vld [vmem:[#allocation85_spill] sm:$0xff]  ;;  %v3835_v7 = vpop.f32.mrf.mxu0  ;;  %v12528_v32 = vld [vmem:[#allocation3 + $0xd9] sm:$0xff] }
 0x2ab   : > { %v2731_v0 = vadd.f32 %v14213_v20, %v2341_v14  ;;  %v2343_v59 = vadd.f32 %v14214_v31, %v12250_v21  ;;  %v3511_v53 = vadd.f32 %v12421_v49, %v3121_v26  ;;  %v3123_v34 = vadd.f32 %v12092_v27, %v2732_v8  ;;  %v12530_v3 = vld [vmem:[#allocation3 + $0xd8] sm:$0xff]  ;;  %v12532_v23 = vld [vmem:[#allocation3 + $0xe0] sm:$0xff]  ;;  %9662 = vmatprep.mubr.msk.f32.mxu1 %vm339_vm0, %v12528_v32  ;;  %v14217_v20 = vld [vmem:[#allocation86_spill] sm:$0xff] }
 0x2ac   : > { %4086 = vst.msk [vmem:[#allocation3 + $0x109] sm:$0xff] %vm339_vm0, %v3999_v40  ;;  %v4002_v61 = vmax.f32 %v3970_v2, 0.0  ;;  %v3969_v46 = vadd.f32 %v12176_v6, %v3933_v4  ;;  %v3936_v14 = vmul.f32 %v12159_v9, %v3899_v41  ;;  %v3898_v58 = vadd.f32 %v3835_v7, %v3508_v16  ;;  %9718 = vmatprep.mubr.msk.f32.mxu0 %vm339_vm0, %v12530_v3  ;;  %v12541_v27 = vld [vmem:[#allocation3 + $0xe1] sm:$0xff]  ;;  %v14216_v49 = vld [vmem:[#allocation83_spill] sm:$0xff]  ;;  %v9620_v29 = vpop.f32.mrf.mxu0  ;;  %v9570_v16 = vpop.f32.mrf.mxu1 }
 0x2ad   : > { %v14215_v21 = vld [vmem:[#allocation84_spill] sm:$0xff]  ;;  %v3510_v33 = vadd.f32 %v12454_v15, %v3120_v13  ;;  %v3122_v8 = vadd.f32 %v12114_v35, %v2731_v0  ;;  %v3901_v41 = vadd.f32 %v9620_v29, %v3511_v53  ;;  %v2733_v15 = vadd.f32 %v14217_v20, %v2343_v59 }
 0x2ae   : > { %v2734_v26 = vadd.f32 %v14216_v49, %v14215_v21  ;;  %9663 = vmatmul.mubr.msk.f32.gmra.mxu1 %vm339_vm0, %v12541_v27  ;;  %9719 = vmatmul.mubr.msk.f32.gmra.mxu0 %vm339_vm0, %v12532_v23  ;;  %4089 = vst.msk [vmem:[#allocation3 + $0x129] sm:$0xff] %vm339_vm0, %v4002_v61  ;;  %v4001_v40 = vmax.f32 %v3969_v46, 0.0  ;;  %v3972_v2 = vadd.f32 %v12176_v6, %v3936_v14  ;;  %v3845_v0 = vpop.f32.mrf.mxu0 }
 0x2af   : > { %v3935_v4 = vmul.f32 %v12159_v9, %v3898_v58  ;;  %v3513_v35 = vadd.f32 %v12487_v62, %v3123_v34  ;;  %v12557_v31 = vld [vmem:[#allocation3 + $0xf1] sm:$0xff]  ;;  %v3938_v53 = vmul.f32 %v12159_v9, %v3901_v41  ;;  %v3900_v14 = vadd.f32 %v3845_v0, %v3510_v33  ;;  %v3475_v58 = vpop.f32.mrf.mxu1 }
 0x2b0   : > { %v3125_v13 = vadd.f32 %v12130_v56, %v2734_v26  ;;  %v12559_v7 = vld [vmem:[#allocation3 + $0xf0] sm:$0xff]  ;;  %v12561_v21 = vld [vmem:[#allocation3 + $0xf8] sm:$0xff]  ;;  %4088 = vst.msk [vmem:[#allocation3 + $0x121] sm:$0xff] %vm339_vm0, %v4001_v40  ;;  %v4004_v61 = vmax.f32 %v3972_v2, 0.0  ;;  %9665 = vmatprep.mubr.msk.f32.mxu1 %vm339_vm0, %v12557_v31  ;;  %v3512_v62 = vadd.f32 %v3465_v24, %v3122_v8  ;;  %v3124_v59 = vadd.f32 %v12152_v47, %v2733_v15  ;;  %v9623_v34 = vpop.f32.mrf.mxu0 }
 0x2b1   : > { %v3971_v46 = vadd.f32 %v12176_v6, %v3935_v4  ;;  %9721 = vmatprep.mubr.msk.f32.mxu0 %vm339_vm0, %v12559_v7  ;;  %v12570_v56 = vld [vmem:[#allocation3 + $0xf9] sm:$0xff]  ;;  %v3974_v26 = vadd.f32 %v12176_v6, %v3938_v53  ;;  %v3937_v33 = vmul.f32 %v12159_v9, %v3900_v14  ;;  %v3903_v29 = vadd.f32 %v9623_v34, %v3513_v35 }
 0x2b2   : > { %9666 = vmatmul.mubr.msk.f32.gmra.mxu1 %vm339_vm0, %v12570_v56  ;;  %9722 = vmatmul.mubr.msk.f32.gmra.mxu0 %vm339_vm0, %v12561_v21  ;;  %4091 = vst.msk [vmem:[#allocation3 + $0x141] sm:$0xff] %vm339_vm0, %v4004_v61  ;;  %v3515_v40 = vadd.f32 %v9570_v16, %v3125_v13  ;;  %v3855_v24 = vpop.f32.mrf.mxu0  ;;  %v12593_v16 = vld [vmem:[#allocation3 + $0x111] sm:$0xff]  ;;  %v3514_v35 = vadd.f32 %v3475_v58, %v3124_v59 }
 0x2b3   : > { %v4003_v49 = vmax.f32 %v3971_v46, 0.0  ;;  %v12580_v8 = vld [vmem:[#allocation3 + $0x109] sm:$0xff]  ;;  %v4006_v4 = vmax.f32 %v3974_v26, 0.0  ;;  %v3973_v41 = vadd.f32 %v12176_v6, %v3937_v33  ;;  %v3940_v20 = vmul.f32 %v12159_v9, %v3903_v29 }
 0x2b4   : > { %v12582_v47 = vld [vmem:[#allocation3 + $0x108] sm:$0xff]  ;;  %v12584_v2 = vld [vmem:[#allocation3 + $0x110] sm:$0xff]  ;;  %v3902_v15 = vadd.f32 %v3855_v24, %v3512_v62  ;;  %9668 = vmatprep.mubr.msk.f32.mxu1 %vm339_vm0, %v12580_v8  ;;  %v9626_v13 = vpop.f32.mrf.mxu0 }
 0x2b5   : > { %14218 = vst [vmem:[#allocation21_spill] sm:$0xff] %v12582_v47  ;;  %14219 = vst [vmem:[#allocation30_spill] sm:$0xff] %v12584_v2  ;;  %9724 = vmatprep.mubr.msk.f32.mxu0 %vm339_vm0, %v12582_v47  ;;  %v4005_v0 = vmax.f32 %v3973_v41, 0.0  ;;  %v3976_v61 = vadd.f32 %v12176_v6, %v3940_v20  ;;  %v3905_v53 = vadd.f32 %v9626_v13, %v3515_v40  ;;  %v12615_v29 = vld [vmem:[#allocation3 + $0x129] sm:$0xff] }
 0x2b6   : > { %4090 = vst.msk [vmem:[#allocation3 + $0x139] sm:$0xff] %vm339_vm0, %v4003_v49  ;;  %9669 = vmatmul.mubr.msk.f32.gmra.mxu1 %vm339_vm0, %v12593_v16  ;;  %9725 = vmatmul.mubr.msk.f32.gmra.mxu0 %vm339_vm0, %v12584_v2  ;;  %4093 = vst.msk [vmem:[#allocation3 + $0x159] sm:$0xff] %vm339_vm0, %v4006_v4  ;;  %v3939_v46 = vmul.f32 %v12159_v9, %v3902_v15  ;;  %v3865_v14 = vpop.f32.mrf.mxu0 }
 0x2b7   : > { %v12602_v62 = vld [vmem:[#allocation3 + $0x121] sm:$0xff]  ;;  %4092 = vst.msk [vmem:[#allocation3 + $0x151] sm:$0xff] %vm339_vm0, %v4005_v0  ;;  %v4008_v58 = vmax.f32 %v3976_v61, 0.0  ;;  %v3942_v26 = vmul.f32 %v12159_v9, %v3905_v53  ;;  %v3904_v33 = vadd.f32 %v3865_v14, %v3514_v35 }
 0x2b8   : > { %v12604_v34 = vld [vmem:[#allocation3 + $0x120] sm:$0xff]  ;;  %v12606_v59 = vld [vmem:[#allocation3 + $0x128] sm:$0xff]  ;;  %v3975_v49 = vadd.f32 %v12176_v6, %v3939_v46  ;;  %9671 = vmatprep.mubr.msk.f32.mxu1 %vm339_vm0, %v12602_v62 }
 0x2b9   : > { %14220 = vst [vmem:[#allocation37_spill] sm:$0xff] %v12604_v34  ;;  %14221 = vst [vmem:[#allocation18_spill] sm:$0xff] %v12606_v59  ;;  %9727 = vmatprep.mubr.msk.f32.mxu0 %vm339_vm0, %v12604_v34  ;;  %v3978_v24 = vadd.f32 %v12176_v6, %v3942_v26  ;;  %v3941_v4 = vmul.f32 %v12159_v9, %v3904_v33  ;;  %v12636_v0 = vld [vmem:[#allocation3 + $0x141] sm:$0xff] }
 0x2ba   : > { %9672 = vmatmul.mubr.msk.f32.gmra.mxu1 %vm339_vm0, %v12615_v29  ;;  %9728 = vmatmul.mubr.msk.f32.gmra.mxu0 %vm339_vm0, %v12606_v59  ;;  %4095 = vst.msk [vmem:[#allocation3 + $0x171] sm:$0xff] %vm339_vm0, %v4008_v58  ;;  %v4007_v40 = vmax.f32 %v3975_v49, 0.0  ;;  %v4813_v14 = vld [vmem:[#allocation3 + $0x2] sm:$0xff] }
 0x2bb   : > { %v4010_v35 = vmax.f32 %v3978_v24, 0.0  ;;  %v3977_v13 = vadd.f32 %v12176_v6, %v3941_v4 }
 0x2bc   : > { %4094 = vst.msk [vmem:[#allocation3 + $0x169] sm:$0xff] %vm339_vm0, %v4007_v40  ;;  %v4814_v40 = vld [vmem:[#allocation3 + $0xa] sm:$0xff] }
 0x2bd   : > { %v12624_v41 = vld [vmem:[#allocation3 + $0x139] sm:$0xff]  ;;  %4097 = vst.msk [vmem:[#allocation3 + $0x189] sm:$0xff] %vm339_vm0, %v4010_v35  ;;  %v4009_v9 = vmax.f32 %v3977_v13, 0.0 }
 0x2be   : > { %v12626_v20 = vld [vmem:[#allocation3 + $0x138] sm:$0xff]  ;;  %v12628_v15 = vld [vmem:[#allocation3 + $0x140] sm:$0xff]  ;;  %9674 = vmatprep.mubr.msk.f32.mxu1 %vm339_vm0, %v12624_v41  ;;  %v12645_v6 = vld [vmem:[#allocation3 + $0x150] sm:$0xff] }
 0x2bf   : > { %14222 = vst [vmem:[#allocation23_spill] sm:$0xff] %v12626_v20  ;;  %14223 = vst [vmem:[#allocation32_spill] sm:$0xff] %v12628_v15  ;;  %9730 = vmatprep.mubr.msk.f32.mxu0 %vm339_vm0, %v12626_v20  ;;  %9675 = vmatmul.mubr.msk.f32.gmra.mxu1 %vm339_vm0, %v12636_v0  ;;  %v12643_v61 = vld [vmem:[#allocation3 + $0x151] sm:$0xff]  ;;  %v12654_v53 = vld [vmem:[#allocation3 + $0x159] sm:$0xff] }
 0x2c0   : > { %9731 = vmatmul.mubr.msk.f32.gmra.mxu0 %vm339_vm0, %v12628_v15  ;;  %14224 = vst [vmem:[#allocation31_spill] sm:$0xff] %v12645_v6  ;;  %v12647_v46 = vld [vmem:[#allocation3 + $0x158] sm:$0xff]  ;;  %4096 = vst.msk [vmem:[#allocation3 + $0x181] sm:$0xff] %vm339_vm0, %v4009_v9  ;;  %9677 = vmatprep.mubr.msk.f32.mxu1 %vm339_vm0, %v12643_v61  ;;  %v5628_v13 = vld [vmem:[#allocation10 + $0x90] sm:$0xff] }
 0x2c1   : > { %14225 = vst [vmem:[#allocation20_spill] sm:$0xff] %v12647_v46  ;;  %9733 = vmatprep.mubr.msk.f32.mxu0 %vm339_vm0, %v12645_v6  ;;  %v12670_v33 = vld [vmem:[#allocation3 + $0x171] sm:$0xff]  ;;  %v12682_v35 = vld [vmem:[#allocation3 + $0x1a] sm:$0xff] }
 0x2c2   : > { %14227 = vst [vmem:[#allocation22_spill] sm:$0xff] %v12670_v33  ;;  %v6018_v9 = vld [vmem:[#allocation10 + $0xb0] sm:$0xff] }
 0x2c3   : > { %9678 = vmatmul.mubr.msk.f32.gmra.mxu1 %vm339_vm0, %v12654_v53  ;;  %v12660_v58 = vld [vmem:[#allocation3 + $0x169] sm:$0xff]  ;;  %v9637_v24 = vpop.f32.mrf.mxu1  ;;  %v9693_v4 = vpop.f32.mrf.mxu0 }
 0x2c4   : > { %9734 = vmatmul.mubr.msk.f32.gmra.mxu0 %vm339_vm0, %v12647_v46  ;;  %v12662_v49 = vld [vmem:[#allocation3 + $0x168] sm:$0xff]  ;;  %v12664_v26 = vld [vmem:[#allocation3 + $0x170] sm:$0xff]  ;;  %9680 = vmatprep.mubr.msk.f32.mxu1 %vm339_vm0, %v12660_v58 }
 0x2c5   : > { %14226 = vst [vmem:[#allocation33_spill] sm:$0xff] %v12662_v49  ;;  %9736 = vmatprep.mubr.msk.f32.mxu0 %vm339_vm0, %v12662_v49 }
 0x2c7   : > { %9681 = vmatmul.mubr.msk.f32.gmra.mxu1 %vm339_vm0, %v12670_v33  ;;  %v12684_v33 = vadd.f32 %v9693_v4, %v9637_v24  ;;  %v6017_v24 = vld [vmem:[#allocation10 + $0xa8] sm:$0xff]  ;;  %v6016_v4 = vld [vmem:[#allocation10 + $0xa0] sm:$0xff] }
 0x2c8   : > { %9737 = vmatmul.mubr.msk.f32.gmra.mxu0 %vm339_vm0, %v12664_v26  ;;  %9747 = vmatprep.mubr.msk.f32.mxu1 %vm339_vm0, %v4813_v14  ;;  %v12691_v14 = vld [vmem:[#allocation3 + $0x22] sm:$0xff] }
 0x2c9   : > { %9803 = vmatprep.mubr.msk.f32.mxu0 %vm339_vm0, %v12268_v45  ;;  %14228 = vst [vmem:[#allocation24_spill] sm:$0xff] %v12684_v33  ;;  %v10208_v45 = vld [vmem:[#allocation10 + $0x98] sm:$0xff] }
 0x2ca   : > { %v12823_v33 = vld [vmem:[#allocation3 + $0x122] sm:$0xff] }
 0x2cb   : > { %9748 = vmatmul.mubr.msk.f32.vlgmr.msra.gmra.mxu1 %vm339_vm0, %v4814_v40  ;;  %v5627_v40 = vld [vmem:[#allocation10 + $0x88] sm:$0xff] }
 0x2cc   : > { %9804 = vmatmul.mubr.msk.f32.vlgmr.msra.gmra.mxu0 %vm339_vm0, %v12270_v63  ;;  %9750 = vmatprep.mubr.msk.f32.mxu1 %vm339_vm0, %v12682_v35  ;;  %v12697_v63 = vld [vmem:[#allocation3 + $0x32] sm:$0xff] }
 0x2cd   : > { %9806 = vmatprep.mubr.msk.f32.mxu0 %vm339_vm0, %v12301_v1  ;;  %9852 = vmatpush3.msra.mxu1 %v10208_v45  ;;  %v12709_v1 = vld [vmem:[#allocation3 + $0x4a] sm:$0xff]  ;;  %v12751_v45 = vld [vmem:[#allocation3 + $0x92] sm:$0xff] }
 0x2ce   : > { %9908 = vmatpush3.msra.mxu0 %v12214_v51  ;;  %9853 = vmatprep.subr.mxu1 %v5628_v13  ;;  %v12703_v51 = vld [vmem:[#allocation3 + $0x3a] sm:$0xff] }
 0x2cf   : > { %9909 = vmatprep.subr.mxu0 %v6018_v9  ;;  %9751 = vmatmul.mubr.msk.f32.gmra.mxu1 %vm339_vm0, %v12691_v14 }
 0x2d0   : > { %9807 = vmatmul.mubr.msk.f32.gmra.mxu0 %vm339_vm0, %v12303_v5  ;;  %9753 = vmatprep.mubr.msk.f32.mxu1 %vm339_vm0, %v12697_v63  ;;  %v5626_v5 = vld [vmem:[#allocation10 + $0x80] sm:$0xff] }
 0x2d1   : > { %9809 = vmatprep.mubr.msk.f32.mxu0 %vm339_vm0, %v12334_v60  ;;  %9854 = vmatpush3.msra.mxu1 %v5628_v13  ;;  %v12715_v60 = vld [vmem:[#allocation3 + $0x52] sm:$0xff]  ;;  %v12723_v13 = vld [vmem:[#allocation10 + $0xd8] sm:$0xff] }
 0x2d2   : > { %9910 = vmatpush3.msra.mxu0 %v6018_v9  ;;  %9855 = vmatprep.subr.mxu1 %v5627_v40  ;;  %v12725_v9 = vld [vmem:[#allocation10 + $0xf8] sm:$0xff] }
 0x2d3   : > { %9911 = vmatprep.subr.mxu0 %v6017_v24  ;;  %9754 = vmatmul.mubr.msk.f32.gmra.mxu1 %vm339_vm0, %v12703_v51 }
 0x2d4   : > { %9810 = vmatmul.mubr.msk.f32.gmra.mxu0 %vm339_vm0, %v12336_v38  ;;  %9756 = vmatprep.mubr.msk.f32.mxu1 %vm339_vm0, %v12709_v1  ;;  %v12721_v38 = vld [vmem:[#allocation3 + $0x62] sm:$0xff] }
 0x2d5   : > { %9812 = vmatprep.mubr.msk.f32.mxu0 %vm339_vm0, %v12367_v19  ;;  %9856 = vmatpush3.msra.mxu1 %v5627_v40  ;;  %v12731_v19 = vld [vmem:[#allocation3 + $0x6a] sm:$0xff]  ;;  %v12799_v40 = vld [vmem:[#allocation3 + $0xf2] sm:$0xff] }
 0x2d6   : > { %9912 = vmatpush3.msra.mxu0 %v6017_v24  ;;  %9857 = vmatprep.subr.mxu1 %v5626_v5  ;;  %v12805_v24 = vld [vmem:[#allocation3 + $0xfa] sm:$0xff] }
 0x2d7   : > { %9913 = vmatprep.subr.mxu0 %v6016_v4  ;;  %9757 = vmatmul.mubr.msk.f32.gmra.mxu1 %vm339_vm0, %v12715_v60 }
 0x2d8   : > { %9813 = vmatmul.mubr.msk.f32.gmra.mxu0 %vm339_vm0, %v12369_v12  ;;  %9759 = vmatprep.mubr.msk.f32.mxu1 %vm339_vm0, %v12721_v38  ;;  %v12739_v12 = vld [vmem:[#allocation3 + $0x7a] sm:$0xff] }
 0x2d9   : > { %9815 = vmatprep.mubr.msk.f32.mxu0 %vm339_vm0, %v12400_v44  ;;  %9858 = vmatpush3.msra.mxu1 %v5626_v5  ;;  %v12745_v44 = vld [vmem:[#allocation3 + $0x82] sm:$0xff]  ;;  %v12811_v5 = vld [vmem:[#allocation3 + $0x10a] sm:$0xff] }
 0x2da   : > { %9914 = vmatpush3.msra.mxu0 %v6016_v4  ;;  %9963 = vmatprep.subr.mxu1 %v12723_v13  ;;  %v12817_v4 = vld [vmem:[#allocation3 + $0x112] sm:$0xff] }
 0x2db   : > { %10019 = vmatprep.subr.mxu0 %v12725_v9  ;;  %9760 = vmatmul.mubr.msk.f32.gmra.mxu1 %vm339_vm0, %v12731_v19 }
 0x2dc   : > { %9816 = vmatmul.mubr.msk.f32.gmra.mxu0 %vm339_vm0, %v12402_v54  ;;  %9762 = vmatprep.mubr.msk.f32.mxu1 %vm339_vm0, %v12739_v12  ;;  %v12757_v54 = vld [vmem:[#allocation3 + $0x9a] sm:$0xff] }
 0x2dd   : > { %9818 = vmatprep.mubr.msk.f32.mxu0 %vm339_vm0, %v12433_v43  ;;  %v12763_v43 = vld [vmem:[#allocation3 + $0xaa] sm:$0xff] }
 0x2df   : > { %9763 = vmatmul.mubr.msk.f32.gmra.mxu1 %vm339_vm0, %v12745_v44 }
 0x2e0   : > { %9819 = vmatmul.mubr.msk.f32.gmra.mxu0 %vm339_vm0, %v12435_v10  ;;  %9765 = vmatprep.mubr.msk.f32.mxu1 %vm339_vm0, %v12751_v45  ;;  %v12769_v10 = vld [vmem:[#allocation3 + $0xb2] sm:$0xff] }
 0x2e1   : > { %9821 = vmatprep.mubr.msk.f32.mxu0 %vm339_vm0, %v12466_v30  ;;  %v12775_v30 = vld [vmem:[#allocation3 + $0xc2] sm:$0xff] }
 0x2e3   : > { %9766 = vmatmul.mubr.msk.f32.gmra.mxu1 %vm339_vm0, %v12757_v54 }
 0x2e4   : > { %9822 = vmatmul.mubr.msk.f32.gmra.mxu0 %vm339_vm0, %v12468_v39  ;;  %9768 = vmatprep.mubr.msk.f32.mxu1 %vm339_vm0, %v12763_v43  ;;  %v12781_v39 = vld [vmem:[#allocation3 + $0xca] sm:$0xff] }
 0x2e5   : > { %9824 = vmatprep.mubr.msk.f32.mxu0 %vm339_vm0, %v12499_v18  ;;  %v12787_v18 = vld [vmem:[#allocation3 + $0xda] sm:$0xff] }
 0x2e7   : > { %9769 = vmatmul.mubr.msk.f32.gmra.mxu1 %vm339_vm0, %v12769_v10 }
 0x2e8   : > { %9825 = vmatmul.mubr.msk.f32.gmra.mxu0 %vm339_vm0, %v12501_v50  ;;  %9771 = vmatprep.mubr.msk.f32.mxu1 %vm339_vm0, %v12775_v30  ;;  %v12793_v50 = vld [vmem:[#allocation3 + $0xe2] sm:$0xff] }
 0x2e9   : > { %9827 = vmatprep.mubr.msk.f32.mxu0 %vm339_vm0, %v12530_v3 }
 0x2eb   : > { %9772 = vmatmul.mubr.msk.f32.gmra.mxu1 %vm339_vm0, %v12781_v39 }
 0x2ec   : > { %9828 = vmatmul.mubr.msk.f32.gmra.mxu0 %vm339_vm0, %v12532_v23  ;;  %9774 = vmatprep.mubr.msk.f32.mxu1 %vm339_vm0, %v12787_v18 }
 0x2ed   : > { %9830 = vmatprep.mubr.msk.f32.mxu0 %vm339_vm0, %v12559_v7 }
 0x2ef   : > { %9775 = vmatmul.mubr.msk.f32.gmra.mxu1 %vm339_vm0, %v12793_v50 }
 0x2f0   : > { %9831 = vmatmul.mubr.msk.f32.gmra.mxu0 %vm339_vm0, %v12561_v21  ;;  %9777 = vmatprep.mubr.msk.f32.mxu1 %vm339_vm0, %v12799_v40 }
 0x2f1   : > { %9833 = vmatprep.mubr.msk.f32.mxu0 %vm339_vm0, %v12582_v47  ;;  %v12861_v47 = vld [vmem:[#allocation3 + $0x180] sm:$0xff] }
 0x2f2   : > { %14229 = vst [vmem:[#allocation25_spill] sm:$0xff] %v12861_v47 }
 0x2f3   : > { %9778 = vmatmul.mubr.msk.f32.gmra.mxu1 %vm339_vm0, %v12805_v24 }
 0x2f4   : > { %9834 = vmatmul.mubr.msk.f32.gmra.mxu0 %vm339_vm0, %v12584_v2  ;;  %9780 = vmatprep.mubr.msk.f32.mxu1 %vm339_vm0, %v12811_v5  ;;  %v12829_v2 = vld [vmem:[#allocation3 + $0x12a] sm:$0xff] }
 0x2f5   : > { %9836 = vmatprep.mubr.msk.f32.mxu0 %vm339_vm0, %v12604_v34  ;;  %v12835_v34 = vld [vmem:[#allocation3 + $0x13a] sm:$0xff] }
 0x2f7   : > { %9781 = vmatmul.mubr.msk.f32.gmra.mxu1 %vm339_vm0, %v12817_v4 }
 0x2f8   : > { %9837 = vmatmul.mubr.msk.f32.gmra.mxu0 %vm339_vm0, %v12606_v59  ;;  %9783 = vmatprep.mubr.msk.f32.mxu1 %vm339_vm0, %v12823_v33  ;;  %v12841_v59 = vld [vmem:[#allocation3 + $0x142] sm:$0xff] }
 0x2f9   : > { %9839 = vmatprep.mubr.msk.f32.mxu0 %vm339_vm0, %v12626_v20  ;;  %v12847_v20 = vld [vmem:[#allocation3 + $0x152] sm:$0xff] }
 0x2fb   : > { %9784 = vmatmul.mubr.msk.f32.gmra.mxu1 %vm339_vm0, %v12829_v2 }
 0x2fc   : > { %9840 = vmatmul.mubr.msk.f32.gmra.mxu0 %vm339_vm0, %v12628_v15  ;;  %9786 = vmatprep.mubr.msk.f32.mxu1 %vm339_vm0, %v12835_v34  ;;  %v12853_v15 = vld [vmem:[#allocation3 + $0x15a] sm:$0xff] }
 0x2fd   : > { %9842 = vmatprep.mubr.msk.f32.mxu0 %vm339_vm0, %v12645_v6  ;;  %v12859_v6 = vld [vmem:[#allocation3 + $0x16a] sm:$0xff] }
 0x2ff   : > { %9787 = vmatmul.mubr.msk.f32.gmra.mxu1 %vm339_vm0, %v12841_v59 }
 0x300   : > { %9843 = vmatmul.mubr.msk.f32.gmra.mxu0 %vm339_vm0, %v12647_v46  ;;  %9789 = vmatprep.mubr.msk.f32.mxu1 %vm339_vm0, %v12847_v20  ;;  %v12867_v46 = vld [vmem:[#allocation3 + $0x172] sm:$0xff] }
 0x301   : > { %9845 = vmatprep.mubr.msk.f32.mxu0 %vm339_vm0, %v12662_v49  ;;  %v12869_v49 = vld [vmem:[#allocation3 + $0x188] sm:$0xff] }
 0x303   : > { %9790 = vmatmul.mubr.msk.f32.gmra.mxu1 %vm339_vm0, %v12853_v15 }
 0x304   : > { %9846 = vmatmul.mubr.msk.f32.gmra.mxu0 %vm339_vm0, %v12664_v26  ;;  %9792 = vmatprep.mubr.msk.f32.mxu1 %vm339_vm0, %v12859_v6  ;;  %v6409_v26 = vld [vmem:[#allocation10 + $0xd0] sm:$0xff] }
 0x305   : > { %9848 = vmatprep.mubr.msk.f32.mxu0 %vm339_vm0, %v12861_v47  ;;  %v6799_v47 = vld [vmem:[#allocation10 + $0xf0] sm:$0xff] }
 0x307   : > { %9793 = vmatmul.mubr.msk.f32.gmra.mxu1 %vm339_vm0, %v12867_v46 }
 0x308   : > { %9849 = vmatmul.mubr.msk.f32.gmra.mxu0 %vm339_vm0, %v12869_v49  ;;  %9859 = vmatprep.mubr.msk.f32.mxu1 %vm339_vm0, %v12266_v48  ;;  %v6408_v48 = vld [vmem:[#allocation10 + $0xc8] sm:$0xff] }
 0x309   : > { %9915 = vmatprep.mubr.msk.f32.mxu0 %vm339_vm0, %v12682_v35  ;;  %v6767_v35 = vld [vmem:[#allocation3 + $0x51] sm:$0xff] }
 0x30b   : > { %9860 = vmatmul.mubr.msk.f32.vlgmr.msra.gmra.mxu1 %vm339_vm0, %v12279_v25  ;;  %v6798_v25 = vld [vmem:[#allocation10 + $0xe8] sm:$0xff] }
 0x30c   : > { %9916 = vmatmul.mubr.msk.f32.vlgmr.msra.gmra.mxu0 %vm339_vm0, %v12691_v14  ;;  %9862 = vmatprep.mubr.msk.f32.mxu1 %vm339_vm0, %v12299_v57  ;;  %v6407_v57 = vld [vmem:[#allocation10 + $0xc0] sm:$0xff] }
 0x30d   : > { %9918 = vmatprep.mubr.msk.f32.mxu0 %vm339_vm0, %v12697_v63  ;;  %9964 = vmatpush3.msra.mxu1 %v12723_v13 }
 0x30e   : > { %10020 = vmatpush3.msra.mxu0 %v12725_v9  ;;  %9965 = vmatprep.subr.mxu1 %v6409_v26 }
 0x30f   : > { %10021 = vmatprep.subr.mxu0 %v6799_v47  ;;  %9863 = vmatmul.mubr.msk.f32.gmra.mxu1 %vm339_vm0, %v12312_v55  ;;  %v6797_v55 = vld [vmem:[#allocation10 + $0xe0] sm:$0xff] }
 0x310   : > { %9919 = vmatmul.mubr.msk.f32.gmra.mxu0 %vm339_vm0, %v12703_v51  ;;  %9865 = vmatprep.mubr.msk.f32.mxu1 %vm339_vm0, %v12332_v37  ;;  %v12909_v37 = vld [vmem:[#allocation10 + $0x118] sm:$0xff]  ;;  %v6378_v51 = vld [vmem:[#allocation3 + $0x60] sm:$0xff] }
 0x311   : > { %9921 = vmatprep.mubr.msk.f32.mxu0 %vm339_vm0, %v12709_v1  ;;  %9966 = vmatpush3.msra.mxu1 %v6409_v26  ;;  %v6768_v1 = vld [vmem:[#allocation3 + $0x61] sm:$0xff] }
 0x312   : > { %10022 = vmatpush3.msra.mxu0 %v6799_v47  ;;  %9967 = vmatprep.subr.mxu1 %v6408_v48  ;;  %v6374_v47 = vld [vmem:[#allocation3 + $0x30] sm:$0xff] }
 0x313   : > { %10023 = vmatprep.subr.mxu0 %v6798_v25  ;;  %9866 = vmatmul.mubr.msk.f32.gmra.mxu1 %vm339_vm0, %v12345_v17  ;;  %v14230_v17 = vld [vmem:[#allocation29_spill] sm:$0xff] }
 0x314   : > { %9922 = vmatmul.mubr.msk.f32.gmra.mxu0 %vm339_vm0, %v12715_v60  ;;  %9868 = vmatprep.mubr.msk.f32.mxu1 %vm339_vm0, %v12365_v28  ;;  %v14231_v28 = vld [vmem:[#allocation36_spill] sm:$0xff]  ;;  %v7188_v60 = vld [vmem:[#allocation10 + $0x108] sm:$0xff] }
 0x315   : > { %9924 = vmatprep.mubr.msk.f32.mxu0 %vm339_vm0, %v12721_v38  ;;  %9968 = vmatpush3.msra.mxu1 %v6408_v48  ;;  %v6382_v48 = vld [vmem:[#allocation3 + $0x90] sm:$0xff] }
 0x316   : > { %10024 = vmatpush3.msra.mxu0 %v6798_v25  ;;  %9969 = vmatprep.subr.mxu1 %v6407_v57  ;;  %v6772_v25 = vld [vmem:[#allocation3 + $0x91] sm:$0xff] }
 0x317   : > { %10025 = vmatprep.subr.mxu0 %v6797_v55  ;;  %9869 = vmatmul.mubr.msk.f32.gmra.mxu1 %vm339_vm0, %v12378_v42  ;;  %v14232_v42 = vld [vmem:[#allocation35_spill] sm:$0xff] }
 0x318   : > { %9925 = vmatmul.mubr.msk.f32.gmra.mxu0 %vm339_vm0, %v12731_v19  ;;  %9871 = vmatprep.mubr.msk.f32.mxu1 %vm339_vm0, %v12398_v11  ;;  %v14234_v11 = vld [vmem:[#allocation22_spill] sm:$0xff] }
 0x319   : > { %9927 = vmatprep.mubr.msk.f32.mxu0 %vm339_vm0, %v12739_v12  ;;  %9970 = vmatpush3.msra.mxu1 %v6407_v57  ;;  %v6379_v12 = vld [vmem:[#allocation3 + $0x68] sm:$0xff] }
 0x31a   : > { %10026 = vmatpush3.msra.mxu0 %v6797_v55  ;;  %10075 = vmatprep.subr.mxu1 %v12909_v37 }
 0x31b   : > { %9872 = vmatmul.mubr.msk.f32.gmra.mxu1 %vm339_vm0, %v12411_v52  ;;  %v13000_v52 = vld [vmem:[#allocation3 + $0x181] sm:$0xff] }
 0x31c   : > { %9928 = vmatmul.mubr.msk.f32.gmra.mxu0 %vm339_vm0, %v12745_v44  ;;  %9874 = vmatprep.mubr.msk.f32.mxu1 %vm339_vm0, %v12431_v36  ;;  %v14233_v36 = vld [vmem:[#allocation19_spill] sm:$0xff]  ;;  %v6769_v44 = vld [vmem:[#allocation3 + $0x69] sm:$0xff] }
 0x31d   : > { %9930 = vmatprep.mubr.msk.f32.mxu0 %vm339_vm0, %v12751_v45 }
 0x31f   : > { %9875 = vmatmul.mubr.msk.f32.gmra.mxu1 %vm339_vm0, %v14230_v17 }
 0x320   : > { %9931 = vmatmul.mubr.msk.f32.gmra.mxu0 %vm339_vm0, %v12757_v54  ;;  %9877 = vmatprep.mubr.msk.f32.mxu1 %vm339_vm0, %v14231_v28  ;;  %v6383_v28 = vld [vmem:[#allocation3 + $0x98] sm:$0xff] }
 0x321   : > { %9933 = vmatprep.mubr.msk.f32.mxu0 %vm339_vm0, %v12763_v43  ;;  %v6380_v43 = vld [vmem:[#allocation3 + $0x78] sm:$0xff] }
 0x323   : > { %9878 = vmatmul.mubr.msk.f32.gmra.mxu1 %vm339_vm0, %v14232_v42  ;;  %v6773_v42 = vld [vmem:[#allocation3 + $0x99] sm:$0xff] }
 0x324   : > { %9934 = vmatmul.mubr.msk.f32.gmra.mxu0 %vm339_vm0, %v12769_v10  ;;  %9880 = vmatprep.mubr.msk.f32.mxu1 %vm339_vm0, %v12497_v22  ;;  %v13002_v22 = vld [vmem:[#allocation3 + $0x182] sm:$0xff]  ;;  %v6770_v10 = vld [vmem:[#allocation3 + $0x79] sm:$0xff] }
 0x325   : > { %9936 = vmatprep.mubr.msk.f32.mxu0 %vm339_vm0, %v12775_v30  ;;  %v7187_v30 = vld [vmem:[#allocation10 + $0x100] sm:$0xff] }
 0x327   : > { %9881 = vmatmul.mubr.msk.f32.gmra.mxu1 %vm339_vm0, %v14233_v36 }
 0x328   : > { %9937 = vmatmul.mubr.msk.f32.gmra.mxu0 %vm339_vm0, %v12781_v39  ;;  %9883 = vmatprep.mubr.msk.f32.mxu1 %vm339_vm0, %v12528_v32  ;;  %v13008_v32 = vld [vmem:[#allocation3 + $0x189] sm:$0xff] }
 0x329   : > { %9939 = vmatprep.mubr.msk.f32.mxu0 %vm339_vm0, %v12787_v18 }
 0x32b   : > { %9884 = vmatmul.mubr.msk.f32.gmra.mxu1 %vm339_vm0, %v12541_v27  ;;  %v13010_v27 = vld [vmem:[#allocation3 + $0x18a] sm:$0xff] }
 0x32c   : > { %9940 = vmatmul.mubr.msk.f32.gmra.mxu0 %vm339_vm0, %v12793_v50  ;;  %9886 = vmatprep.mubr.msk.f32.mxu1 %vm339_vm0, %v12557_v31 }
 0x32d   : > { %9942 = vmatprep.mubr.msk.f32.mxu0 %vm339_vm0, %v12799_v40 }
 0x32f   : > { %9887 = vmatmul.mubr.msk.f32.gmra.mxu1 %vm339_vm0, %v12570_v56 }
 0x330   : > { %9943 = vmatmul.mubr.msk.f32.gmra.mxu0 %vm339_vm0, %v12805_v24  ;;  %9889 = vmatprep.mubr.msk.f32.mxu1 %vm339_vm0, %v12580_v8  ;;  %v6381_v24 = vld [vmem:[#allocation3 + $0x80] sm:$0xff] }
 0x331   : > { %9945 = vmatprep.mubr.msk.f32.mxu0 %vm339_vm0, %v12811_v5  ;;  %v6771_v5 = vld [vmem:[#allocation3 + $0x81] sm:$0xff] }
 0x333   : > { %9890 = vmatmul.mubr.msk.f32.gmra.mxu1 %vm339_vm0, %v12593_v16 }
 0x334   : > { %9946 = vmatmul.mubr.msk.f32.gmra.mxu0 %vm339_vm0, %v12817_v4  ;;  %9892 = vmatprep.mubr.msk.f32.mxu1 %vm339_vm0, %v12602_v62 }
 0x335   : > { %9948 = vmatprep.mubr.msk.f32.mxu0 %vm339_vm0, %v12823_v33  ;;  %v6377_v33 = vld [vmem:[#allocation3 + $0x50] sm:$0xff] }
 0x337   : > { %9893 = vmatmul.mubr.msk.f32.gmra.mxu1 %vm339_vm0, %v12615_v29 }
 0x338   : > { %9949 = vmatmul.mubr.msk.f32.gmra.mxu0 %vm339_vm0, %v12829_v2  ;;  %9895 = vmatprep.mubr.msk.f32.mxu1 %vm339_vm0, %v12624_v41  ;;  %v6764_v2 = vld [vmem:[#allocation3 + $0x31] sm:$0xff] }
 0x339   : > { %9951 = vmatprep.mubr.msk.f32.mxu0 %vm339_vm0, %v12835_v34  ;;  %v6375_v34 = vld [vmem:[#allocation3 + $0x38] sm:$0xff] }
 0x33b   : > { %9896 = vmatmul.mubr.msk.f32.gmra.mxu1 %vm339_vm0, %v12636_v0 }
 0x33c   : > { %9952 = vmatmul.mubr.msk.f32.gmra.mxu0 %vm339_vm0, %v12841_v59  ;;  %9898 = vmatprep.mubr.msk.f32.mxu1 %vm339_vm0, %v12643_v61  ;;  %v6765_v59 = vld [vmem:[#allocation3 + $0x39] sm:$0xff] }
 0x33d   : > { %9954 = vmatprep.mubr.msk.f32.mxu0 %vm339_vm0, %v12847_v20  ;;  %v6376_v20 = vld [vmem:[#allocation3 + $0x48] sm:$0xff] }
 0x33f   : > { %9899 = vmatmul.mubr.msk.f32.gmra.mxu1 %vm339_vm0, %v12654_v53  ;;  %v13024_v53 = vpop.f32.mrf.mxu0 }
 0x340   : > { %9955 = vmatmul.mubr.msk.f32.gmra.mxu0 %vm339_vm0, %v12853_v15  ;;  %9901 = vmatprep.mubr.msk.f32.mxu1 %vm339_vm0, %v12660_v58  ;;  %v6766_v15 = vld [vmem:[#allocation3 + $0x49] sm:$0xff] }
 0x341   : > { %9957 = vmatprep.mubr.msk.f32.mxu0 %vm339_vm0, %v12859_v6  ;;  %v7189_v6 = vld [vmem:[#allocation10 + $0x110] sm:$0xff] }
 0x343   : > { %9902 = vmatmul.mubr.msk.f32.gmra.mxu1 %vm339_vm0, %v14234_v11 }
 0x344   : > { %9958 = vmatmul.mubr.msk.f32.gmra.mxu0 %vm339_vm0, %v12867_v46  ;;  %9904 = vmatprep.mubr.msk.f32.mxu1 %vm339_vm0, %v13000_v52  ;;  %v13022_v46 = vpop.f32.mrf.mxu1 }
 0x345   : > { %9960 = vmatprep.mubr.msk.f32.mxu0 %vm339_vm0, %v13002_v22 }
 0x347   : > { %9905 = vmatmul.mubr.msk.f32.gmra.mxu1 %vm339_vm0, %v13008_v32 }
 0x348   : > { %9961 = vmatmul.mubr.msk.f32.gmra.mxu0 %vm339_vm0, %v13010_v27  ;;  %9971 = vmatprep.mubr.msk.f32.mxu1 %vm339_vm0, %v6374_v47  ;;  %v6384_v47 = vld [vmem:[#allocation3 + $0xa8] sm:$0xff] }
 0x349   : > { %10027 = vmatprep.mubr.msk.f32.mxu0 %vm339_vm0, %v6764_v2  ;;  %v6774_v2 = vld [vmem:[#allocation3 + $0xa9] sm:$0xff] }
 0x34b   : > { %9972 = vmatmul.mubr.msk.f32.vlgmr.msra.gmra.mxu1 %vm339_vm0, %v6375_v34 }
 0x34c   : > { %10028 = vmatmul.mubr.msk.f32.vlgmr.msra.gmra.mxu0 %vm339_vm0, %v6765_v59  ;;  %9974 = vmatprep.mubr.msk.f32.mxu1 %vm339_vm0, %v6376_v20  ;;  %v9640_v14 = vpop.f32.mrf.mxu1 }
 0x34d   : > { %10030 = vmatprep.mubr.msk.f32.mxu0 %vm339_vm0, %v6766_v15  ;;  %10076 = vmatpush3.msra.mxu1 %v12909_v37  ;;  %v9696_v63 = vpop.f32.mrf.mxu0 }
 0x34e   : > { %10077 = vmatprep.subr.mxu1 %v7189_v6  ;;  %v13029_v38 = vadd.f32 %v9696_v63, %v9640_v14  ;;  %v4343_v13 = vpop.f32.mrf.mxu1  ;;  %v6386_v63 = vld [vmem:[#allocation3 + $0xc0] sm:$0xff] }
 0x34f   : > { %9975 = vmatmul.mubr.msk.f32.gmra.mxu1 %vm339_vm0, %v6377_v33  ;;  %v4664_v9 = vpop.f32.mrf.mxu0  ;;  %v6775_v33 = vld [vmem:[#allocation3 + $0xb1] sm:$0xff] }
 0x350   : > { %10031 = vmatmul.mubr.msk.f32.gmra.mxu0 %vm339_vm0, %v6767_v35  ;;  %9977 = vmatprep.mubr.msk.f32.mxu1 %vm339_vm0, %v6378_v51  ;;  %v13033_v19 = vadd.f32 %v4664_v9, %v4343_v13  ;;  %v9643_v45 = vpop.f32.mrf.mxu1  ;;  %v6776_v51 = vld [vmem:[#allocation3 + $0xc1] sm:$0xff] }
 0x351   : > { %10033 = vmatprep.mubr.msk.f32.mxu0 %vm339_vm0, %v6768_v1  ;;  %10078 = vmatpush3.msra.mxu1 %v7189_v6  ;;  %v9699_v54 = vpop.f32.mrf.mxu0  ;;  %v6385_v6 = vld [vmem:[#allocation3 + $0xb0] sm:$0xff] }
 0x352   : > { %10079 = vmatprep.subr.mxu1 %v7188_v60  ;;  %v13037_v39 = vadd.f32 %v9699_v54, %v9643_v45  ;;  %v4353_v18 = vpop.f32.mrf.mxu1 }
 0x353   : > { %9978 = vmatmul.mubr.msk.f32.gmra.mxu1 %vm339_vm0, %v6379_v12  ;;  %v4674_v50 = vpop.f32.mrf.mxu0  ;;  %v6387_v12 = vld [vmem:[#allocation3 + $0xc8] sm:$0xff] }
 0x354   : > { %10034 = vmatmul.mubr.msk.f32.gmra.mxu0 %vm339_vm0, %v6769_v44  ;;  %9980 = vmatprep.mubr.msk.f32.mxu1 %vm339_vm0, %v6380_v43  ;;  %v13041_v40 = vadd.f32 %v4674_v50, %v4353_v18  ;;  %v6777_v44 = vld [vmem:[#allocation3 + $0xc9] sm:$0xff]  ;;  %v6778_v43 = vld [vmem:[#allocation3 + $0xd9] sm:$0xff] }
 0x355   : > { %10036 = vmatprep.mubr.msk.f32.mxu0 %vm339_vm0, %v6770_v10  ;;  %10080 = vmatpush3.msra.mxu1 %v7188_v60  ;;  %v9646_v4 = vpop.f32.mrf.mxu1  ;;  %v9702_v26 = vpop.f32.mrf.mxu0 }
 0x356   : > { %10081 = vmatprep.subr.mxu1 %v7187_v30  ;;  %v13045_v57 = vadd.f32 %v9702_v26, %v9646_v4 }
 0x357   : > { %9981 = vmatmul.mubr.msk.f32.gmra.mxu1 %vm339_vm0, %v6381_v24  ;;  %v4363_v55 = vpop.f32.mrf.mxu1  ;;  %v4684_v37 = vpop.f32.mrf.mxu0  ;;  %v6779_v24 = vld [vmem:[#allocation3 + $0xe1] sm:$0xff] }
 0x358   : > { %10037 = vmatmul.mubr.msk.f32.gmra.mxu0 %vm339_vm0, %v6771_v5  ;;  %9983 = vmatprep.mubr.msk.f32.mxu1 %vm339_vm0, %v6382_v48  ;;  %v13049_v17 = vadd.f32 %v4684_v37, %v4363_v55 }
 0x359   : > { %10039 = vmatprep.mubr.msk.f32.mxu0 %vm339_vm0, %v6772_v25  ;;  %10082 = vmatpush3.msra.mxu1 %v7187_v30  ;;  %v9649_v36 = vpop.f32.mrf.mxu1  ;;  %v9705_v11 = vpop.f32.mrf.mxu0 }
 0x35a   : > { %v13053_v34 = vadd.f32 %v9705_v11, %v9649_v36 }
 0x35b   : > { %9984 = vmatmul.mubr.msk.f32.gmra.mxu1 %vm339_vm0, %v6383_v28  ;;  %v4373_v59 = vpop.f32.mrf.mxu1  ;;  %v4694_v20 = vpop.f32.mrf.mxu0  ;;  %v14235_v28 = vld [vmem:[#allocation21_spill] sm:$0xff] }
 0x35c   : > { %10040 = vmatmul.mubr.msk.f32.gmra.mxu0 %vm339_vm0, %v6773_v42  ;;  %9986 = vmatprep.mubr.msk.f32.mxu1 %vm339_vm0, %v6384_v47  ;;  %v13057_v15 = vadd.f32 %v4694_v20, %v4373_v59  ;;  %v14236_v47 = vld [vmem:[#allocation30_spill] sm:$0xff] }
 0x35d   : > { %10042 = vmatprep.mubr.msk.f32.mxu0 %vm339_vm0, %v6774_v2  ;;  %v9652_v35 = vpop.f32.mrf.mxu1  ;;  %v9708_v14 = vpop.f32.mrf.mxu0 }
 0x35e   : > { %v13061_v1 = vadd.f32 %v9708_v14, %v9652_v35  ;;  %v14239_v35 = vld [vmem:[#allocation23_spill] sm:$0xff] }
 0x35f   : > { %9987 = vmatmul.mubr.msk.f32.gmra.mxu1 %vm339_vm0, %v6385_v6  ;;  %v4383_v60 = vpop.f32.mrf.mxu1  ;;  %v4704_v13 = vpop.f32.mrf.mxu0 }
 0x360   : > { %10043 = vmatmul.mubr.msk.f32.gmra.mxu0 %vm339_vm0, %v6775_v33  ;;  %9989 = vmatprep.mubr.msk.f32.mxu1 %vm339_vm0, %v6386_v63  ;;  %v13065_v9 = vadd.f32 %v4704_v13, %v4383_v60  ;;  %v14238_v33 = vld [vmem:[#allocation18_spill] sm:$0xff]  ;;  %v14240_v13 = vld [vmem:[#allocation32_spill] sm:$0xff] }
 0x361   : > { %10045 = vmatprep.mubr.msk.f32.mxu0 %vm339_vm0, %v6776_v51  ;;  %v9655_v45 = vpop.f32.mrf.mxu1  ;;  %v9711_v54 = vpop.f32.mrf.mxu0 }
 0x362   : > { %v13069_v10 = vadd.f32 %v9711_v54, %v9655_v45  ;;  %v6789_v54 = vld [vmem:[#allocation3 + $0x159] sm:$0xff] }
 0x363   : > { %9990 = vmatmul.mubr.msk.f32.gmra.mxu1 %vm339_vm0, %v6387_v12  ;;  %v4393_v30 = vpop.f32.mrf.mxu1  ;;  %v4714_v18 = vpop.f32.mrf.mxu0  ;;  %v14241_v12 = vld [vmem:[#allocation31_spill] sm:$0xff] }
 0x364   : > { %10046 = vmatmul.mubr.msk.f32.gmra.mxu0 %vm339_vm0, %v6777_v44  ;;  %9992 = vmatprep.mubr.msk.f32.mxu1 %vm339_vm0, %v12530_v3  ;;  %v13074_v50 = vadd.f32 %v4714_v18, %v4393_v30  ;;  %v14242_v18 = vld [vmem:[#allocation20_spill] sm:$0xff] }
 0x365   : > { %10048 = vmatprep.mubr.msk.f32.mxu0 %vm339_vm0, %v6778_v43  ;;  %v9658_v5 = vpop.f32.mrf.mxu1  ;;  %v9714_v4 = vpop.f32.mrf.mxu0 }
 0x366   : > { %v13079_v26 = vadd.f32 %v9714_v4, %v9658_v5 }
 0x367   : > { %9993 = vmatmul.mubr.msk.f32.gmra.mxu1 %vm339_vm0, %v12532_v23  ;;  %v4403_v3 = vpop.f32.mrf.mxu1  ;;  %v4724_v48 = vpop.f32.mrf.mxu0 }
 0x368   : > { %10049 = vmatmul.mubr.msk.f32.gmra.mxu0 %vm339_vm0, %v6779_v24  ;;  %9995 = vmatprep.mubr.msk.f32.mxu1 %vm339_vm0, %v12559_v7  ;;  %v13085_v25 = vadd.f32 %v4724_v48, %v4403_v3  ;;  %v14243_v24 = vld [vmem:[#allocation33_spill] sm:$0xff]  ;;  %v6401_v3 = vld [vmem:[#allocation3 + $0x170] sm:$0xff] }
 0x369   : > { %10051 = vmatprep.mubr.msk.f32.mxu0 %vm339_vm0, %v12557_v31  ;;  %v6791_v48 = vld [vmem:[#allocation3 + $0x171] sm:$0xff] }
 0x36a   : > { %v9661_v55 = vpop.f32.mrf.mxu1  ;;  %v9717_v37 = vpop.f32.mrf.mxu0 }
 0x36b   : > { %9996 = vmatmul.mubr.msk.f32.gmra.mxu1 %vm339_vm0, %v12561_v21  ;;  %v13091_v23 = vadd.f32 %v9717_v37, %v9661_v55 }
 0x36c   : > { %10052 = vmatmul.mubr.msk.f32.gmra.mxu0 %vm339_vm0, %v12570_v56  ;;  %9998 = vmatprep.mubr.msk.f32.mxu1 %vm339_vm0, %v14235_v28  ;;  %v4413_v31 = vpop.f32.mrf.mxu1  ;;  %v4734_v7 = vpop.f32.mrf.mxu0  ;;  %v14237_v56 = vld [vmem:[#allocation37_spill] sm:$0xff] }
 0x36d   : > { %10054 = vmatprep.mubr.msk.f32.mxu0 %vm339_vm0, %v12580_v8  ;;  %v13097_v42 = vadd.f32 %v4734_v7, %v4413_v31  ;;  %v14244_v31 = vld [vmem:[#allocation25_spill] sm:$0xff] }
 0x36e   : > { %v9664_v36 = vpop.f32.mrf.mxu1  ;;  %v9720_v11 = vpop.f32.mrf.mxu0 }
 0x36f   : > { %9999 = vmatmul.mubr.msk.f32.gmra.mxu1 %vm339_vm0, %v14236_v47  ;;  %v13103_v21 = vadd.f32 %v9720_v11, %v9664_v36  ;;  %v6404_v36 = vld [vmem:[#allocation3 + $0x198] sm:$0xff] }
 0x370   : > { %10055 = vmatmul.mubr.msk.f32.gmra.mxu0 %vm339_vm0, %v12593_v16  ;;  %10001 = vmatprep.mubr.msk.f32.mxu1 %vm339_vm0, %v14237_v56  ;;  %v4423_v8 = vpop.f32.mrf.mxu1  ;;  %v4744_v2 = vpop.f32.mrf.mxu0  ;;  %v6794_v11 = vld [vmem:[#allocation3 + $0x199] sm:$0xff] }
 0x371   : > { %10057 = vmatprep.mubr.msk.f32.mxu0 %vm339_vm0, %v12602_v62  ;;  %v13109_v59 = vadd.f32 %v4744_v2, %v4423_v8 }
 0x372   : > { %v9667_v20 = vpop.f32.mrf.mxu1  ;;  %v9723_v6 = vpop.f32.mrf.mxu0 }
 0x373   : > { %10002 = vmatmul.mubr.msk.f32.gmra.mxu1 %vm339_vm0, %v14238_v33  ;;  %v13115_v16 = vadd.f32 %v9723_v6, %v9667_v20  ;;  %v6405_v20 = vld [vmem:[#allocation3 + $0x1a0] sm:$0xff] }
 0x374   : > { %10058 = vmatmul.mubr.msk.f32.gmra.mxu0 %vm339_vm0, %v12615_v29  ;;  %10004 = vmatprep.mubr.msk.f32.mxu1 %vm339_vm0, %v14239_v35  ;;  %v4433_v62 = vpop.f32.mrf.mxu1  ;;  %v4754_v14 = vpop.f32.mrf.mxu0 }
 0x375   : > { %10060 = vmatprep.mubr.msk.f32.mxu0 %vm339_vm0, %v12624_v41  ;;  %v13121_v63 = vadd.f32 %v4754_v14, %v4433_v62 }
 0x376   : > { %v9670_v51 = vpop.f32.mrf.mxu1  ;;  %v9726_v60 = vpop.f32.mrf.mxu0 }
 0x377   : > { %10005 = vmatmul.mubr.msk.f32.gmra.mxu1 %vm339_vm0, %v14240_v13  ;;  %v13127_v29 = vadd.f32 %v9726_v60, %v9670_v51 }
 0x378   : > { %10061 = vmatmul.mubr.msk.f32.gmra.mxu0 %vm339_vm0, %v12636_v0  ;;  %10007 = vmatprep.mubr.msk.f32.mxu1 %vm339_vm0, %v14241_v12  ;;  %v4443_v41 = vpop.f32.mrf.mxu1  ;;  %v4764_v44 = vpop.f32.mrf.mxu0  ;;  %v7155_v12 = vld [vmem:[#allocation3 + $0x3a] sm:$0xff] }
 0x379   : > { %10063 = vmatprep.mubr.msk.f32.mxu0 %vm339_vm0, %v12643_v61  ;;  %v13133_v45 = vadd.f32 %v4764_v44, %v4443_v41 }
 0x37a   : > { %v9673_v43 = vpop.f32.mrf.mxu1  ;;  %v9729_v30 = vpop.f32.mrf.mxu0 }
 0x37b   : > { %10008 = vmatmul.mubr.msk.f32.gmra.mxu1 %vm339_vm0, %v14242_v18  ;;  %v13138_v0 = vadd.f32 %v9729_v30, %v9673_v43  ;;  %v4655_v43 = vadd.f32 %v13024_v53, %v13022_v46  ;;  %v14245_v30 = vld [vmem:[#allocation24_spill] sm:$0xff] }
 0x37c   : > { %10064 = vmatmul.mubr.msk.f32.gmra.mxu0 %vm339_vm0, %v6789_v54  ;;  %10010 = vmatprep.mubr.msk.f32.mxu1 %vm339_vm0, %v14243_v24  ;;  %v4453_v61 = vpop.f32.mrf.mxu1  ;;  %v4774_v5 = vpop.f32.mrf.mxu0  ;;  %v7156_v54 = vld [vmem:[#allocation3 + $0x4a] sm:$0xff] }
 0x37d   : > { %10066 = vmatprep.mubr.msk.f32.mxu0 %vm339_vm0, %v12660_v58  ;;  %v13144_v4 = vadd.f32 %v4774_v5, %v4453_v61 }
 0x37f   : > { %v9676_v55 = vpop.f32.mrf.mxu1  ;;  %10011 = vmatmul.mubr.msk.f32.gmra.mxu1 %vm339_vm0, %v6401_v3 }
 0x380   : > { %v9732_v37 = vpop.f32.mrf.mxu0  ;;  %10067 = vmatmul.mubr.msk.f32.gmra.mxu0 %vm339_vm0, %v6791_v48  ;;  %10013 = vmatprep.mubr.msk.f32.mxu1 %vm339_vm0, %v14244_v31  ;;  %v7157_v48 = vld [vmem:[#allocation3 + $0x52] sm:$0xff]  ;;  %v7158_v31 = vld [vmem:[#allocation3 + $0x62] sm:$0xff] }
 0x381   : > { %v13148_v28 = vadd.f32 %v9732_v37, %v9676_v55  ;;  %10069 = vmatprep.mubr.msk.f32.mxu0 %vm339_vm0, %v13000_v52  ;;  %v4463_v58 = vpop.f32.mrf.mxu1  ;;  %v6795_v52 = vld [vmem:[#allocation3 + $0x1a1] sm:$0xff] }
 0x382   : > { %v4784_v7 = vpop.f32.mrf.mxu0 }
 0x383   : > { %v13154_v47 = vadd.f32 %v4784_v7, %v4463_v58  ;;  %v9679_v56 = vpop.f32.mrf.mxu1  ;;  %10014 = vmatmul.mubr.msk.f32.gmra.mxu1 %vm339_vm0, %v12869_v49  ;;  %v7154_v49 = vld [vmem:[#allocation3 + $0x32] sm:$0xff] }
 0x384   : > { %v9735_v8 = vpop.f32.mrf.mxu0  ;;  %10070 = vmatmul.mubr.msk.f32.gmra.mxu0 %vm339_vm0, %v13008_v32  ;;  %10016 = vmatprep.mubr.msk.f32.mxu1 %vm339_vm0, %v6404_v36 }
 0x385   : > { %v13160_v2 = vadd.f32 %v9735_v8, %v9679_v56  ;;  %10072 = vmatprep.mubr.msk.f32.mxu0 %vm339_vm0, %v6794_v11  ;;  %v4473_v6 = vpop.f32.mrf.mxu1  ;;  %v7159_v56 = vld [vmem:[#allocation3 + $0x6a] sm:$0xff] }
 0x386   : > { %v4794_v33 = vpop.f32.mrf.mxu0 }
 0x387   : > { %v13164_v35 = vadd.f32 %v4794_v33, %v4473_v6  ;;  %v9682_v62 = vpop.f32.mrf.mxu1  ;;  %10017 = vmatmul.mubr.msk.f32.gmra.mxu1 %vm339_vm0, %v6405_v20 }
 0x388   : > { %v9738_v14 = vpop.f32.mrf.mxu0  ;;  %10073 = vmatmul.mubr.msk.f32.gmra.mxu0 %vm339_vm0, %v6795_v52  ;;  %10083 = vmatprep.mubr.msk.f32.mxu1 %vm339_vm0, %v7154_v49  ;;  %v7160_v52 = vld [vmem:[#allocation3 + $0x7a] sm:$0xff] }
 0x389   : > { %v13168_v32 = vadd.f32 %v9738_v14, %v9682_v62  ;;  %v4483_v51 = vpop.f32.mrf.mxu1 }
 0x38a   : > { %v4804_v60 = vpop.f32.mrf.mxu0 }
 0x38b   : > { %v13171_v13 = vadd.f32 %v4804_v60, %v4483_v51  ;;  %v9749_v41 = vpop.f32.mrf.mxu1  ;;  %10084 = vmatmul.mubr.msk.f32.vlgmr.msra.gmra.mxu1 %vm339_vm0, %v7155_v12  ;;  %v7161_v51 = vld [vmem:[#allocation3 + $0x82] sm:$0xff]  ;;  %v7162_v12 = vld [vmem:[#allocation3 + $0x92] sm:$0xff] }
 0x38c   : > { %v9805_v44 = vpop.f32.mrf.mxu0  ;;  %v5172_v18 = vadd.f32 %v9749_v41, %v14245_v30  ;;  %10086 = vmatprep.mubr.msk.f32.mxu1 %vm339_vm0, %v7156_v54 }
 0x38d   : > { %v5012_v24 = vpop.f32.mrf.mxu1 }
 0x38e   : > { %v5402_v61 = vpop.f32.mrf.mxu0  ;;  %v13178_v5 = vadd.f32 %v9805_v44, %v5172_v18  ;;  %v5171_v3 = vadd.f32 %v5012_v24, %v4655_v43  ;;  %v7163_v18 = vld [vmem:[#allocation3 + $0x9a] sm:$0xff] }
 0x38f   : > { %v9752_v55 = vpop.f32.mrf.mxu1  ;;  %10087 = vmatmul.mubr.msk.f32.gmra.mxu1 %vm339_vm0, %v7157_v48 }
 0x390   : > { %v9808_v37 = vpop.f32.mrf.mxu0  ;;  %v13181_v58 = vadd.f32 %v5402_v61, %v5171_v3  ;;  %v5174_v7 = vadd.f32 %v9752_v55, %v13029_v38  ;;  %10089 = vmatprep.mubr.msk.f32.mxu1 %vm339_vm0, %v7158_v31  ;;  %v7164_v61 = vld [vmem:[#allocation3 + $0xaa] sm:$0xff] }
 0x391   : > { %v5022_v46 = vpop.f32.mrf.mxu1 }
 0x392   : > { %v5412_v53 = vpop.f32.mrf.mxu0  ;;  %v13185_v36 = vadd.f32 %v9808_v37, %v5174_v7  ;;  %v5173_v11 = vadd.f32 %v5022_v46, %v13033_v19  ;;  %v7165_v7 = vld [vmem:[#allocation3 + $0xb2] sm:$0xff] }
 0x393   : > { %v9755_v8 = vpop.f32.mrf.mxu1  ;;  %10090 = vmatmul.mubr.msk.f32.gmra.mxu1 %vm339_vm0, %v7159_v56 }
 0x394   : > { %v9811_v20 = vpop.f32.mrf.mxu0  ;;  %v13189_v6 = vadd.f32 %v5412_v53, %v5173_v11  ;;  %v5176_v33 = vadd.f32 %v9755_v8, %v13037_v39  ;;  %10092 = vmatprep.mubr.msk.f32.mxu1 %vm339_vm0, %v7160_v52  ;;  %v7166_v53 = vld [vmem:[#allocation3 + $0xc2] sm:$0xff] }
 0x395   : > { %v5032_v38 = vpop.f32.mrf.mxu1 }
 0x396   : > { %v5422_v62 = vpop.f32.mrf.mxu0  ;;  %v13193_v14 = vadd.f32 %v9811_v20, %v5176_v33  ;;  %v5175_v49 = vadd.f32 %v5032_v38, %v13041_v40  ;;  %v7167_v33 = vld [vmem:[#allocation3 + $0xca] sm:$0xff] }
 0x397   : > { %v9758_v19 = vpop.f32.mrf.mxu1  ;;  %10093 = vmatmul.mubr.msk.f32.gmra.mxu1 %vm339_vm0, %v7161_v51 }
 0x398   : > { %v9814_v60 = vpop.f32.mrf.mxu0  ;;  %v13197_v41 = vadd.f32 %v5422_v62, %v5175_v49  ;;  %v5178_v44 = vadd.f32 %v9758_v19, %v13045_v57  ;;  %10095 = vmatprep.mubr.msk.f32.mxu1 %vm339_vm0, %v7162_v12  ;;  %v7168_v62 = vld [vmem:[#allocation3 + $0xda] sm:$0xff] }
 0x399   : > { %v5042_v39 = vpop.f32.mrf.mxu1 }
 0x39a   : > { %v5432_v54 = vpop.f32.mrf.mxu0  ;;  %v13201_v43 = vadd.f32 %v9814_v60, %v5178_v44  ;;  %v5177_v30 = vadd.f32 %v5042_v39, %v13049_v17  ;;  %v7169_v44 = vld [vmem:[#allocation3 + $0xe2] sm:$0xff] }
 0x39b   : > { %v9761_v40 = vpop.f32.mrf.mxu1  ;;  %10096 = vmatmul.mubr.msk.f32.gmra.mxu1 %vm339_vm0, %v7163_v18 }
 0x39c   : > { %v9817_v24 = vpop.f32.mrf.mxu0  ;;  %v13205_v3 = vadd.f32 %v5432_v54, %v5177_v30  ;;  %v5180_v48 = vadd.f32 %v9761_v40, %v13053_v34  ;;  %10098 = vmatprep.mubr.msk.f32.mxu1 %vm339_vm0, %v7164_v61  ;;  %v7170_v54 = vld [vmem:[#allocation3 + $0xf2] sm:$0xff] }
 0x39d   : > { %v5052_v57 = vpop.f32.mrf.mxu1 }
 0x39e   : > { %v5442_v55 = vpop.f32.mrf.mxu0  ;;  %v13209_v37 = vadd.f32 %v9817_v24, %v5180_v48  ;;  %v5179_v31 = vadd.f32 %v5052_v57, %v13057_v15  ;;  %v7171_v48 = vld [vmem:[#allocation3 + $0xfa] sm:$0xff] }
 0x39f   : > { %v9764_v17 = vpop.f32.mrf.mxu1  ;;  %10099 = vmatmul.mubr.msk.f32.gmra.mxu1 %vm339_vm0, %v7165_v7 }
 0x3a0   : > { %v9820_v46 = vpop.f32.mrf.mxu0  ;;  %v13213_v11 = vadd.f32 %v5442_v55, %v5179_v31  ;;  %v5182_v56 = vadd.f32 %v9764_v17, %v13061_v1  ;;  %10101 = vmatprep.mubr.msk.f32.mxu1 %vm339_vm0, %v7166_v53  ;;  %v7172_v55 = vld [vmem:[#allocation3 + $0x10a] sm:$0xff] }
 0x3a1   : > { %v5062_v34 = vpop.f32.mrf.mxu1 }
 0x3a2   : > { %v5452_v8 = vpop.f32.mrf.mxu0  ;;  %v13217_v20 = vadd.f32 %v9820_v46, %v5182_v56  ;;  %v5181_v52 = vadd.f32 %v5062_v34, %v13065_v9  ;;  %v7173_v56 = vld [vmem:[#allocation3 + $0x112] sm:$0xff] }
 0x3a3   : > { %v9767_v15 = vpop.f32.mrf.mxu1  ;;  %10102 = vmatmul.mubr.msk.f32.gmra.mxu1 %vm339_vm0, %v7167_v33 }
 0x3a4   : > { %v9823_v38 = vpop.f32.mrf.mxu0  ;;  %v13221_v49 = vadd.f32 %v5452_v8, %v5181_v52  ;;  %v5184_v51 = vadd.f32 %v9767_v15, %v13069_v10  ;;  %10104 = vmatprep.mubr.msk.f32.mxu1 %vm339_vm0, %v7168_v62  ;;  %v7174_v8 = vld [vmem:[#allocation3 + $0x122] sm:$0xff] }
 0x3a5   : > { %v5072_v1 = vpop.f32.mrf.mxu1 }
 0x3a6   : > { %v5462_v19 = vpop.f32.mrf.mxu0  ;;  %v13225_v60 = vadd.f32 %v9823_v38, %v5184_v51  ;;  %v5183_v12 = vadd.f32 %v5072_v1, %v13074_v50  ;;  %v7175_v51 = vld [vmem:[#allocation3 + $0x12a] sm:$0xff] }
 0x3a7   : > { %v9770_v9 = vpop.f32.mrf.mxu1  ;;  %10105 = vmatmul.mubr.msk.f32.gmra.mxu1 %vm339_vm0, %v7169_v44 }
 0x3a8   : > { %v9826_v39 = vpop.f32.mrf.mxu0  ;;  %v13229_v30 = vadd.f32 %v5462_v19, %v5183_v12  ;;  %v5186_v18 = vadd.f32 %v9770_v9, %v13079_v26  ;;  %10107 = vmatprep.mubr.msk.f32.mxu1 %vm339_vm0, %v7170_v54  ;;  %v7176_v19 = vld [vmem:[#allocation3 + $0x13a] sm:$0xff] }
 0x3a9   : > { %v5082_v10 = vpop.f32.mrf.mxu1 }
 0x3aa   : > { %v5472_v40 = vpop.f32.mrf.mxu0  ;;  %v13233_v24 = vadd.f32 %v9826_v39, %v5186_v18  ;;  %v5185_v61 = vadd.f32 %v5082_v10, %v13085_v25  ;;  %v7177_v18 = vld [vmem:[#allocation3 + $0x142] sm:$0xff] }
 0x3ab   : > { %v9773_v50 = vpop.f32.mrf.mxu1  ;;  %10108 = vmatmul.mubr.msk.f32.gmra.mxu1 %vm339_vm0, %v7171_v48 }
 0x3ac   : > { %v9829_v57 = vpop.f32.mrf.mxu0  ;;  %v13237_v31 = vadd.f32 %v5472_v40, %v5185_v61  ;;  %v5188_v7 = vadd.f32 %v9773_v50, %v13091_v23  ;;  %10110 = vmatprep.mubr.msk.f32.mxu1 %vm339_vm0, %v7172_v55  ;;  %v7178_v40 = vld [vmem:[#allocation3 + $0x152] sm:$0xff] }
 0x3ad   : > { %v5092_v26 = vpop.f32.mrf.mxu1 }
 0x3ae   : > { %v5482_v17 = vpop.f32.mrf.mxu0  ;;  %v13241_v46 = vadd.f32 %v9829_v57, %v5188_v7  ;;  %v5187_v53 = vadd.f32 %v5092_v26, %v13097_v42  ;;  %v7179_v7 = vld [vmem:[#allocation3 + $0x15a] sm:$0xff] }
 0x3af   : > { %v9776_v25 = vpop.f32.mrf.mxu1  ;;  %10111 = vmatmul.mubr.msk.f32.gmra.mxu1 %vm339_vm0, %v7173_v56 }
 0x3b0   : > { %v9832_v34 = vpop.f32.mrf.mxu0  ;;  %v13245_v52 = vadd.f32 %v5482_v17, %v5187_v53  ;;  %v5190_v33 = vadd.f32 %v9776_v25, %v13103_v21  ;;  %10113 = vmatprep.mubr.msk.f32.mxu1 %vm339_vm0, %v7174_v8  ;;  %v7180_v17 = vld [vmem:[#allocation3 + $0x16a] sm:$0xff] }
 0x3b1   : > { %v5102_v23 = vpop.f32.mrf.mxu1 }
 0x3b2   : > { %v5492_v15 = vpop.f32.mrf.mxu0  ;;  %v13249_v38 = vadd.f32 %v9832_v34, %v5190_v33  ;;  %v5189_v62 = vadd.f32 %v5102_v23, %v13109_v59  ;;  %v7181_v33 = vld [vmem:[#allocation3 + $0x172] sm:$0xff] }
 0x3b3   : > { %v9779_v42 = vpop.f32.mrf.mxu1  ;;  %10114 = vmatmul.mubr.msk.f32.gmra.mxu1 %vm339_vm0, %v7175_v51 }
 0x3b4   : > { %v9835_v1 = vpop.f32.mrf.mxu0  ;;  %v13253_v12 = vadd.f32 %v5492_v15, %v5189_v62  ;;  %v5192_v44 = vadd.f32 %v9779_v42, %v13115_v16  ;;  %10116 = vmatprep.mubr.msk.f32.mxu1 %vm339_vm0, %v7176_v19  ;;  %v7184_v42 = vld [vmem:[#allocation3 + $0x19a] sm:$0xff] }
 0x3b5   : > { %v5112_v21 = vpop.f32.mrf.mxu1 }
 0x3b6   : > { %v5502_v9 = vpop.f32.mrf.mxu0  ;;  %v13257_v39 = vadd.f32 %v9835_v1, %v5192_v44  ;;  %v5191_v54 = vadd.f32 %v5112_v21, %v13121_v63 }
 0x3b7   : > { %v9782_v59 = vpop.f32.mrf.mxu1  ;;  %10117 = vmatmul.mubr.msk.f32.gmra.mxu1 %vm339_vm0, %v7177_v18 }
 0x3b8   : > { %v9838_v10 = vpop.f32.mrf.mxu0  ;;  %v13261_v61 = vadd.f32 %v5502_v9, %v5191_v54  ;;  %v5194_v48 = vadd.f32 %v9782_v59, %v13127_v29  ;;  %10119 = vmatprep.mubr.msk.f32.mxu1 %vm339_vm0, %v7178_v40 }
 0x3b9   : > { %v5122_v16 = vpop.f32.mrf.mxu1 }
 0x3ba   : > { %v5512_v50 = vpop.f32.mrf.mxu0  ;;  %v13265_v57 = vadd.f32 %v9838_v10, %v5194_v48  ;;  %v5193_v55 = vadd.f32 %v5122_v16, %v13133_v45 }
 0x3bb   : > { %v9785_v63 = vpop.f32.mrf.mxu1  ;;  %10120 = vmatmul.mubr.msk.f32.gmra.mxu1 %vm339_vm0, %v7179_v7 }
 0x3bc   : > { %v9841_v26 = vpop.f32.mrf.mxu0  ;;  %v13269_v53 = vadd.f32 %v5512_v50, %v5193_v55  ;;  %v5196_v56 = vadd.f32 %v9785_v63, %v13138_v0  ;;  %10122 = vmatprep.mubr.msk.f32.mxu1 %vm339_vm0, %v7180_v17 }
 0x3bd   : > { %v5132_v29 = vpop.f32.mrf.mxu1 }
 0x3be   : > { %v5522_v25 = vpop.f32.mrf.mxu0  ;;  %v13273_v34 = vadd.f32 %v9841_v26, %v5196_v56  ;;  %v5195_v8 = vadd.f32 %v5132_v29, %v13144_v4 }
 0x3bf   : > { %v9788_v45 = vpop.f32.mrf.mxu1  ;;  %10123 = vmatmul.mubr.msk.f32.gmra.mxu1 %vm339_vm0, %v7181_v33 }
 0x3c0   : > { %v9844_v23 = vpop.f32.mrf.mxu0  ;;  %v13277_v15 = vadd.f32 %v5522_v25, %v5195_v8  ;;  %v5198_v62 = vadd.f32 %v9788_v45, %v13148_v28  ;;  %10125 = vmatprep.mubr.msk.f32.mxu1 %vm339_vm0, %v13002_v22  ;;  %v7185_v28 = vld [vmem:[#allocation3 + $0x1a2] sm:$0xff] }
 0x3c1   : > { %v5142_v0 = vpop.f32.mrf.mxu1 }
 0x3c2   : > { %v5532_v51 = vpop.f32.mrf.mxu0  ;;  %v13282_v1 = vadd.f32 %v9844_v23, %v5198_v62  ;;  %v5197_v19 = vadd.f32 %v5142_v0, %v13154_v47 }
 0x3c3   : > { %v9791_v4 = vpop.f32.mrf.mxu1  ;;  %10126 = vmatmul.mubr.msk.f32.gmra.mxu1 %vm339_vm0, %v13010_v27 }
 0x3c4   : > { %v9847_v44 = vpop.f32.mrf.mxu0  ;;  %v13287_v21 = vadd.f32 %v5532_v51, %v5197_v19  ;;  %v5200_v9 = vadd.f32 %v9791_v4, %v13160_v2  ;;  %10128 = vmatprep.mubr.msk.f32.mxu1 %vm339_vm0, %v7184_v42 }
 0x3c5   : > { %v5152_v22 = vpop.f32.mrf.mxu1 }
 0x3c6   : > { %v5542_v54 = vpop.f32.mrf.mxu0  ;;  %v13291_v18 = vadd.f32 %v9847_v44, %v5200_v9  ;;  %v5199_v59 = vadd.f32 %v5152_v22, %v13164_v35 }
 0x3c7   : > { %v9794_v10 = vpop.f32.mrf.mxu1  ;;  %10129 = vmatmul.mubr.msk.f32.gmra.mxu1 %vm339_vm0, %v7185_v28 }
 0x3c8   : > { %v9850_v47 = vpop.f32.mrf.mxu0  ;;  %v13295_v40 = vadd.f32 %v5542_v54, %v5199_v59  ;;  %v5202_v27 = vadd.f32 %v9794_v10, %v13168_v32 }
 0x3c9   : > { %v5162_v48 = vpop.f32.mrf.mxu1 }
 0x3ca   : > { %v5552_v16 = vpop.f32.mrf.mxu0  ;;  %v13298_v2 = vadd.f32 %v9850_v47, %v5202_v27  ;;  %v5201_v50 = vadd.f32 %v5162_v48, %v13171_v13 }
 0x3cb   : > { %v9861_v55 = vpop.f32.mrf.mxu1 }
 0x3cc   : > { %v13301_v7 = vpop.f32.mrf.mxu0  ;;  %v13303_v63 = vadd.f32 %v5552_v16, %v5201_v50  ;;  %v13306_v35 = vadd.f32 %v9861_v55, %v13178_v5 }
 0x3cd   : > { %v5792_v26 = vpop.f32.mrf.mxu1 }
 0x3ce   : > { %v13308_v17 = vpop.f32.mrf.mxu0  ;;  %v13311_v56 = vadd.f32 %v5792_v26, %v13181_v58 }
 0x3cf   : > { %v9864_v32 = vpop.f32.mrf.mxu1 }
 0x3d0   : > { %v13313_v29 = vpop.f32.mrf.mxu0  ;;  %v13316_v25 = vadd.f32 %v9864_v32, %v13185_v36 }
 0x3d1   : > { %v5802_v13 = vpop.f32.mrf.mxu1 }
 0x3d2   : > { %v13318_v8 = vpop.f32.mrf.mxu0  ;;  %v13321_v33 = vadd.f32 %v5802_v13, %v13189_v6 }
 0x3d3   : > { %v9867_v5 = vpop.f32.mrf.mxu1 }
 0x3d4   : > { %v13323_v45 = vpop.f32.mrf.mxu0  ;;  %v13326_v23 = vadd.f32 %v9867_v5, %v13193_v14 }
 0x3d5   : > { %v5812_v58 = vpop.f32.mrf.mxu1 }
 0x3d6   : > { %v13328_v62 = vpop.f32.mrf.mxu0  ;;  %v13331_v0 = vadd.f32 %v5812_v58, %v13197_v41 }
 0x3d7   : > { %v9870_v36 = vpop.f32.mrf.mxu1 }
 0x3d8   : > { %v13333_v51 = vpop.f32.mrf.mxu0  ;;  %v13336_v42 = vadd.f32 %v9870_v36, %v13201_v43 }
 0x3d9   : > { %v5822_v6 = vpop.f32.mrf.mxu1 }
 0x3da   : > { %v13338_v19 = vpop.f32.mrf.mxu0  ;;  %v13341_v4 = vadd.f32 %v5822_v6, %v13205_v3 }
 0x3db   : > { %v9873_v14 = vpop.f32.mrf.mxu1 }
 0x3dc   : > { %v13343_v44 = vpop.f32.mrf.mxu0  ;;  %v13346_v9 = vadd.f32 %v9873_v14, %v13209_v37 }
 0x3dd   : > { %v5832_v41 = vpop.f32.mrf.mxu1 }
 0x3de   : > { %v13348_v28 = vpop.f32.mrf.mxu0  ;;  %v13351_v22 = vadd.f32 %v5832_v41, %v13213_v11 }
 0x3df   : > { %v9876_v43 = vpop.f32.mrf.mxu1 }
 0x3e0   : > { %v13353_v54 = vpop.f32.mrf.mxu0  ;;  %v13356_v59 = vadd.f32 %v9876_v43, %v13217_v20 }
 0x3e1   : > { %v5842_v3 = vpop.f32.mrf.mxu1 }
 0x3e2   : > { %v13358_v10 = vpop.f32.mrf.mxu0  ;;  %v13361_v47 = vadd.f32 %v5842_v3, %v13221_v49 }
 0x3e3   : > { %v9879_v37 = vpop.f32.mrf.mxu1 }
 0x3e4   : > { %v13363_v27 = vpop.f32.mrf.mxu0  ;;  %v13366_v48 = vadd.f32 %v9879_v37, %v13225_v60 }
 0x3e5   : > { %v5852_v11 = vpop.f32.mrf.mxu1 }
 0x3e6   : > { %v13368_v16 = vpop.f32.mrf.mxu0  ;;  %v13371_v50 = vadd.f32 %v5852_v11, %v13229_v30 }
 0x3e7   : > { %v9882_v20 = vpop.f32.mrf.mxu1 }
 0x3e8   : > { %v13373_v55 = vpop.f32.mrf.mxu0  ;;  %v13376_v26 = vadd.f32 %v9882_v20, %v13233_v24 }
 0x3e9   : > { %14246 = vst [vmem:[#allocation38_spill] sm:$0xff] %v13373_v55  ;;  %v5862_v49 = vpop.f32.mrf.mxu1 }
 0x3ea   : > { %14247 = vst [vmem:[#allocation34_spill] sm:$0xff] %v13376_v26  ;;  %v13378_v32 = vpop.f32.mrf.mxu0  ;;  %v13381_v13 = vadd.f32 %v5862_v49, %v13237_v31 }
 0x3eb   : > { %14248 = vst [vmem:[#allocation39_spill] sm:$0xff] %v13378_v32  ;;  %v9885_v60 = vpop.f32.mrf.mxu1 }
 0x3ec   : > { %14249 = vst [vmem:[#allocation26_spill] sm:$0xff] %v13381_v13  ;;  %v13383_v5 = vpop.f32.mrf.mxu0  ;;  %v13386_v58 = vadd.f32 %v9885_v60, %v13241_v46 }
 0x3ed   : > { %14250 = vst [vmem:[#allocation41_spill] sm:$0xff] %v13383_v5  ;;  %v5872_v30 = vpop.f32.mrf.mxu1 }
 0x3ee   : > { %14251 = vst [vmem:[#allocation40_spill] sm:$0xff] %v13386_v58  ;;  %v13388_v36 = vpop.f32.mrf.mxu0  ;;  %v13391_v6 = vadd.f32 %v5872_v30, %v13245_v52 }
 0x3ef   : > { %14252 = vst [vmem:[#allocation89_spill] sm:$0xff] %v13388_v36  ;;  %v9888_v24 = vpop.f32.mrf.mxu1 }
 0x3f0   : > { %14253 = vst [vmem:[#allocation87_spill] sm:$0xff] %v13391_v6  ;;  %v13393_v14 = vpop.f32.mrf.mxu0  ;;  %v13396_v41 = vadd.f32 %v9888_v24, %v13249_v38 }
 0x3f1   : > { %14254 = vst [vmem:[#allocation42_spill] sm:$0xff] %v13393_v14  ;;  %v5882_v31 = vpop.f32.mrf.mxu1 }
 0x3f2   : > { %14255 = vst [vmem:[#allocation45_spill] sm:$0xff] %v13396_v41  ;;  %v13398_v43 = vpop.f32.mrf.mxu0  ;;  %v13401_v3 = vadd.f32 %v5882_v31, %v13253_v12 }
 0x3f3   : > { %14256 = vst [vmem:[#allocation92_spill] sm:$0xff] %v13398_v43  ;;  %v9891_v46 = vpop.f32.mrf.mxu1 }
 0x3f4   : > { %14257 = vst [vmem:[#allocation88_spill] sm:$0xff] %v13401_v3  ;;  %v13403_v37 = vpop.f32.mrf.mxu0  ;;  %v13406_v11 = vadd.f32 %v9891_v46, %v13257_v39 }
 0x3f5   : > { %14258 = vst [vmem:[#allocation27_spill] sm:$0xff] %v13403_v37  ;;  %v5892_v52 = vpop.f32.mrf.mxu1 }
 0x3f6   : > { %14259 = vst [vmem:[#allocation44_spill] sm:$0xff] %v13406_v11  ;;  %v13408_v20 = vpop.f32.mrf.mxu0  ;;  %v13411_v49 = vadd.f32 %v5892_v52, %v13261_v61 }
 0x3f7   : > { %14260 = vst [vmem:[#allocation43_spill] sm:$0xff] %v13408_v20  ;;  %v9894_v38 = vpop.f32.mrf.mxu1 }
 0x3f8   : > { %14261 = vst [vmem:[#allocation95_spill] sm:$0xff] %v13411_v49  ;;  %v13413_v60 = vpop.f32.mrf.mxu0  ;;  %v13416_v30 = vadd.f32 %v9894_v38, %v13265_v57 }
 0x3f9   : > { %14262 = vst [vmem:[#allocation90_spill] sm:$0xff] %v13413_v60  ;;  %v5902_v12 = vpop.f32.mrf.mxu1 }
 0x3fa   : > { %14263 = vst [vmem:[#allocation46_spill] sm:$0xff] %v13416_v30  ;;  %v13418_v24 = vpop.f32.mrf.mxu0  ;;  %v13421_v31 = vadd.f32 %v5902_v12, %v13269_v53 }
 0x3fb   : > { %14264 = vst [vmem:[#allocation49_spill] sm:$0xff] %v13418_v24  ;;  %v9897_v39 = vpop.f32.mrf.mxu1 }
 0x3fc   : > { %14265 = vst [vmem:[#allocation98_spill] sm:$0xff] %v13421_v31  ;;  %v13423_v46 = vpop.f32.mrf.mxu0  ;;  %v13426_v20 = vadd.f32 %v9897_v39, %v13273_v34 }
 0x3fd   : > { %14266 = vst [vmem:[#allocation91_spill] sm:$0xff] %v13423_v46  ;;  %v5912_v61 = vpop.f32.mrf.mxu1 }
 0x3fe   : > { %14267 = vst [vmem:[#allocation28_spill] sm:$0xff] %v13426_v20  ;;  %v13428_v52 = vpop.f32.mrf.mxu0  ;;  %v13431_v60 = vadd.f32 %v5912_v61, %v13277_v15 }
 0x3ff   : > { %14268 = vst [vmem:[#allocation48_spill] sm:$0xff] %v13428_v52  ;;  %v9900_v57 = vpop.f32.mrf.mxu1 }
 0x400   : > { %14269 = vst [vmem:[#allocation47_spill] sm:$0xff] %v13431_v60  ;;  %v13433_v38 = vpop.f32.mrf.mxu0  ;;  %v13436_v24 = vadd.f32 %v9900_v57, %v13282_v1 }
 0x401   : > { %14270 = vst [vmem:[#allocation101_spill] sm:$0xff] %v13433_v38  ;;  %v5922_v53 = vpop.f32.mrf.mxu1 }
 0x402   : > { %14271 = vst [vmem:[#allocation93_spill] sm:$0xff] %v13436_v24  ;;  %v13438_v12 = vpop.f32.mrf.mxu0  ;;  %v13441_v46 = vadd.f32 %v5922_v53, %v13287_v21 }
 0x403   : > { %14272 = vst [vmem:[#allocation50_spill] sm:$0xff] %v13438_v12  ;;  %v9903_v34 = vpop.f32.mrf.mxu1 }
 0x404   : > { %14273 = vst [vmem:[#allocation53_spill] sm:$0xff] %v13441_v46  ;;  %v13443_v39 = vpop.f32.mrf.mxu0  ;;  %v13446_v52 = vadd.f32 %v9903_v34, %v13291_v18 }
 0x405   : > { %14274 = vst [vmem:[#allocation104_spill] sm:$0xff] %v13443_v39  ;;  %v5932_v15 = vpop.f32.mrf.mxu1 }
 0x406   : > { %14275 = vst [vmem:[#allocation94_spill] sm:$0xff] %v13446_v52  ;;  %v13448_v61 = vpop.f32.mrf.mxu0  ;;  %v13451_v38 = vadd.f32 %v5932_v15, %v13295_v40 }
 0x407   : > { %14276 = vst [vmem:[#allocation52_spill] sm:$0xff] %v13448_v61  ;;  %v9906_v1 = vpop.f32.mrf.mxu1 }
 0x408   : > { %14277 = vst [vmem:[#allocation51_spill] sm:$0xff] %v13451_v38  ;;  %v13453_v57 = vpop.f32.mrf.mxu0  ;;  %v13456_v12 = vadd.f32 %v9906_v1, %v13298_v2 }
 0x409   : > { %14278 = vst [vmem:[#allocation107_spill] sm:$0xff] %v13453_v57  ;;  %v5942_v21 = vpop.f32.mrf.mxu1 }
 0x40a   : > { %14279 = vst [vmem:[#allocation96_spill] sm:$0xff] %v13456_v12  ;;  %v13458_v53 = vpop.f32.mrf.mxu0  ;;  %v13461_v39 = vadd.f32 %v5942_v21, %v13303_v63 }
 0x40b   : > { %14280 = vst [vmem:[#allocation54_spill] sm:$0xff] %v13458_v53  ;;  %v9973_v18 = vpop.f32.mrf.mxu1 }
 0x40c   : > { %14281 = vst [vmem:[#allocation57_spill] sm:$0xff] %v13461_v39  ;;  %v10029_v34 = vpop.f32.mrf.mxu0 }
 0x40d   : > { %v6573_v52 = vpop.f32.mrf.mxu1 }
 0x40e   : > { %v6963_v46 = vpop.f32.mrf.mxu0 }
 0x40f   : > { %v9976_v61 = vpop.f32.mrf.mxu1 }
 0x410   : > { %v10032_v40 = vpop.f32.mrf.mxu0 }
 0x411   : > { %v6583_v24 = vpop.f32.mrf.mxu1 }
 0x412   : > { %v13467_v57 = vpop.f32.mrf.mxu0 }
 0x413   : > { %v13463_v15 = vpop.f32.mrf.mxu1 }
 0x414   : > { %v13473_v53 = vpop.f32.mrf.mxu0 }
 0x415   : > { %v13465_v38 = vpop.f32.mrf.mxu1 }
 0x416   : > { %v13479_v39 = vpop.f32.mrf.mxu0 }
 0x417   : > { %v13469_v2 = vpop.f32.mrf.mxu1 }
 0x418   : > { %v13485_v20 = vpop.f32.mrf.mxu0 }
 0x419   : > { %v13471_v1 = vpop.f32.mrf.mxu1 }
 0x41a   : > { %v13491_v49 = vpop.f32.mrf.mxu0 }
 0x41b   : > { %v13475_v63 = vpop.f32.mrf.mxu1 }
 0x41c   : > { %v13497_v43 = vpop.f32.mrf.mxu0 }
 0x41d   : > { %v13477_v21 = vpop.f32.mrf.mxu1 }
 0x41e   : > { %v13503_v41 = vpop.f32.mrf.mxu0 }
 0x41f   : > { %v13481_v12 = vpop.f32.mrf.mxu1 }
 0x420   : > { %v13509_v5 = vpop.f32.mrf.mxu0 }
 0x421   : > { %v13483_v60 = vpop.f32.mrf.mxu1 }
 0x423   : > { %v13487_v31 = vpop.f32.mrf.mxu1 }
 0x425   : > { %v13489_v30 = vpop.f32.mrf.mxu1 }
 0x426   : > { %14282 = vst [vmem:[#allocation110_spill] sm:$0xff] %v13489_v30 }
 0x427   : > { %v13493_v37 = vpop.f32.mrf.mxu1 }
 0x428   : > { %14283 = vst [vmem:[#allocation97_spill] sm:$0xff] %v13493_v37  ;;  %v13515_v37 = vpop.f32.mrf.mxu0 }
 0x429   : > { %v13495_v11 = vpop.f32.mrf.mxu1  ;;  %14291 = vst [vmem:[#allocation59_spill] sm:$0xff] %v13515_v37 }
 0x42a   : > { %14284 = vst [vmem:[#allocation56_spill] sm:$0xff] %v13495_v11 }
 0x42b   : > { %v13499_v3 = vpop.f32.mrf.mxu1 }
 0x42c   : > { %14285 = vst [vmem:[#allocation55_spill] sm:$0xff] %v13499_v3  ;;  %v13521_v3 = vpop.f32.mrf.mxu0 }
 0x42d   : > { %v13501_v14 = vpop.f32.mrf.mxu1  ;;  %14294 = vst [vmem:[#allocation65_spill] sm:$0xff] %v13521_v3 }
 0x42e   : > { %14286 = vst [vmem:[#allocation99_spill] sm:$0xff] %v13501_v14 }
 0x42f   : > { %v13505_v36 = vpop.f32.mrf.mxu1 }
 0x430   : > { %14287 = vst [vmem:[#allocation58_spill] sm:$0xff] %v13505_v36  ;;  %v13527_v36 = vpop.f32.mrf.mxu0 }
 0x431   : > { %v13507_v6 = vpop.f32.mrf.mxu1  ;;  %14297 = vst [vmem:[#allocation63_spill] sm:$0xff] %v13527_v36 }
 0x432   : > { %14288 = vst [vmem:[#allocation61_spill] sm:$0xff] %v13507_v6 }
 0x433   : > { %v13511_v58 = vpop.f32.mrf.mxu1 }
 0x434   : > { %14289 = vst [vmem:[#allocation100_spill] sm:$0xff] %v13511_v58  ;;  %v13533_v58 = vpop.f32.mrf.mxu0 }
 0x435   : > { %v13513_v32 = vpop.f32.mrf.mxu1  ;;  %14300 = vst [vmem:[#allocation69_spill] sm:$0xff] %v13533_v58 }
 0x436   : > { %14290 = vst [vmem:[#allocation60_spill] sm:$0xff] %v13513_v32 }
 0x437   : > { %v13517_v11 = vpop.f32.mrf.mxu1 }
 0x438   : > { %14292 = vst [vmem:[#allocation102_spill] sm:$0xff] %v13517_v11  ;;  %v6342_v11 = vadd.f32 %v13301_v7, %v13306_v35  ;;  %v6343_v7 = vadd.f32 %v13318_v8, %v13321_v33  ;;  %v6346_v8 = vadd.f32 %v13323_v45, %v13326_v23  ;;  %v6345_v33 = vadd.f32 %v13328_v62, %v13331_v0 }
 0x439   : > { %v13519_v13 = vpop.f32.mrf.mxu1 }
 0x43a   : > { %14293 = vst [vmem:[#allocation62_spill] sm:$0xff] %v13519_v13  ;;  %v6733_v3 = vadd.f32 %v9973_v18, %v6342_v11  ;;  %v14305_v11 = vld [vmem:[#allocation115_spill] sm:$0xff]  ;;  %v6734_v37 = vadd.f32 %v6583_v24, %v6343_v7  ;;  %v6736_v24 = vadd.f32 %v13465_v38, %v6345_v33 }
 0x43b   : > { %v13523_v14 = vpop.f32.mrf.mxu1  ;;  %v14306_v18 = vsub.s32 0, %v14305_v11 }
 0x43c   : > { %14295 = vst [vmem:[#allocation103_spill] sm:$0xff] %v13523_v14  ;;  %v6341_v14 = vadd.f32 %v13308_v17, %v13311_v56  ;;  %v7123_v35 = vadd.f32 %v10029_v34, %v6733_v3  ;;  %v7124_v23 = vadd.f32 %v13467_v57, %v6734_v37 }
 0x43d   : > { %v13525_v30 = vpop.f32.mrf.mxu1 }
 0x43e   : > { %14296 = vst [vmem:[#allocation64_spill] sm:$0xff] %v13525_v30  ;;  %v13543_v30 = vpop.f32.mrf.mxu0 }
 0x43f   : > { %v13529_v6 = vpop.f32.mrf.mxu1  ;;  %14303 = vst [vmem:[#allocation67_spill] sm:$0xff] %v13543_v30 }
 0x440   : > { %14298 = vst [vmem:[#allocation105_spill] sm:$0xff] %v13529_v6  ;;  %v6732_v6 = vadd.f32 %v6573_v52, %v6341_v14  ;;  %v13556_v56 = vpop.f32.mrf.mxu0 }
 0x441   : > { %v13531_v55 = vpop.f32.mrf.mxu1 }
 0x442   : > { %14299 = vst [vmem:[#allocation66_spill] sm:$0xff] %v13531_v55  ;;  %v7544_v55 = vld [vmem:[%s13912_s5] sm:$0x3]  ;;  %v7122_v30 = vadd.f32 %v6963_v46, %v6732_v6  ;;  %v13570_v3 = vpop.f32.mrf.mxu0  ;;  %v7618_v46 = vld [vmem:[%s10633_s14 + $0x8] sm:$0xff] }
 0x443   : > { %v13535_v32 = vpop.f32.mrf.mxu1 }
 0x444   : > { %14301 = vst [vmem:[#allocation106_spill] sm:$0xff] %v13535_v32  ;;  %v6344_v32 = vadd.f32 %v13313_v29, %v13316_v25  ;;  %v14307_v29 = vsub.s32 1, %v14305_v11  ;;  %v13585_v34 = vpop.f32.mrf.mxu0 }
 0x445   : > { %v13539_v13 = vpop.f32.mrf.mxu1 }
 0x446   : > { %14302 = vst [vmem:[#allocation68_spill] sm:$0xff] %v13539_v13  ;;  %v6735_v17 = vadd.f32 %v9976_v61, %v6344_v32  ;;  %v13564_v25 = vrot.slane %v7544_v55, %v14307_v29 }
 0x447   : > { %v13545_v36 = vpop.f32.mrf.mxu1 }
 0x448   : > { %14304 = vst [vmem:[#allocation108_spill] sm:$0xff] %v13545_v36  ;;  %v13560_v36 = vrot.slane %v7544_v55, %v14306_v18  ;;  %v7125_v14 = vadd.f32 %v10032_v40, %v6735_v17  ;;  %v6737_v55 = vadd.f32 %v13463_v15, %v6346_v8  ;;  %v6350_v15 = vadd.f32 %v13343_v44, %v13346_v9 }
 0x449   : > { %v13552_v58 = vpop.f32.mrf.mxu1  ;;  %v6349_v8 = vadd.f32 %v13348_v28, %v13351_v22 }
 0x44a   : > { %v7127_v7 = vadd.f32 %v13473_v53, %v6737_v55  ;;  %v6741_v9 = vadd.f32 %v13475_v63, %v6350_v15  ;;  %v7619_v53 = vld [vmem:[%s10633_s14 + $0x10] sm:$0xff]  ;;  %v6351_v63 = vadd.f32 %v13358_v10, %v13361_v47  ;;  %v7621_v47 = vld [vmem:[%s10633_s14 + $0x20] sm:$0xff] }
 0x44b   : > { %v10085_v13 = vpop.f32.mrf.mxu1 }
 0x44c   : > { %v7513_v26 = vadd.f32 %v10085_v13, %v7123_v35  ;;  %v6348_v13 = vadd.f32 %v13333_v51, %v13336_v42  ;;  %v7617_v51 = vld [vmem:[%s10633_s14] sm:$0xff] }
 0x44d   : > { %v7353_v32 = vpop.f32.mrf.mxu1 }
 0x44e   : > { %v7550_v52 = vmul.f32 %v13560_v36, %v7513_v26  ;;  %v7512_v6 = vadd.f32 %v7353_v32, %v7122_v30  ;;  %v6347_v26 = vadd.f32 %v13338_v19, %v13341_v4  ;;  %v6739_v30 = vadd.f32 %v13469_v2, %v6348_v13  ;;  %v7620_v2 = vld [vmem:[%s10633_s14 + $0x18] sm:$0xff] }
 0x44f   : > { %v10088_v45 = vpop.f32.mrf.mxu1  ;;  %v7126_v19 = vadd.f32 %v13479_v39, %v6736_v24 }
 0x450   : > { %v7586_v62 = vadd.f32 %v13564_v25, %v7550_v52  ;;  %v7549_v0 = vmul.f32 %v13560_v36, %v7512_v6  ;;  %v7515_v61 = vadd.f32 %v10088_v45, %v7125_v14  ;;  %v6738_v4 = vadd.f32 %v13471_v1, %v6347_v26  ;;  %v13602_v1 = vpop.f32.mrf.mxu0 }
 0x451   : > { %v7363_v42 = vpop.f32.mrf.mxu1  ;;  %v7129_v44 = vadd.f32 %v13485_v20, %v6739_v30  ;;  %v6352_v20 = vadd.f32 %v13353_v54, %v13356_v59  ;;  %v6740_v54 = vadd.f32 %v13477_v21, %v6349_v8  ;;  %v6354_v21 = vadd.f32 %v13363_v27, %v13366_v48 }
 0x452   : > { %v7650_v38 = vadd.f32 %v7618_v46, %v7586_v62  ;;  %v7585_v40 = vadd.f32 %v13564_v25, %v7549_v0  ;;  %v7552_v37 = vmul.f32 %v13560_v36, %v7515_v61  ;;  %v7514_v57 = vadd.f32 %v7363_v42, %v7124_v23  ;;  %v7622_v46 = vld [vmem:[%s10633_s14 + $0x28] sm:$0xff]  ;;  %v13625_v0 = vpop.f32.mrf.mxu0 }
 0x453   : > { %v10091_v35 = vpop.f32.mrf.mxu1  ;;  %v7128_v52 = vadd.f32 %v13491_v49, %v6738_v4  ;;  %v7131_v62 = vadd.f32 %v13497_v43, %v6741_v9  ;;  %v6743_v59 = vadd.f32 %v13481_v12, %v6352_v20  ;;  %v6353_v12 = vadd.f32 %v13368_v16, %v13371_v50  ;;  %v14313_v20 = vld [vmem:[#allocation39_spill] sm:$0xff] }
 0x454   : > { %v7682_v17 = vmax.f32 %v7650_v38, 0.0  ;;  %v7649_v11 = vadd.f32 %v7617_v51, %v7585_v40  ;;  %v7588_v18 = vadd.f32 %v13564_v25, %v7552_v37  ;;  %v7551_v29 = vmul.f32 %v13560_v36, %v7514_v57  ;;  %v7624_v38 = vld [vmem:[%s10633_s14 + $0x38] sm:$0xff]  ;;  %v13645_v4 = vpop.f32.mrf.mxu0 }
 0x455   : > { %v7517_v33 = vadd.f32 %v10091_v35, %v7127_v7  ;;  %v7373_v39 = vpop.f32.mrf.mxu1  ;;  %v6742_v51 = vadd.f32 %v13483_v60, %v6351_v63  ;;  %v7130_v27 = vadd.f32 %v13503_v41, %v6740_v54  ;;  %v7133_v48 = vadd.f32 %v13509_v5, %v6743_v59  ;;  %v7623_v60 = vld [vmem:[%s10633_s14 + $0x30] sm:$0xff]  ;;  %v14310_v41 = vld [vmem:[#allocation59_spill] sm:$0xff]  ;;  %v14311_v5 = vld [vmem:[#allocation110_spill] sm:$0xff] }
 0x456   : > { %7714 = vst.msk [vmem:[%s13605_s4 + $0x8] sm:$0xff] %vm339_vm0, %v7682_v17  ;;  %v7681_v32 = vmax.f32 %v7649_v11, 0.0  ;;  %v7652_v14 = vadd.f32 %v7620_v2, %v7588_v18  ;;  %v7587_v28 = vadd.f32 %v13564_v25, %v7551_v29  ;;  %v7516_v22 = vadd.f32 %v7373_v39, %v7126_v19  ;;  %v14308_v18 = vld [vmem:[#allocation34_spill] sm:$0xff] }
 0x457   : > { %v7554_v6 = vmul.f32 %v13560_v36, %v7517_v33  ;;  %v10094_v13 = vpop.f32.mrf.mxu1  ;;  %v6745_v16 = vadd.f32 %v13487_v31, %v6354_v21  ;;  %v14309_v29 = vld [vmem:[#allocation38_spill] sm:$0xff]  ;;  %v6744_v9 = vadd.f32 %v14311_v5, %v6353_v12  ;;  %v7626_v31 = vld [vmem:[%s10633_s14 + $0x48] sm:$0xff] }
 0x458   : > { %7713 = vst.msk [vmem:[%s13605_s4] sm:$0xff] %vm339_vm0, %v7681_v32  ;;  %v7684_v55 = vmax.f32 %v7652_v14, 0.0  ;;  %v7651_v24 = vadd.f32 %v7619_v53, %v7587_v28  ;;  %v7553_v45 = vmul.f32 %v13560_v36, %v7516_v22  ;;  %v7519_v23 = vadd.f32 %v10094_v13, %v7129_v44  ;;  %v14312_v22 = vld [vmem:[#allocation26_spill] sm:$0xff] }
 0x459   : > { %v7590_v10 = vadd.f32 %v13564_v25, %v7554_v6  ;;  %v7383_v49 = vpop.f32.mrf.mxu1  ;;  %v6356_v8 = vadd.f32 %v14309_v29, %v14308_v18  ;;  %v7132_v44 = vadd.f32 %v14310_v41, %v6742_v51  ;;  %v6355_v63 = vadd.f32 %v14313_v20, %v14312_v22  ;;  %v14315_v6 = vld [vmem:[#allocation41_spill] sm:$0xff]  ;;  %v7625_v59 = vld [vmem:[%s10633_s14 + $0x40] sm:$0xff] }
 0x45a   : > { %7716 = vst.msk [vmem:[%s13605_s4 + $0x18] sm:$0xff] %vm339_vm0, %v7684_v55  ;;  %v7683_v61 = vmax.f32 %v7651_v24, 0.0  ;;  %v7589_v26 = vadd.f32 %v13564_v25, %v7553_v45  ;;  %v7556_v30 = vmul.f32 %v13560_v36, %v7519_v23  ;;  %v7518_v43 = vadd.f32 %v7383_v49, %v7128_v52  ;;  %v14314_v52 = vld [vmem:[#allocation40_spill] sm:$0xff]  ;;  %v14316_v55 = vld [vmem:[#allocation65_spill] sm:$0xff]  ;;  %v13665_v23 = vpop.f32.mrf.mxu0  ;;  %v14317_v49 = vld [vmem:[#allocation63_spill] sm:$0xff] }
 0x45b   : > { %v7654_v42 = vadd.f32 %v7622_v46, %v7590_v10  ;;  %v10097_v40 = vpop.f32.mrf.mxu1  ;;  %v6358_v13 = vadd.f32 %v14315_v6, %v14314_v52  ;;  %v7135_v24 = vadd.f32 %v14316_v55, %v6745_v16  ;;  %v7628_v51 = vld [vmem:[%s10633_s14 + $0x58] sm:$0xff]  ;;  %v14323_v16 = vld [vmem:[#allocation42_spill] sm:$0xff]  ;;  %v14328_v52 = vld [vmem:[#allocation88_spill] sm:$0xff] }
 0x45c   : > { %7715 = vst.msk [vmem:[%s13605_s4 + $0x10] sm:$0xff] %vm339_vm0, %v7683_v61  ;;  %v7653_v37 = vadd.f32 %v7621_v47, %v7589_v26  ;;  %v7592_v57 = vadd.f32 %v13564_v25, %v7556_v30  ;;  %v7555_v15 = vmul.f32 %v13560_v36, %v7518_v43  ;;  %v7521_v7 = vadd.f32 %v10097_v40, %v7131_v62  ;;  %v14318_v26 = vld [vmem:[#allocation97_spill] sm:$0xff]  ;;  %v14319_v43 = vld [vmem:[#allocation56_spill] sm:$0xff] }
 0x45d   : > { %v7686_v50 = vmax.f32 %v7654_v42, 0.0  ;;  %v7393_v19 = vpop.f32.mrf.mxu1  ;;  %v7134_v61 = vadd.f32 %v14317_v49, %v6744_v9  ;;  %v6747_v30 = vadd.f32 %v14318_v26, %v6356_v8  ;;  %v6746_v21 = vadd.f32 %v14319_v43, %v6355_v63  ;;  %v14326_v9 = vld [vmem:[#allocation67_spill] sm:$0xff]  ;;  %v14329_v6 = vld [vmem:[#allocation92_spill] sm:$0xff] }
 0x45e   : > { %v7685_v2 = vmax.f32 %v7653_v37, 0.0  ;;  %v7656_v35 = vadd.f32 %v7624_v38, %v7592_v57  ;;  %v7591_v17 = vadd.f32 %v13564_v25, %v7555_v15  ;;  %v7558_v11 = vmul.f32 %v13560_v36, %v7521_v7  ;;  %v14320_v15 = vld [vmem:[#allocation87_spill] sm:$0xff]  ;;  %v14321_v7 = vld [vmem:[#allocation89_spill] sm:$0xff]  ;;  %v14331_v26 = vld [vmem:[#allocation44_spill] sm:$0xff] }
 0x45f   : > { %7718 = vst.msk [vmem:[%s13605_s4 + $0x28] sm:$0xff] %vm339_vm0, %v7686_v50  ;;  %v7520_v53 = vadd.f32 %v7393_v19, %v7130_v27  ;;  %v10100_v33 = vpop.f32.mrf.mxu1  ;;  %v6357_v27 = vadd.f32 %v14321_v7, %v14320_v15  ;;  %v14333_v43 = vld [vmem:[#allocation95_spill] sm:$0xff] }
 0x460   : > { %7717 = vst.msk [vmem:[%s13605_s4 + $0x20] sm:$0xff] %vm339_vm0, %v7685_v2  ;;  %v7688_v39 = vmax.f32 %v7656_v35, 0.0  ;;  %v7655_v32 = vadd.f32 %v7623_v60, %v7591_v17  ;;  %v7594_v14 = vadd.f32 %v13564_v25, %v7558_v11  ;;  %v7523_v28 = vadd.f32 %v10100_v33, %v7133_v48  ;;  %v14322_v48 = vld [vmem:[#allocation45_spill] sm:$0xff]  ;;  %v14324_v60 = vld [vmem:[#allocation55_spill] sm:$0xff]  ;;  %v7627_v35 = vld [vmem:[%s10633_s14 + $0x50] sm:$0xff]  ;;  %v13686_v11 = vpop.f32.mrf.mxu0 }
 0x461   : > { %v7557_v46 = vmul.f32 %v13560_v36, %v7520_v53  ;;  %v7403_v45 = vpop.f32.mrf.mxu1  ;;  %v6360_v50 = vadd.f32 %v14323_v16, %v14322_v48  ;;  %v6749_v19 = vadd.f32 %v14324_v60, %v6358_v13  ;;  %v14327_v53 = vld [vmem:[#allocation99_spill] sm:$0xff]  ;;  %v6359_v13 = vadd.f32 %v14329_v6, %v14328_v52  ;;  %v14335_v48 = vld [vmem:[#allocation61_spill] sm:$0xff] }
 0x462   : > { %7720 = vst.msk [vmem:[%s13605_s4 + $0x38] sm:$0xff] %vm339_vm0, %v7688_v39  ;;  %v7687_v62 = vmax.f32 %v7655_v32, 0.0  ;;  %v7658_v54 = vadd.f32 %v7626_v31, %v7594_v14  ;;  %v7560_v10 = vmul.f32 %v13560_v36, %v7523_v28  ;;  %v7522_v47 = vadd.f32 %v7403_v45, %v7132_v44  ;;  %v14325_v44 = vld [vmem:[#allocation69_spill] sm:$0xff]  ;;  %v7630_v32 = vld [vmem:[%s10633_s14 + $0x68] sm:$0xff]  ;;  %v7629_v45 = vld [vmem:[%s10633_s14 + $0x60] sm:$0xff] }
 0x463   : > { %v7593_v12 = vadd.f32 %v13564_v25, %v7557_v46  ;;  %v10103_v42 = vpop.f32.mrf.mxu1  ;;  %v7137_v5 = vadd.f32 %v14325_v44, %v6747_v30  ;;  %v7136_v31 = vadd.f32 %v14326_v9, %v6746_v21  ;;  %v6748_v33 = vadd.f32 %v14327_v53, %v6357_v27  ;;  %v14334_v21 = vld [vmem:[#allocation43_spill] sm:$0xff]  ;;  %v14340_v9 = vld [vmem:[#allocation49_spill] sm:$0xff]  ;;  %v14341_v53 = vld [vmem:[#allocation60_spill] sm:$0xff] }
 0x464   : > { %7719 = vst.msk [vmem:[%s13605_s4 + $0x30] sm:$0xff] %vm339_vm0, %v7687_v62  ;;  %v7690_v38 = vmax.f32 %v7658_v54, 0.0  ;;  %v7596_v40 = vadd.f32 %v13564_v25, %v7560_v10  ;;  %v7559_v37 = vmul.f32 %v13560_v36, %v7522_v47  ;;  %v7525_v57 = vadd.f32 %v10103_v42, %v7135_v24  ;;  %v14330_v24 = vld [vmem:[#allocation58_spill] sm:$0xff] }
 0x465   : > { %v7657_v2 = vadd.f32 %v7625_v59, %v7593_v12  ;;  %v7413_v17 = vpop.f32.mrf.mxu1  ;;  %v7139_v55 = vadd.f32 %v13556_v56, %v6749_v19  ;;  %v6751_v46 = vadd.f32 %v14330_v24, %v6360_v50  ;;  %v13705_v59 = vpop.f32.mrf.mxu0  ;;  %v14332_v56 = vld [vmem:[#allocation27_spill] sm:$0xff]  ;;  %v6361_v12 = vadd.f32 %v14334_v21, %v14333_v43  ;;  %v14336_v50 = vld [vmem:[#allocation100_spill] sm:$0xff]  ;;  %v7636_v43 = vld [vmem:[%s10633_s14 + $0x98] sm:$0xff] }
 0x466   : > { %7722 = vst.msk [vmem:[%s13605_s4 + $0x48] sm:$0xff] %vm339_vm0, %v7690_v38  ;;  %v7660_v18 = vadd.f32 %v7628_v51, %v7596_v40  ;;  %v7595_v29 = vadd.f32 %v13564_v25, %v7559_v37  ;;  %v7562_v8 = vmul.f32 %v13560_v36, %v7525_v57  ;;  %v7524_v41 = vadd.f32 %v7413_v17, %v7134_v61  ;;  %v7632_v57 = vld [vmem:[%s10633_s14 + $0x78] sm:$0xff]  ;;  %v7631_v19 = vld [vmem:[%s10633_s14 + $0x70] sm:$0xff] }
 0x467   : > { %v7689_v39 = vmax.f32 %v7657_v2, 0.0  ;;  %v10106_v14 = vpop.f32.mrf.mxu1  ;;  %v6362_v30 = vadd.f32 %v14332_v56, %v14331_v26  ;;  %v7138_v51 = vadd.f32 %v13570_v3, %v6748_v33  ;;  %v7141_v27 = vadd.f32 %v13585_v34, %v6751_v46  ;;  %v7633_v46 = vld [vmem:[%s10633_s14 + $0x80] sm:$0xff]  ;;  %v14344_v26 = vld [vmem:[#allocation91_spill] sm:$0xff] }
 0x468   : > { %v7692_v28 = vmax.f32 %v7660_v18, 0.0  ;;  %v7659_v22 = vadd.f32 %v7627_v35, %v7595_v29  ;;  %v7598_v20 = vadd.f32 %v13564_v25, %v7562_v8  ;;  %v7561_v63 = vmul.f32 %v13560_v36, %v7524_v41  ;;  %v13725_v35 = vpop.f32.mrf.mxu0  ;;  %v14337_v8 = vld [vmem:[#allocation46_spill] sm:$0xff] }
 0x469   : > { %7721 = vst.msk [vmem:[%s13605_s4 + $0x40] sm:$0xff] %vm339_vm0, %v7689_v39  ;;  %v7527_v62 = vadd.f32 %v10106_v14, %v7137_v5  ;;  %v7423_v54 = vpop.f32.mrf.mxu1  ;;  %v6750_v16 = vadd.f32 %v14335_v48, %v6359_v13  ;;  %v6753_v60 = vadd.f32 %v14336_v50, %v6362_v30  ;;  %v14338_v41 = vld [vmem:[#allocation90_spill] sm:$0xff]  ;;  %v6752_v33 = vadd.f32 %v14341_v53, %v6361_v12 }
 0x46a   : > { %7724 = vst.msk [vmem:[%s13605_s4 + $0x58] sm:$0xff] %vm339_vm0, %v7692_v28  ;;  %v7691_v10 = vmax.f32 %v7659_v22, 0.0  ;;  %v7662_v47 = vadd.f32 %v7630_v32, %v7598_v20  ;;  %v7597_v49 = vadd.f32 %v13564_v25, %v7561_v63  ;;  %v7526_v61 = vadd.f32 %v7423_v54, %v7136_v31  ;;  %v14339_v5 = vld [vmem:[#allocation98_spill] sm:$0xff]  ;;  %v7634_v32 = vld [vmem:[%s10633_s14 + $0x88] sm:$0xff] }
 0x46b   : > { %v7564_v42 = vmul.f32 %v13560_v36, %v7527_v62  ;;  %v10109_v38 = vpop.f32.mrf.mxu1  ;;  %v6364_v44 = vadd.f32 %v14338_v41, %v14337_v8  ;;  %v6363_v31 = vadd.f32 %v14340_v9, %v14339_v5  ;;  %v7140_v52 = vadd.f32 %v13602_v1, %v6750_v16  ;;  %v14342_v13 = vld [vmem:[#allocation102_spill] sm:$0xff]  ;;  %v13745_v62 = vpop.f32.mrf.mxu0  ;;  %v14351_v41 = vld [vmem:[#allocation64_spill] sm:$0xff]  ;;  %v7638_v5 = vld [vmem:[%s10633_s14 + $0xa8] sm:$0xff] }
 0x46c   : > { %7723 = vst.msk [vmem:[%s13605_s4 + $0x50] sm:$0xff] %vm339_vm0, %v7691_v10  ;;  %v7694_v40 = vmax.f32 %v7662_v47, 0.0  ;;  %v7661_v37 = vadd.f32 %v7629_v45, %v7597_v49  ;;  %v7563_v15 = vmul.f32 %v13560_v36, %v7526_v61  ;;  %v7529_v7 = vadd.f32 %v10109_v38, %v7139_v55  ;;  %v14343_v61 = vld [vmem:[#allocation28_spill] sm:$0xff] }
 0x46d   : > { %v7600_v3 = vadd.f32 %v13564_v25, %v7564_v42  ;;  %v7433_v2 = vpop.f32.mrf.mxu1  ;;  %v7143_v6 = vadd.f32 %v13625_v0, %v6753_v60  ;;  %v6755_v55 = vadd.f32 %v14342_v13, %v6364_v44  ;;  %v6366_v56 = vadd.f32 %v14344_v26, %v14343_v61  ;;  %v14345_v0 = vld [vmem:[#allocation62_spill] sm:$0xff]  ;;  %v7093_v60 = vpop.f32.mrf.mxu0 }
 0x46e   : > { %7726 = vst.msk [vmem:[%s13605_s4 + $0x68] sm:$0xff] %vm339_vm0, %v7694_v40  ;;  %v7693_v17 = vmax.f32 %v7661_v37, 0.0  ;;  %v7599_v18 = vadd.f32 %v13564_v25, %v7563_v15  ;;  %v7566_v29 = vmul.f32 %v13560_v36, %v7529_v7  ;;  %v7528_v34 = vadd.f32 %v7433_v2, %v7138_v51  ;;  %v14346_v37 = vld [vmem:[#allocation47_spill] sm:$0xff]  ;;  %v14349_v7 = vld [vmem:[#allocation101_spill] sm:$0xff]  ;;  %v7635_v2 = vld [vmem:[%s10633_s14 + $0x90] sm:$0xff] }
 0x46f   : > { %v7664_v39 = vadd.f32 %v7632_v57, %v7600_v3  ;;  %v10112_v14 = vpop.f32.mrf.mxu1  ;;  %v7142_v1 = vadd.f32 %v13645_v4, %v6752_v33  ;;  %v6754_v30 = vadd.f32 %v14345_v0, %v6363_v31  ;;  %v14347_v57 = vld [vmem:[#allocation48_spill] sm:$0xff]  ;;  %v14348_v4 = vld [vmem:[#allocation93_spill] sm:$0xff]  ;;  %v7145_v48 = vadd.f32 %v13665_v23, %v6755_v55  ;;  %v7637_v13 = vld [vmem:[%s10633_s14 + $0xa0] sm:$0xff] }
 0x470   : > { %7725 = vst.msk [vmem:[%s13605_s4 + $0x60] sm:$0xff] %vm339_vm0, %v7693_v17  ;;  %v7663_v28 = vadd.f32 %v7631_v19, %v7599_v18  ;;  %v7602_v22 = vadd.f32 %v13564_v25, %v7566_v29  ;;  %v7565_v20 = vmul.f32 %v13560_v36, %v7528_v34  ;;  %v7531_v63 = vadd.f32 %v10112_v14, %v7141_v27  ;;  %v14350_v34 = vld [vmem:[#allocation103_spill] sm:$0xff]  ;;  %v14353_v14 = vld [vmem:[#allocation50_spill] sm:$0xff] }
 0x471   : > { %v7696_v24 = vmax.f32 %v7664_v39, 0.0  ;;  %v7443_v45 = vpop.f32.mrf.mxu1  ;;  %v6365_v15 = vadd.f32 %v14347_v57, %v14346_v37  ;;  %v6368_v27 = vadd.f32 %v14349_v7, %v14348_v4  ;;  %v7144_v29 = vadd.f32 %v13686_v11, %v6754_v30  ;;  %v14357_v61 = vld [vmem:[#allocation66_spill] sm:$0xff] }
 0x472   : > { %v7695_v54 = vmax.f32 %v7663_v28, 0.0  ;;  %v7666_v10 = vadd.f32 %v7634_v32, %v7602_v22  ;;  %v7601_v47 = vadd.f32 %v13564_v25, %v7565_v20  ;;  %v7568_v49 = vmul.f32 %v13560_v36, %v7531_v63  ;;  %v14352_v32 = vld [vmem:[#allocation53_spill] sm:$0xff]  ;;  %v14354_v28 = vld [vmem:[#allocation94_spill] sm:$0xff]  ;;  %v14355_v22 = vld [vmem:[#allocation104_spill] sm:$0xff] }
 0x473   : > { %7728 = vst.msk [vmem:[%s13605_s4 + $0x78] sm:$0xff] %vm339_vm0, %v7696_v24  ;;  %v7530_v21 = vadd.f32 %v7443_v45, %v7140_v52  ;;  %v10115_v12 = vpop.f32.mrf.mxu1  ;;  %v6757_v8 = vadd.f32 %v14350_v34, %v6366_v56  ;;  %v6756_v23 = vadd.f32 %v14351_v41, %v6365_v15  ;;  %v6367_v11 = vadd.f32 %v14353_v14, %v14352_v32  ;;  %v14356_v63 = vld [vmem:[#allocation105_spill] sm:$0xff]  ;;  %v10071_v24 = vpop.f32.mrf.mxu0  ;;  %v7641_v14 = vld [vmem:[%s10633_s14 + $0xc0] sm:$0xff] }
 0x474   : > { %7727 = vst.msk [vmem:[%s13605_s4 + $0x70] sm:$0xff] %vm339_vm0, %v7695_v54  ;;  %v7698_v51 = vmax.f32 %v7666_v10, 0.0  ;;  %v7665_v42 = vadd.f32 %v7633_v46, %v7601_v47  ;;  %v7604_v38 = vadd.f32 %v13564_v25, %v7568_v49  ;;  %v7533_v40 = vadd.f32 %v10115_v12, %v7143_v6 }
 0x475   : > { %v7567_v16 = vmul.f32 %v13560_v36, %v7530_v21  ;;  %v7453_v50 = vpop.f32.mrf.mxu1  ;;  %v6370_v20 = vadd.f32 %v14355_v22, %v14354_v28  ;;  %v6759_v52 = vadd.f32 %v14356_v63, %v6368_v27  ;;  %v7147_v47 = vadd.f32 %v13705_v59, %v6757_v8  ;;  %v14360_v59 = vld [vmem:[#allocation106_spill] sm:$0xff]  ;;  %v7103_v4 = vpop.f32.mrf.mxu0 }
 0x476   : > { %7730 = vst.msk [vmem:[%s13605_s4 + $0x88] sm:$0xff] %vm339_vm0, %v7698_v51  ;;  %v7697_v3 = vmax.f32 %v7665_v42, 0.0  ;;  %v7668_v19 = vadd.f32 %v7636_v43, %v7604_v38  ;;  %v7570_v17 = vmul.f32 %v13560_v36, %v7533_v40  ;;  %v7532_v18 = vadd.f32 %v7453_v50, %v7142_v1  ;;  %v7640_v1 = vld [vmem:[%s10633_s14 + $0xb8] sm:$0xff]  ;;  %v14358_v51 = vld [vmem:[#allocation51_spill] sm:$0xff]  ;;  %v14359_v42 = vld [vmem:[#allocation52_spill] sm:$0xff] }
 0x477   : > { %v7603_v44 = vadd.f32 %v13564_v25, %v7567_v16  ;;  %v10118_v9 = vpop.f32.mrf.mxu1  ;;  %v7146_v49 = vadd.f32 %v13725_v35, %v6756_v23  ;;  %v6758_v26 = vadd.f32 %v14357_v61, %v6367_v11  ;;  %v6369_v38 = vadd.f32 %v14359_v42, %v14358_v51  ;;  %v7639_v35 = vld [vmem:[%s10633_s14 + $0xb0] sm:$0xff]  ;;  %v10074_v8 = vpop.f32.mrf.mxu0 }
 0x478   : > { %7729 = vst.msk [vmem:[%s13605_s4 + $0x80] sm:$0xff] %vm339_vm0, %v7697_v3  ;;  %v7700_v31 = vmax.f32 %v7668_v19, 0.0  ;;  %v7606_v53 = vadd.f32 %v13564_v25, %v7570_v17  ;;  %v7569_v33 = vmul.f32 %v13560_v36, %v7532_v18  ;;  %v7535_v39 = vadd.f32 %v10118_v9, %v7145_v48  ;;  %v14361_v50 = vld [vmem:[#allocation96_spill] sm:$0xff]  ;;  %v14362_v3 = vld [vmem:[#allocation107_spill] sm:$0xff]  ;;  %v14363_v19 = vld [vmem:[#allocation57_spill] sm:$0xff] }
 0x479   : > { %v7667_v6 = vadd.f32 %v7635_v2, %v7603_v44  ;;  %v7463_v55 = vpop.f32.mrf.mxu1  ;;  %v7149_v40 = vadd.f32 %v13745_v62, %v6759_v52  ;;  %v6761_v37 = vadd.f32 %v14360_v59, %v6370_v20  ;;  %v6372_v62 = vadd.f32 %v14362_v3, %v14361_v50  ;;  %v14364_v2 = vld [vmem:[#allocation54_spill] sm:$0xff]  ;;  %v7642_v44 = vld [vmem:[%s10633_s14 + $0xc8] sm:$0xff] }
 0x47a   : > { %7732 = vst.msk [vmem:[%s13605_s4 + $0x98] sm:$0xff] %vm339_vm0, %v7700_v31  ;;  %v7670_v46 = vadd.f32 %v7638_v5, %v7606_v53  ;;  %v7605_v45 = vadd.f32 %v13564_v25, %v7569_v33  ;;  %v7572_v54 = vmul.f32 %v13560_v36, %v7535_v39  ;;  %v7534_v10 = vadd.f32 %v7463_v55, %v7144_v29  ;;  %v14365_v53 = vld [vmem:[#allocation68_spill] sm:$0xff] }
 0x47b   : > { %v7699_v56 = vmax.f32 %v7667_v6, 0.0  ;;  %v10121_v0 = vpop.f32.mrf.mxu1  ;;  %v6371_v17 = vadd.f32 %v14364_v2, %v14363_v19  ;;  %v7148_v18 = vadd.f32 %v7093_v60, %v6758_v26  ;;  %v7151_v31 = vadd.f32 %v10071_v24, %v6761_v37  ;;  %v14366_v39 = vld [vmem:[#allocation108_spill] sm:$0xff]  ;;  %v7113_v24 = vpop.f32.mrf.mxu0 }
 0x47c   : > { %v7702_v30 = vmax.f32 %v7670_v46, 0.0  ;;  %v7669_v43 = vadd.f32 %v7637_v13, %v7605_v45  ;;  %v7608_v21 = vadd.f32 %v13564_v25, %v7572_v54  ;;  %v7571_v12 = vmul.f32 %v13560_v36, %v7534_v10  ;;  %v7644_v13 = vld [vmem:[%s10633_s14 + $0xd8] sm:$0xff]  ;;  %v7643_v26 = vld [vmem:[%s10633_s14 + $0xd0] sm:$0xff] }
 0x47d   : > { %7731 = vst.msk [vmem:[%s13605_s4 + $0x90] sm:$0xff] %vm339_vm0, %v7699_v56  ;;  %v7537_v57 = vadd.f32 %v10121_v0, %v7147_v47  ;;  %v7473_v15 = vpop.f32.mrf.mxu1  ;;  %v6760_v33 = vadd.f32 %v14365_v53, %v6369_v38  ;;  %v6763_v60 = vadd.f32 %v14366_v39, %v6372_v62  ;;  %v6762_v52 = vadd.f32 %v13552_v58, %v6371_v17  ;;  %v7647_v2 = vld [vmem:[%s10633_s14 + $0xf0] sm:$0xff] }
 0x47e   : > { %7734 = vst.msk [vmem:[%s13605_s4 + $0xa8] sm:$0xff] %vm339_vm0, %v7702_v30  ;;  %v7701_v7 = vmax.f32 %v7669_v43, 0.0  ;;  %v7672_v27 = vadd.f32 %v7640_v1, %v7608_v21  ;;  %v7607_v48 = vadd.f32 %v13564_v25, %v7571_v12  ;;  %v7536_v16 = vadd.f32 %v7473_v15, %v7146_v49  ;;  %v7646_v21 = vld [vmem:[%s10633_s14 + $0xe8] sm:$0xff] }
 0x47f   : > { %v7574_v29 = vmul.f32 %v13560_v36, %v7537_v57  ;;  %v10124_v34 = vpop.f32.mrf.mxu1  ;;  %v7150_v47 = vadd.f32 %v7103_v4, %v6760_v33  ;;  %v7153_v49 = vadd.f32 %v10074_v8, %v6763_v60  ;;  %v7152_v43 = vadd.f32 %v7113_v24, %v6762_v52  ;;  %v7645_v4 = vld [vmem:[%s10633_s14 + $0xe0] sm:$0xff] }
 0x480   : > { %7733 = vst.msk [vmem:[%s13605_s4 + $0xa0] sm:$0xff] %vm339_vm0, %v7701_v7  ;;  %v7704_v41 = vmax.f32 %v7672_v27, 0.0  ;;  %v7671_v23 = vadd.f32 %v7639_v35, %v7607_v48  ;;  %v7573_v5 = vmul.f32 %v13560_v36, %v7536_v16  ;;  %v7539_v9 = vadd.f32 %v10124_v34, %v7149_v40  ;;  %v7648_v16 = vld [vmem:[%s10633_s14 + $0xf8] sm:$0xff] }
 0x481   : > { %v7610_v32 = vadd.f32 %v13564_v25, %v7574_v29  ;;  %v7483_v11 = vpop.f32.mrf.mxu1 }
 0x482   : > { %7736 = vst.msk [vmem:[%s13605_s4 + $0xb8] sm:$0xff] %vm339_vm0, %v7704_v41  ;;  %v7703_v28 = vmax.f32 %v7671_v23, 0.0  ;;  %v7609_v22 = vadd.f32 %v13564_v25, %v7573_v5  ;;  %v7576_v20 = vmul.f32 %v13560_v36, %v7539_v9  ;;  %v7538_v63 = vadd.f32 %v7483_v11, %v7148_v18 }
 0x483   : > { %v7674_v6 = vadd.f32 %v7642_v44, %v7610_v32  ;;  %v10127_v55 = vpop.f32.mrf.mxu1 }
 0x484   : > { %7735 = vst.msk [vmem:[%s13605_s4 + $0xb0] sm:$0xff] %vm339_vm0, %v7703_v28  ;;  %v7673_v46 = vadd.f32 %v7641_v14, %v7609_v22  ;;  %v7612_v45 = vadd.f32 %v13564_v25, %v7576_v20  ;;  %v7575_v54 = vmul.f32 %v13560_v36, %v7538_v63  ;;  %v7541_v10 = vadd.f32 %v10127_v55, %v7151_v31 }
 0x485   : > { %v7706_v61 = vmax.f32 %v7674_v6, 0.0  ;;  %v7493_v58 = vpop.f32.mrf.mxu1 }
 0x486   : > { %v7705_v56 = vmax.f32 %v7673_v46, 0.0  ;;  %v7676_v1 = vadd.f32 %v7644_v13, %v7612_v45  ;;  %v7611_v0 = vadd.f32 %v13564_v25, %v7575_v54  ;;  %v7578_v30 = vmul.f32 %v13560_v36, %v7541_v10 }
 0x487   : > { %7738 = vst.msk [vmem:[%s13605_s4 + $0xc8] sm:$0xff] %vm339_vm0, %v7706_v61  ;;  %v7540_v12 = vadd.f32 %v7493_v58, %v7150_v47  ;;  %v10130_v51 = vpop.f32.mrf.mxu1 }
 0x488   : > { %7737 = vst.msk [vmem:[%s13605_s4 + $0xc0] sm:$0xff] %vm339_vm0, %v7705_v56  ;;  %v7708_v42 = vmax.f32 %v7676_v1, 0.0  ;;  %v7675_v38 = vadd.f32 %v7643_v26, %v7611_v0  ;;  %v7614_v40 = vadd.f32 %v13564_v25, %v7578_v30  ;;  %v7543_v59 = vadd.f32 %v10130_v51, %v7153_v49 }
 0x489   : > { %v7577_v37 = vmul.f32 %v13560_v36, %v7540_v12  ;;  %v7503_v35 = vpop.f32.mrf.mxu1 }
 0x48a   : > { %7740 = vst.msk [vmem:[%s13605_s4 + $0xd8] sm:$0xff] %vm339_vm0, %v7708_v42  ;;  %v7707_v57 = vmax.f32 %v7675_v38, 0.0  ;;  %v7678_v15 = vadd.f32 %v7646_v21, %v7614_v40  ;;  %v7580_v7 = vmul.f32 %v13560_v36, %v7543_v59  ;;  %v7542_v27 = vadd.f32 %v7503_v35, %v7152_v43 }
 0x48b   : > { %v7613_v48 = vadd.f32 %v13564_v25, %v7577_v37 }
 0x48c   : > { %7739 = vst.msk [vmem:[%s13605_s4 + $0xd0] sm:$0xff] %vm339_vm0, %v7707_v57  ;;  %v7710_v50 = vmax.f32 %v7678_v15, 0.0  ;;  %v7616_v3 = vadd.f32 %v13564_v25, %v7580_v7  ;;  %v7579_v62 = vmul.f32 %v13560_v36, %v7542_v27 }
 0x48d   : > { %v7677_v19 = vadd.f32 %v7645_v4, %v7613_v48 }
 0x48e   : > { %7742 = vst.msk [vmem:[%s13605_s4 + $0xe8] sm:$0xff] %vm339_vm0, %v7710_v50  ;;  %v7680_v17 = vadd.f32 %v7648_v16, %v7616_v3  ;;  %v7615_v18 = vadd.f32 %v13564_v25, %v7579_v62 }
 0x48f   : > { %v7709_v29 = vmax.f32 %v7677_v19, 0.0 }
 0x490   : > { %v7712_v34 = vmax.f32 %v7680_v17, 0.0  ;;  %v7679_v8 = vadd.f32 %v7647_v2, %v7615_v18 }
 0x491   : > { %7741 = vst.msk [vmem:[%s13605_s4 + $0xe0] sm:$0xff] %vm339_vm0, %v7709_v29 }
 0x492   : > { %7744 = vst.msk [vmem:[%s13605_s4 + $0xf8] sm:$0xff] %vm339_vm0, %v7712_v34  ;;  %v7711_v36 = vmax.f32 %v7679_v8, 0.0 }
 0x494   : > { %7743 = vst.msk [vmem:[%s13605_s4 + $0xf0] sm:$0xff] %vm339_vm0, %v7711_v36 }
 0x495   : > { %10330 = shalt.err (!%p10327_p4)
}
 0x496   : > { %s10331_s29 = scalar_lea.hbm %s13858_s17, 4096  ;;  %s10335_s27 = scalar_lea.hbm %s13913_s6, 8192 }
 0x497   : > { %p10332_p5 = scmp.ne.s32.totalorder %s13858_s17, %s10331_s29  ;;  %p10336_p2 = scmp.lt.s32.totalorder %s13858_s17, %s13913_s6 }
 0x498   : > { %p10337_p6 = scmp.lt.s32.totalorder %s10335_s27, %s10331_s29 }
 0x499   : > { %p10333_p7 = pnand %p10332_p5, %p14367_p10 }
 0x49a   : > { %p10338_p12 = por %p10337_p6, %p10336_p2 }
 0x49b   : > { %p10334_p8 = pneg %p10333_p7 }
 0x49d   : > { %p10339_p0 = pnand %p10338_p12, %p10334_p8 }
 0x49f   : > { %10342 = shalt.err (!%p10339_p0)
}
 0x4a0   : > { %s10403_s26 = smov 128   ;;  %s10404_s4 = smov 8  }
 0x4a1   : > { %10143 = dma.vmem_to_hbm [thread:$0]  (%p14367_p10), %s13860_s11, 4096, %s13858_s17, %s7746_s25, %s10403_s26, %s10403_s26, %s10404_s4  }
 0x4a2 PF: > { %s7774_s9 = sand.u32 1, %s10381_s21   ;;  %p14368_p3 = scmp.ne.s32.totalorder %s13964_s28, 0 }
 0x4a3   : > { %p14369_p11 = scmp.ge.s32.totalorder %s10393_s24, 2  ;;  %s7775_s13 = scalar_lea.sflag [#allocation6], %s7774_s9 }
 0x4a5   : > { %p10160_p9 = pnand %p14369_p11, %p14368_p3 }
 0x4a7   : > { %p10161_p13 = pneg %p10160_p9 }
 0x4a9   : > { %10376 = dma.done.wait (%p10161_p13), %s7775_s13, 4096  }
 0x4aa   : > { %10378 = vsyncadd (%p10161_p13), %s7775_s13, 4294963200  ;;  %p23_p1 = scmp.ge.s32.totalorder %s10518_s19, 4   ;;  %s14370_s21 = smov %s10385_s22 }
 0x4ab   : > { %s14371_s22 = smov %s10389_s23  ;;  %s14372_s23 = smov %s10534_s7 }
 0x4ac   : > { %s14373_s24 = smov %s10518_s19  ;;  %25 = sbr.rel (!%p23_p1) target bundleno = 12 (0xc), region = 130 }
 0x4b1   :  { %7780 = vsyncpa [#allocation5], 1 }
 0x4b2   :  { %7782 = vsyncpa [#allocation5 + $0x1], 1 }
 0x4b3   :  { %7783 = vsyncpa [#allocation8], 1 }
 0x4b4   :  { %7785 = vsyncpa [#allocation8 + $0x1], 1 }
 0x4b5   :  { %7786 = vsyncpa [#allocation11], 1 }
 0x4b6   :  { %7787 = vsyncpa [#allocation6], 1 }
 0x4b7   :  { %7789 = vsyncpa [#allocation6 + $0x1], 1 }

</bundles_post_ra>
